<compile_context>
chip_gen: v7x
topology: tpu7x:2x2x1
jax: 0.10.0
libtpu: 0.0.40
codegen_flags: <defaults>
</compile_context>

<pallas_src>
import numpy as np
import jax
import jax.numpy as jnp
from jax import lax
from jax.experimental import pallas as pl
from jax.experimental.pallas import tpu as pltpu

# fixed conv geometry of the module
C1, C2, K1, K2 = 32, 64, 7, 3


# --------------------------------------------------------------------------
# shared helpers (exact math; used both in-kernel and in the JAX reference)
# --------------------------------------------------------------------------
def _sigmoid(x):
    return 1.0 / (1.0 + jnp.exp(-x))


def _softmax(x):
    x = x - jnp.max(x, axis=-1, keepdims=True)
    e = jnp.exp(x)
    return e / jnp.sum(e, axis=-1, keepdims=True)


def _round_up(x, m):
    return ((x + m - 1) // m) * m


# --------------------------------------------------------------------------
# Pallas kernel: batched hidden path + in-kernel recurrence + batched read.
# No grid: every operand is a whole-array VMEM block of one invocation.
# --------------------------------------------------------------------------
def emm_kernel(h_ref, wr0_ref, ww0_ref, m0_ref,
               w1_ref, b1_ref, w2_ref, b2_ref, w3_ref, b3_ref,
               tile_ref, rep_ref, grpread_ref, bread_ref, eye_ref,
               steps_ref, m_ref,
               step_sc, acc_sc):
    f32 = jnp.float32
    T = h_ref.shape[0]                    # timesteps
    MB, MM = m0_ref.shape                 # memory banks, flattened bank size
    MD = wr0_ref.shape[1]                 # memory dim (8), MM == MD*MD
    READ = bread_ref.shape[1]
    S1 = w2_ref.shape[0]                  # L1*C1
    S2 = w2_ref.shape[1] // 2             # L2*C2

    # ---------------- Phase 1: h-only path, batched over all T (MXU) --------
    x = h_ref[...]                                                  # (T, H)
    # conv1 + maxpool (+ the 3 gates) as one banded matmul
    z1 = jnp.dot(x, w1_ref[...], preferred_element_type=f32) + b1_ref[...]
    g = z1[:, 2 * S1:2 * S1 + 3]                                    # (T, 3)
    gr_all = jnp.clip(1.2 * _sigmoid(g[:, 0:1]) - 0.1, 0.0, 1.0)
    gw_all = jnp.clip(1.2 * _sigmoid(g[:, 1:2]) - 0.1, 0.0, 1.0)
    gm_all = jnp.clip(0.6 * jnp.tanh(g[:, 2:3]), -0.5, 0.5)
    r1 = jnp.maximum(jnp.maximum(z1[:, :S1], z1[:, S1:2 * S1]), 0.0)  # (T, S1)

    # conv2 + maxpool + clip(1.2*sigmoid-0.1) as one banded matmul
    z2 = jnp.dot(r1, w2_ref[...], preferred_element_type=f32) + b2_ref[...]
    p2 = jnp.maximum(jnp.maximum(z2[:, :S2], z2[:, S2:2 * S2]), 0.0)
    hp = jnp.clip(1.2 * _sigmoid(p2) - 0.1, 0.0, 1.0)               # (T, S2)

    # 5 fused linear heads, padded to a 128-lane output
    y = jnp.dot(hp, w3_ref[...], preferred_element_type=f32) + b3_ref[...]
    bank_all = _softmax(1.2 * _sigmoid(y[:, 0:MB]) - 0.1)           # (T, MB)
    wr_s_all = _softmax(y[:, MB:MB + MD])                           # (T, MD)
    ww_s_all = _softmax(y[:, MB + MD:MB + 2 * MD])
    e_all = jnp.maximum(y[:, MB + 2 * MD:MB + 3 * MD], 0.0)
    a_all = jnp.maximum(y[:, MB + 3 * MD:MB + 4 * MD], 0.0)

    # tile/repeat onto the flattened (i*MD + j) memory layout, batched over T,
    # via tiny constant matmuls (kept off the per-step serial path)
    wr_s_til = jnp.dot(wr_s_all, tile_ref[...], preferred_element_type=f32)       # (T, MM)
    ww_s_rep = jnp.dot(ww_s_all, rep_ref[...], preferred_element_type=f32)        # (T, MM)
    d_til = jnp.dot(a_all - e_all, tile_ref[...], preferred_element_type=f32)     # (T, MM)

    # bank transposed ONCE (A @ B^T on the MXU); columns selected per step below
    bankT = lax.dot_general(eye_ref[...], bank_all,
                            (((1,), (1,)), ((), ())),
                            preferred_element_type=f32)             # (MB, T)

    # pack the per-step Phase-1 rows into one scratch -> one sublane-slice
    # load per recurrence step
    O0, O1, O2, O3 = 0, MM, 2 * MM, 3 * MM
    OG = 3 * MM + MD
    step_sc[:, O0:O1] = wr_s_til
    step_sc[:, O1:O2] = ww_s_rep
    step_sc[:, O2:O3] = d_til
    step_sc[:, O3:O3 + MD] = ww_s_all
    step_sc[:, OG + 0:OG + 1] = gr_all
    step_sc[:, OG + 1:OG + 2] = gw_all
    step_sc[:, OG + 2:OG + 3] = gm_all

    # ---------------- Phase 2: recurrence over T (VPU/XLU only, no MXU) ------
    m_ref[...] = m0_ref[...]              # memory state carried in the output ref
    wr_til0 = jnp.dot(wr0_ref[...], tile_ref[...], preferred_element_type=f32)   # (1, MM)
    ww_rep0 = jnp.dot(ww0_ref[...], rep_ref[...], preferred_element_type=f32)    # (1, MM)
    wwt0 = ww0_ref[...]                                                          # (1, MD)
    tids = lax.broadcasted_iota(jnp.int32, (1, T), 1)

    def body(t, carry):
        wr_til_o, ww_rep_o, wwt_o = carry
        row = step_sc[pl.ds(t, 1), :]                               # (1, STEPW)
        wr_s_til_t = row[:, O0:O1]
        ww_s_rep_t = row[:, O1:O2]
        d_til_t = row[:, O2:O3]
        ww_s_t = row[:, O3:O3 + MD]
        gr = row[:, OG + 0:OG + 1]
        gw = row[:, OG + 1:OG + 2]
        gm = row[:, OG + 2:OG + 3]

        # bank column for this step: one-hot select over the precomputed bank^T
        sel = (tids == t).astype(f32)                               # (1, T)
        bank_col = jnp.sum(bankT * sel, axis=1, keepdims=True)      # (MB, 1)

        m_old = m_ref[...]                                          # (MB, MM)
        m_j = jnp.sum(bank_col * m_old, axis=0, keepdims=True)      # (1, MM)

        # gated blends of the precomputed softmaxes with the carried state
        wr_til = gr * wr_s_til_t + (1.0 - gr) * wr_til_o            # (1, MM)
        ww_rep = gw * ww_s_rep_t + (1.0 - gw) * ww_rep_o            # (1, MM)
        wwt = gw * ww_s_t + (1.0 - gw) * wwt_o                      # (1, MD)

        # stash per-step results; the read Linear is applied to all T after
        # the loop (first MD lanes of the tiled form ARE wr_t)
        acc_sc[pl.ds(t, 1), 0:MM] = m_j * wr_til
        acc_sc[pl.ds(t, 1), MM:MM + MD] = wr_til[:, 0:MD]
        acc_sc[pl.ds(t, 1), MM + MD:MM + 2 * MD] = wwt

        # memory update (uses OLD memory, matching the torch module)
        m_jt = 1.0 + ww_rep * d_til_t                               # (1, MM)
        m_ref[...] = (0.5 + gm) * (bank_col * m_jt) + (0.5 - gm) * m_old
        return (wr_til, ww_rep, wwt)

    lax.fori_loop(0, T, body, (wr_til0, ww_rep0, wwt0), unroll=True)

    # ---------------- Phase 3: batched read + lane-dense packed output -------
    acc = acc_sc[...]                                               # (T, ACCW)
    r_all = jnp.maximum(
        jnp.dot(acc[:, 0:MM], grpread_ref[...], preferred_element_type=f32)
        + bread_ref[...], 0.0)                                      # (T, READ)
    steps_ref[:, 0:READ] = r_all
    steps_ref[:, READ:READ + 2 * MD] = acc[:, MM:MM + 2 * MD]       # [wr | ww]
    if steps_ref.shape[1] > READ + 2 * MD:
        steps_ref[:, READ + 2 * MD:] = jnp.zeros(
            (T, steps_ref.shape[1] - READ - 2 * MD), f32)


# --------------------------------------------------------------------------
# Wrappers
# --------------------------------------------------------------------------
def emm_forward_seq(h_seq, wr, ww, m, kp):
    """Run T recurrent EMM steps in one pallas_call (no grid).

    Returns (r_t per step, final memory, wr_t per step, ww_t per step).
    """
    T, _ = h_seq.shape
    MB, MD, _ = m.shape
    MM = MD * MD
    READ = kp["bread"].shape[1]
    PACKW = 128                                   # lane-dense packed output row
    assert READ + 2 * MD <= PACKW
    STEPW = _round_up(3 * MM + MD + 3, 128)       # per-step Phase-1 row width
    ACCW = _round_up(MM + 2 * MD, 128)            # per-step [prod | wr | ww] row

    steps, m_out = pl.pallas_call(
        emm_kernel,
        out_shape=(
            jax.ShapeDtypeStruct((T, PACKW), jnp.float32),   # [r | wr | ww | pad]
            jax.ShapeDtypeStruct((MB, MM), jnp.float32),     # final memory
        ),
        scratch_shapes=[
            pltpu.VMEM((T, STEPW), jnp.float32),             # Phase-1 per-step rows
            pltpu.VMEM((T, ACCW), jnp.float32),              # per-step results
        ],
    )(h_seq.astype(jnp.float32),
      wr.astype(jnp.float32), ww.astype(jnp.float32),
      m.reshape(MB, MM).astype(jnp.float32),
      kp["w1big"], kp["b1big"], kp["w2big"], kp["b2big"],
      kp["w3"], kp["b3"], kp["tilemat"], kp["repmat"],
      kp["grpread"], kp["bread"], kp["eye"])

    r_all = steps[:, 0:READ]
    wr_all = steps[:, READ:READ + MD]
    ww_all = steps[:, READ + MD:READ + 2 * MD]
    return r_all, m_out.reshape(MB, MD, MD), wr_all, ww_all


def emm_forward(h, wr, ww, m, kp):
    """Single-step forward with the exact semantics of EMM_GPU.forward."""
    return emm_forward_seq(h.reshape(1, -1), wr, ww, m, kp)


# --------------------------------------------------------------------------
# Deterministic parameter init (torch layout)
# --------------------------------------------------------------------------
def init_params(key, H, MB, MD, READ):
    HPF = C2 * (H // 4)
    ks = iter(jax.random.split(key, 32))

    def u(shape, fan_in):
        b = 1.0 / np.sqrt(fan_in)
        return jax.random.uniform(next(ks), shape, jnp.float32, -b, b)

    return {
        "w1": u((C1, 1, K1), K1),          "b1": u((C1,), K1),
        "w2": u((C2, C1, K2), C1 * K2),    "b2": u((C2,), C1 * K2),
        "W_bank": u((MB, HPF), HPF),       "b_bank": u((MB,), HPF),
        "W_rw": u((MD, HPF), HPF),         "b_rw": u((MD,), HPF),
        "W_ww": u((MD, HPF), HPF),         "b_ww": u((MD,), HPF),
        "W_er": u((MD, HPF), HPF),         "b_er": u((MD,), HPF),
        "W_ad": u((MD, HPF), HPF),         "b_ad": u((MD,), HPF),
        "W_rg": u((1, H), H),              "b_rg": u((1,), H),
        "W_wg": u((1, H), H),              "b_wg": u((1,), H),
        "W_mg": u((1, H), H),              "b_mg": u((1,), H),
        "W_read": u((READ, MD), MD),       "b_read": u((READ,), MD),
    }


# --------------------------------------------------------------------------
# Repack torch-layout params into the kernel layout (done ONCE, outside the
# kernel): banded conv matrices with even/odd pooled columns, fused heads
# padded to 128 lanes, and the constant tile/repeat/group-sum matrices.
# --------------------------------------------------------------------------
def pack_params(tp, H, MB, MD, READ):
    L1, L2 = H // 2, H // 4
    S1, S2 = L1 * C1, L2 * C2
    GPAD = 128                              # lane padding for the gate columns
    OUT = MB + 4 * MD
    OUTP = _round_up(OUT, 128)

    w1 = np.asarray(tp["w1"])[:, 0, :]      # (C1, K1)
    b1 = np.asarray(tp["b1"])
    w2 = np.asarray(tp["w2"])               # (C2, C1, K2)
    b2 = np.asarray(tp["b2"])

    # conv1 (+gates): columns [even pooled | odd pooled | gates, zero-padded]
    w1big = np.zeros((H, 2 * S1 + GPAD), np.float32)
    for l1 in range(L1):
        for k in range(K1):
            te = 2 * l1 + k - (K1 // 2)
            if 0 <= te < H:
                w1big[te, l1 * C1:(l1 + 1) * C1] += w1[:, k]
            to = 2 * l1 + 1 + k - (K1 // 2)
            if 0 <= to < H:
                w1big[to, S1 + l1 * C1:S1 + (l1 + 1) * C1] += w1[:, k]
    w1big[:, 2 * S1 + 0] = np.asarray(tp["W_rg"])[0]
    w1big[:, 2 * S1 + 1] = np.asarray(tp["W_wg"])[0]
    w1big[:, 2 * S1 + 2] = np.asarray(tp["W_mg"])[0]

    b1big = np.zeros((1, 2 * S1 + GPAD), np.float32)
    b1big[0, :S1] = np.tile(b1, L1)
    b1big[0, S1:2 * S1] = np.tile(b1, L1)
    b1big[0, 2 * S1 + 0] = np.asarray(tp["b_rg"])[0]
    b1big[0, 2 * S1 + 1] = np.asarray(tp["b_wg"])[0]
    b1big[0, 2 * S1 + 2] = np.asarray(tp["b_mg"])[0]

    # conv2: columns [even pooled | odd pooled]
    w2big = np.zeros((S1, 2 * S2), np.float32)
    for l2 in range(L2):
        for k in range(K2):
            pe = 2 * l2 + k - (K2 // 2)
            if 0 <= pe < L1:
                w2big[pe * C1:(pe + 1) * C1, l2 * C2:(l2 + 1) * C2] += w2[:, :, k].T
            po = 2 * l2 + 1 + k - (K2 // 2)
            if 0 <= po < L1:
                w2big[po * C1:(po + 1) * C1, S2 + l2 * C2:S2 + (l2 + 1) * C2] += w2[:, :, k].T
    b2big = np.concatenate([np.tile(b2, L2), np.tile(b2, L2)])[None, :].astype(np.float32)

    # 5 fused heads; kernel hp index = l2*C2 + c, torch flat index = c*L2 + l2
    W_all = np.concatenate([np.asarray(tp["W_bank"]), np.asarray(tp["W_rw"]),
                            np.asarray(tp["W_ww"]), np.asarray(tp["W_er"]),
                            np.asarray(tp["W_ad"])], axis=0)          # (OUT, C2*L2)
    b_all = np.concatenate([np.asarray(tp["b_bank"]), np.asarray(tp["b_rw"]),
                            np.asarray(tp["b_ww"]), np.asarray(tp["b_er"]),
                            np.asarray(tp["b_ad"])])
    w3core = W_all.reshape(OUT, C2, L2).transpose(2, 1, 0).reshape(S2, OUT)
    w3 = np.zeros((S2, OUTP), np.float32)
    w3[:, :OUT] = w3core
    b3 = np.zeros((1, OUTP), np.float32)
    b3[0, :OUT] = b_all

    # constant selection matrices (flat bank index k = i*MD + j)
    MM = MD * MD
    kk = np.arange(MM)
    tilemat = (kk[None, :] % MD == np.arange(MD)[:, None]).astype(np.float32)   # (MD, MM)
    repmat = (kk[None, :] // MD == np.arange(MD)[:, None]).astype(np.float32)   # (MD, MM)
    grp = (kk[:, None] // MD == np.arange(MD)[None, :]).astype(np.float32)      # (MM, MD)
    grpread = (grp @ np.asarray(tp["W_read"]).T).astype(np.float32)             # (MM, READ)
    bread = np.asarray(tp["b_read"])[None, :].astype(np.float32)
    eye = np.eye(MB, dtype=np.float32)

    packed = dict(w1big=w1big, b1big=b1big, w2big=w2big, b2big=b2big,
                  w3=w3, b3=b3, tilemat=tilemat, repmat=repmat,
                  grpread=grpread, bread=bread, eye=eye)
    return {k: jnp.asarray(v) for k, v in packed.items()}


# --------------------------------------------------------------------------
# Pure-JAX reference of the torch forward (single step, for correctness)
# --------------------------------------------------------------------------
def emm_reference(h, wr, ww, m, tp):
    H = h.shape[1]
    gr = jnp.clip(1.2 * _sigmoid(h @ tp["W_rg"].T + tp["b_rg"]) - 0.1, 0.0, 1.0)
    gw = jnp.clip(1.2 * _sigmoid(h @ tp["W_wg"].T + tp["b_wg"]) - 0.1, 0.0, 1.0)
    gm = jnp.clip(0.6 * jnp.tanh(h @ tp["W_mg"].T + tp["b_mg"]), -0.5, 0.5)

    x = h[:, None, :]                                               # (1,1,H) NCL
    c1 = lax.conv_general_dilated(x, tp["w1"], (1,), [(3, 3)],
                                  dimension_numbers=("NCH", "OIH", "NCH"))
    c1 = c1 + tp["b1"][None, :, None]
    r1 = jnp.maximum(c1.reshape(1, 32, H // 2, 2).max(-1), 0.0)
    c2 = lax.conv_general_dilated(r1, tp["w2"], (1,), [(1, 1)],
                                  dimension_numbers=("NCH", "OIH", "NCH"))
    c2 = c2 + tp["b2"][None, :, None]
    r2 = jnp.maximum(c2.reshape(1, 64, H // 4, 2).max(-1), 0.0)
    hp = jnp.clip(1.2 * _sigmoid(r2) - 0.1, 0.0, 1.0).reshape(1, -1)

    bank = _softmax(1.2 * _sigmoid(hp @ tp["W_bank"].T + tp["b_bank"]) - 0.1)
    m_j = (bank[0][:, None, None] * m).sum(0)

    wr_s = _softmax(hp @ tp["W_rw"].T + tp["b_rw"])
    wr_t = gr * wr_s + (1.0 - gr) * wr
    r_pre = (m_j @ wr_t[0])[None, :]
    r_t = jnp.maximum(r_pre @ tp["W_read"].T + tp["b_read"], 0.0)

    ww_s = _softmax(hp @ tp["W_ww"].T + tp["b_ww"])
    ww_t = gw * ww_s + (1.0 - gw) * ww
    a_t = jnp.maximum(hp @ tp["W_ad"].T + tp["b_ad"], 0.0)
    e_t = jnp.maximum(hp @ tp["W_er"].T + tp["b_er"], 0.0)
    m_jt = 1.0 - jnp.outer(ww_t[0], e_t[0]) + jnp.outer(ww_t[0], a_t[0])

    m_t = bank[0][:, None, None] * m_jt[None, :, :]
    gms = gm[0, 0]
    m_t = (0.5 + gms) * m_t + (0.5 - gms) * m
    return r_t, m_t, wr_t, ww_t


if __name__ == "__main__":
    H, MB, MD, READ = 32, 32, 8, 16      # num_hidden, memory_banks, memory_dims, read_size
    T = 8                                # timesteps fused in one pallas_call
    key = jax.random.PRNGKey(0)
    kh, km, kparam = jax.random.split(key, 3)

    h_seq = jax.random.normal(kh, (T, H), jnp.float32)              # hidden states
    wr0 = jnp.eye(1, MD, dtype=jnp.float32)                         # init_weights_mem
    ww0 = jnp.eye(1, MD, dtype=jnp.float32)
    m0 = jax.random.uniform(km, (MB, MD, MD), jnp.float32) * 0.01   # memory * 0.01

    tp = init_params(kparam, H, MB, MD, READ)                       # torch-layout params
    kp = pack_params(tp, H, MB, MD, READ)                           # kernel-layout params

    # ---- single step (exact module semantics) ------------------------------
    fwd1 = jax.jit(emm_forward)
    out1 = jax.block_until_ready(fwd1(h_seq[0:1], wr0, ww0, m0, kp))
    ref1 = emm_reference(h_seq[0:1], wr0, ww0, m0, tp)
    for got, exp in zip(out1, ref1):
        assert got.shape == exp.shape, (got.shape, exp.shape)
        assert np.allclose(np.asarray(got), np.asarray(exp), rtol=2e-2, atol=2e-3)

    # ---- T-step fused recurrence (batched hidden path + VPU-only loop) -----
    fwdT = jax.jit(emm_forward_seq)
    r_all, m_fin, wr_all, ww_all = jax.block_until_ready(fwdT(h_seq, wr0, ww0, m0, kp))

    wr_r, ww_r, m_r = wr0, ww0, m0
    for t in range(T):
        r_r, m_r, wr_r, ww_r = emm_reference(h_seq[t:t + 1], wr_r, ww_r, m_r, tp)
        assert np.allclose(np.asarray(r_all[t:t + 1]), np.asarray(r_r), rtol=3e-2, atol=3e-3)
        assert np.allclose(np.asarray(wr_all[t:t + 1]), np.asarray(wr_r), rtol=3e-2, atol=3e-3)
        assert np.allclose(np.asarray(ww_all[t:t + 1]), np.asarray(ww_r), rtol=3e-2, atol=3e-3)
    assert np.allclose(np.asarray(m_fin), np.asarray(m_r), rtol=3e-2, atol=3e-3)

    print("KERNEL_OK")
</pallas_src>

<mosaic_0001>
module attributes {stable_mosaic.version = 11 : i64} {
  func.func @emm_kernel(%arg0: memref<1x32xf32, #tpu.memory_space<vmem>>, %arg1: memref<1x8xf32, #tpu.memory_space<vmem>>, %arg2: memref<1x8xf32, #tpu.memory_space<vmem>>, %arg3: memref<32x64xf32, #tpu.memory_space<vmem>>, %arg4: memref<32x1152xf32, #tpu.memory_space<vmem>>, %arg5: memref<1x1152xf32, #tpu.memory_space<vmem>>, %arg6: memref<512x1024xf32, #tpu.memory_space<vmem>>, %arg7: memref<1x1024xf32, #tpu.memory_space<vmem>>, %arg8: memref<512x128xf32, #tpu.memory_space<vmem>>, %arg9: memref<1x128xf32, #tpu.memory_space<vmem>>, %arg10: memref<8x64xf32, #tpu.memory_space<vmem>>, %arg11: memref<8x64xf32, #tpu.memory_space<vmem>>, %arg12: memref<64x16xf32, #tpu.memory_space<vmem>>, %arg13: memref<1x16xf32, #tpu.memory_space<vmem>>, %arg14: memref<32x32xf32, #tpu.memory_space<vmem>>, %arg15: memref<1x128xf32, #tpu.memory_space<vmem>>, %arg16: memref<32x64xf32, #tpu.memory_space<vmem>>, %arg17: memref<1x256xf32, #tpu.memory_space<vmem>>, %arg18: memref<1x128xf32, #tpu.memory_space<vmem>>) attributes {dimension_semantics = [], scalar_prefetch = 0 : i64, scratch_operands = 2 : i64, tpu.core_type = #tpu.core_type<tc>} {
    %c0 = arith.constant 0 : index
    %c0_0 = arith.constant 0 : index
    %0 = vector.load %arg0[%c0, %c0_0] : memref<1x32xf32, #tpu.memory_space<vmem>>, vector<1x32xf32>
    %c0_1 = arith.constant 0 : index
    %c0_2 = arith.constant 0 : index
    %1 = vector.load %arg4[%c0_1, %c0_2] : memref<32x1152xf32, #tpu.memory_space<vmem>>, vector<32x1152xf32>
    %cst = arith.constant dense<0.000000e+00> : vector<1x1152xf32>
    %2 = tpu.matmul %0, %1, %cst {dimension_numbers = #tpu.dot_dimension_numbers<[1], [0], [0], [1], [0, 0, 1, 1], [], []>} : vector<1x32xf32>, vector<32x1152xf32>, vector<1x1152xf32> -> vector<1x1152xf32>
    %c0_3 = arith.constant 0 : index
    %c0_4 = arith.constant 0 : index
    %3 = vector.load %arg5[%c0_3, %c0_4] : memref<1x1152xf32, #tpu.memory_space<vmem>>, vector<1x1152xf32>
    %4 = arith.addf %2, %3 : vector<1x1152xf32>
    %5 = vector.extract_strided_slice %4 {offsets = [0, 1024], sizes = [1, 3], strides = [1, 1]} : vector<1x1152xf32> to vector<1x3xf32>
    %6 = vector.extract_strided_slice %5 {offsets = [0, 0], sizes = [1, 1], strides = [1, 1]} : vector<1x3xf32> to vector<1x1xf32>
    %cst_5 = arith.constant 0.000000e+00 : f32
    %7 = vector.broadcast %cst_5 : f32 to vector<1x1xf32>
    %8 = arith.subf %7, %6 : vector<1x1xf32>
    %9 = math.exp %8 : vector<1x1xf32>
    %cst_6 = arith.constant 1.000000e+00 : f32
    %10 = vector.broadcast %cst_6 : f32 to vector<1x1xf32>
    %11 = arith.addf %10, %9 : vector<1x1xf32>
    %cst_7 = arith.constant 1.000000e+00 : f32
    %12 = vector.broadcast %cst_7 : f32 to vector<1x1xf32>
    %13 = arith.divf %12, %11 : vector<1x1xf32>
    %cst_8 = arith.constant 1.200000e+00 : f32
    %14 = vector.broadcast %cst_8 : f32 to vector<1x1xf32>
    %15 = arith.mulf %14, %13 : vector<1x1xf32>
    %cst_9 = arith.constant 1.000000e-01 : f32
    %16 = vector.broadcast %cst_9 : f32 to vector<1x1xf32>
    %17 = arith.subf %15, %16 : vector<1x1xf32>
    %cst_10 = arith.constant 0.000000e+00 : f32
    %cst_11 = arith.constant 1.000000e+00 : f32
    %18 = vector.broadcast %cst_10 : f32 to vector<1x1xf32>
    %19 = arith.maximumf %18, %17 : vector<1x1xf32>
    %20 = vector.broadcast %cst_11 : f32 to vector<1x1xf32>
    %21 = arith.minimumf %20, %19 : vector<1x1xf32>
    %22 = vector.extract_strided_slice %5 {offsets = [0, 1], sizes = [1, 1], strides = [1, 1]} : vector<1x3xf32> to vector<1x1xf32>
    %cst_12 = arith.constant 0.000000e+00 : f32
    %23 = vector.broadcast %cst_12 : f32 to vector<1x1xf32>
    %24 = arith.subf %23, %22 : vector<1x1xf32>
    %25 = math.exp %24 : vector<1x1xf32>
    %cst_13 = arith.constant 1.000000e+00 : f32
    %26 = vector.broadcast %cst_13 : f32 to vector<1x1xf32>
    %27 = arith.addf %26, %25 : vector<1x1xf32>
    %cst_14 = arith.constant 1.000000e+00 : f32
    %28 = vector.broadcast %cst_14 : f32 to vector<1x1xf32>
    %29 = arith.divf %28, %27 : vector<1x1xf32>
    %cst_15 = arith.constant 1.200000e+00 : f32
    %30 = vector.broadcast %cst_15 : f32 to vector<1x1xf32>
    %31 = arith.mulf %30, %29 : vector<1x1xf32>
    %cst_16 = arith.constant 1.000000e-01 : f32
    %32 = vector.broadcast %cst_16 : f32 to vector<1x1xf32>
    %33 = arith.subf %31, %32 : vector<1x1xf32>
    %cst_17 = arith.constant 0.000000e+00 : f32
    %cst_18 = arith.constant 1.000000e+00 : f32
    %34 = vector.broadcast %cst_17 : f32 to vector<1x1xf32>
    %35 = arith.maximumf %34, %33 : vector<1x1xf32>
    %36 = vector.broadcast %cst_18 : f32 to vector<1x1xf32>
    %37 = arith.minimumf %36, %35 : vector<1x1xf32>
    %38 = vector.extract_strided_slice %5 {offsets = [0, 2], sizes = [1, 1], strides = [1, 1]} : vector<1x3xf32> to vector<1x1xf32>
    %39 = math.tanh %38 : vector<1x1xf32>
    %cst_19 = arith.constant 6.000000e-01 : f32
    %40 = vector.broadcast %cst_19 : f32 to vector<1x1xf32>
    %41 = arith.mulf %40, %39 : vector<1x1xf32>
    %cst_20 = arith.constant -5.000000e-01 : f32
    %cst_21 = arith.constant 5.000000e-01 : f32
    %42 = vector.broadcast %cst_20 : f32 to vector<1x1xf32>
    %43 = arith.maximumf %42, %41 : vector<1x1xf32>
    %44 = vector.broadcast %cst_21 : f32 to vector<1x1xf32>
    %45 = arith.minimumf %44, %43 : vector<1x1xf32>
    %46 = vector.extract_strided_slice %4 {offsets = [0, 0], sizes = [1, 512], strides = [1, 1]} : vector<1x1152xf32> to vector<1x512xf32>
    %47 = vector.extract_strided_slice %4 {offsets = [0, 512], sizes = [1, 512], strides = [1, 1]} : vector<1x1152xf32> to vector<1x512xf32>
    %48 = arith.maximumf %46, %47 : vector<1x512xf32>
    %cst_22 = arith.constant 0.000000e+00 : f32
    %49 = vector.broadcast %cst_22 : f32 to vector<1x512xf32>
    %50 = arith.maximumf %48, %49 : vector<1x512xf32>
    %c0_23 = arith.constant 0 : index
    %c0_24 = arith.constant 0 : index
    %51 = vector.load %arg6[%c0_23, %c0_24] : memref<512x1024xf32, #tpu.memory_space<vmem>>, vector<512x1024xf32>
    %cst_25 = arith.constant dense<0.000000e+00> : vector<1x1024xf32>
    %52 = tpu.matmul %50, %51, %cst_25 {dimension_numbers = #tpu.dot_dimension_numbers<[1], [0], [0], [1], [0, 0, 1, 1], [], []>} : vector<1x512xf32>, vector<512x1024xf32>, vector<1x1024xf32> -> vector<1x1024xf32>
    %c0_26 = arith.constant 0 : index
    %c0_27 = arith.constant 0 : index
    %53 = vector.load %arg7[%c0_26, %c0_27] : memref<1x1024xf32, #tpu.memory_space<vmem>>, vector<1x1024xf32>
    %54 = arith.addf %52, %53 : vector<1x1024xf32>
    %55 = vector.extract_strided_slice %54 {offsets = [0, 0], sizes = [1, 512], strides = [1, 1]} : vector<1x1024xf32> to vector<1x512xf32>
    %56 = vector.extract_strided_slice %54 {offsets = [0, 512], sizes = [1, 512], strides = [1, 1]} : vector<1x1024xf32> to vector<1x512xf32>
    %57 = arith.maximumf %55, %56 : vector<1x512xf32>
    %cst_28 = arith.constant 0.000000e+00 : f32
    %58 = vector.broadcast %cst_28 : f32 to vector<1x512xf32>
    %59 = arith.maximumf %57, %58 : vector<1x512xf32>
    %cst_29 = arith.constant 0.000000e+00 : f32
    %60 = vector.broadcast %cst_29 : f32 to vector<1x512xf32>
    %61 = arith.subf %60, %59 : vector<1x512xf32>
    %62 = math.exp %61 : vector<1x512xf32>
    %cst_30 = arith.constant 1.000000e+00 : f32
    %63 = vector.broadcast %cst_30 : f32 to vector<1x512xf32>
    %64 = arith.addf %63, %62 : vector<1x512xf32>
    %cst_31 = arith.constant 1.000000e+00 : f32
    %65 = vector.broadcast %cst_31 : f32 to vector<1x512xf32>
    %66 = arith.divf %65, %64 : vector<1x512xf32>
    %cst_32 = arith.constant 1.200000e+00 : f32
    %67 = vector.broadcast %cst_32 : f32 to vector<1x512xf32>
    %68 = arith.mulf %67, %66 : vector<1x512xf32>
    %cst_33 = arith.constant 1.000000e-01 : f32
    %69 = vector.broadcast %cst_33 : f32 to vector<1x512xf32>
    %70 = arith.subf %68, %69 : vector<1x512xf32>
    %cst_34 = arith.constant 0.000000e+00 : f32
    %cst_35 = arith.constant 1.000000e+00 : f32
    %71 = vector.broadcast %cst_34 : f32 to vector<1x512xf32>
    %72 = arith.maximumf %71, %70 : vector<1x512xf32>
    %73 = vector.broadcast %cst_35 : f32 to vector<1x512xf32>
    %74 = arith.minimumf %73, %72 : vector<1x512xf32>
    %c0_36 = arith.constant 0 : index
    %c0_37 = arith.constant 0 : index
    %75 = vector.load %arg8[%c0_36, %c0_37] : memref<512x128xf32, #tpu.memory_space<vmem>>, vector<512x128xf32>
    %cst_38 = arith.constant dense<0.000000e+00> : vector<1x128xf32>
    %76 = tpu.matmul %74, %75, %cst_38 {dimension_numbers = #tpu.dot_dimension_numbers<[1], [0], [0], [1], [0, 0, 1, 1], [], []>} : vector<1x512xf32>, vector<512x128xf32>, vector<1x128xf32> -> vector<1x128xf32>
    %c0_39 = arith.constant 0 : index
    %c0_40 = arith.constant 0 : index
    %77 = vector.load %arg9[%c0_39, %c0_40] : memref<1x128xf32, #tpu.memory_space<vmem>>, vector<1x128xf32>
    %78 = arith.addf %76, %77 : vector<1x128xf32>
    %79 = vector.extract_strided_slice %78 {offsets = [0, 0], sizes = [1, 32], strides = [1, 1]} : vector<1x128xf32> to vector<1x32xf32>
    %cst_41 = arith.constant 0.000000e+00 : f32
    %80 = vector.broadcast %cst_41 : f32 to vector<1x32xf32>
    %81 = arith.subf %80, %79 : vector<1x32xf32>
    %82 = math.exp %81 : vector<1x32xf32>
    %cst_42 = arith.constant 1.000000e+00 : f32
    %83 = vector.broadcast %cst_42 : f32 to vector<1x32xf32>
    %84 = arith.addf %83, %82 : vector<1x32xf32>
    %cst_43 = arith.constant 1.000000e+00 : f32
    %85 = vector.broadcast %cst_43 : f32 to vector<1x32xf32>
    %86 = arith.divf %85, %84 : vector<1x32xf32>
    %cst_44 = arith.constant 1.200000e+00 : f32
    %87 = vector.broadcast %cst_44 : f32 to vector<1x32xf32>
    %88 = arith.mulf %87, %86 : vector<1x32xf32>
    %cst_45 = arith.constant 1.000000e-01 : f32
    %89 = vector.broadcast %cst_45 : f32 to vector<1x32xf32>
    %90 = arith.subf %88, %89 : vector<1x32xf32>
    %cst_46 = arith.constant dense<0xFF800000> : vector<1xf32>
    %91 = vector.multi_reduction <maximumf>, %90, %cst_46 [1] : vector<1x32xf32> to vector<1xf32>
    %92 = vector.shape_cast %91 : vector<1xf32> to vector<1x1xf32>
    %93 = vector.broadcast %92 : vector<1x1xf32> to vector<1x32xf32>
    %94 = arith.subf %90, %93 : vector<1x32xf32>
    %95 = math.exp %94 : vector<1x32xf32>
    %cst_47 = arith.constant dense<0.000000e+00> : vector<1xf32>
    %96 = vector.multi_reduction <add>, %95, %cst_47 [1] : vector<1x32xf32> to vector<1xf32>
    %97 = vector.shape_cast %96 : vector<1xf32> to vector<1x1xf32>
    %98 = vector.broadcast %97 : vector<1x1xf32> to vector<1x32xf32>
    %99 = arith.divf %95, %98 : vector<1x32xf32>
    %100 = vector.extract_strided_slice %78 {offsets = [0, 32], sizes = [1, 8], strides = [1, 1]} : vector<1x128xf32> to vector<1x8xf32>
    %cst_48 = arith.constant dense<0xFF800000> : vector<1xf32>
    %101 = vector.multi_reduction <maximumf>, %100, %cst_48 [1] : vector<1x8xf32> to vector<1xf32>
    %102 = vector.shape_cast %101 : vector<1xf32> to vector<1x1xf32>
    %103 = vector.broadcast %102 : vector<1x1xf32> to vector<1x8xf32>
    %104 = arith.subf %100, %103 : vector<1x8xf32>
    %105 = math.exp %104 : vector<1x8xf32>
    %cst_49 = arith.constant dense<0.000000e+00> : vector<1xf32>
    %106 = vector.multi_reduction <add>, %105, %cst_49 [1] : vector<1x8xf32> to vector<1xf32>
    %107 = vector.shape_cast %106 : vector<1xf32> to vector<1x1xf32>
    %108 = vector.broadcast %107 : vector<1x1xf32> to vector<1x8xf32>
    %109 = arith.divf %105, %108 : vector<1x8xf32>
    %110 = vector.extract_strided_slice %78 {offsets = [0, 40], sizes = [1, 8], strides = [1, 1]} : vector<1x128xf32> to vector<1x8xf32>
    %cst_50 = arith.constant dense<0xFF800000> : vector<1xf32>
    %111 = vector.multi_reduction <maximumf>, %110, %cst_50 [1] : vector<1x8xf32> to vector<1xf32>
    %112 = vector.shape_cast %111 : vector<1xf32> to vector<1x1xf32>
    %113 = vector.broadcast %112 : vector<1x1xf32> to vector<1x8xf32>
    %114 = arith.subf %110, %113 : vector<1x8xf32>
    %115 = math.exp %114 : vector<1x8xf32>
    %cst_51 = arith.constant dense<0.000000e+00> : vector<1xf32>
    %116 = vector.multi_reduction <add>, %115, %cst_51 [1] : vector<1x8xf32> to vector<1xf32>
    %117 = vector.shape_cast %116 : vector<1xf32> to vector<1x1xf32>
    %118 = vector.broadcast %117 : vector<1x1xf32> to vector<1x8xf32>
    %119 = arith.divf %115, %118 : vector<1x8xf32>
    %120 = vector.extract_strided_slice %78 {offsets = [0, 48], sizes = [1, 8], strides = [1, 1]} : vector<1x128xf32> to vector<1x8xf32>
    %cst_52 = arith.constant 0.000000e+00 : f32
    %121 = vector.broadcast %cst_52 : f32 to vector<1x8xf32>
    %122 = arith.maximumf %120, %121 : vector<1x8xf32>
    %123 = vector.extract_strided_slice %78 {offsets = [0, 56], sizes = [1, 8], strides = [1, 1]} : vector<1x128xf32> to vector<1x8xf32>
    %cst_53 = arith.constant 0.000000e+00 : f32
    %124 = vector.broadcast %cst_53 : f32 to vector<1x8xf32>
    %125 = arith.maximumf %123, %124 : vector<1x8xf32>
    %c0_54 = arith.constant 0 : index
    %c0_55 = arith.constant 0 : index
    %126 = vector.load %arg10[%c0_54, %c0_55] : memref<8x64xf32, #tpu.memory_space<vmem>>, vector<8x64xf32>
    %cst_56 = arith.constant dense<0.000000e+00> : vector<1x64xf32>
    %127 = tpu.matmul %109, %126, %cst_56 {dimension_numbers = #tpu.dot_dimension_numbers<[1], [0], [0], [1], [0, 0, 1, 1], [], []>} : vector<1x8xf32>, vector<8x64xf32>, vector<1x64xf32> -> vector<1x64xf32>
    %c0_57 = arith.constant 0 : index
    %c0_58 = arith.constant 0 : index
    %128 = vector.load %arg11[%c0_57, %c0_58] : memref<8x64xf32, #tpu.memory_space<vmem>>, vector<8x64xf32>
    %cst_59 = arith.constant dense<0.000000e+00> : vector<1x64xf32>
    %129 = tpu.matmul %119, %128, %cst_59 {dimension_numbers = #tpu.dot_dimension_numbers<[1], [0], [0], [1], [0, 0, 1, 1], [], []>} : vector<1x8xf32>, vector<8x64xf32>, vector<1x64xf32> -> vector<1x64xf32>
    %130 = arith.subf %125, %122 : vector<1x8xf32>
    %c0_60 = arith.constant 0 : index
    %c0_61 = arith.constant 0 : index
    %131 = vector.load %arg10[%c0_60, %c0_61] : memref<8x64xf32, #tpu.memory_space<vmem>>, vector<8x64xf32>
    %cst_62 = arith.constant dense<0.000000e+00> : vector<1x64xf32>
    %132 = tpu.matmul %130, %131, %cst_62 {dimension_numbers = #tpu.dot_dimension_numbers<[1], [0], [0], [1], [0, 0, 1, 1], [], []>} : vector<1x8xf32>, vector<8x64xf32>, vector<1x64xf32> -> vector<1x64xf32>
    %c0_63 = arith.constant 0 : index
    %c0_64 = arith.constant 0 : index
    %133 = vector.load %arg14[%c0_63, %c0_64] : memref<32x32xf32, #tpu.memory_space<vmem>>, vector<32x32xf32>
    %cst_65 = arith.constant dense<0.000000e+00> : vector<32x1xf32>
    %134 = tpu.matmul %133, %99, %cst_65 {dimension_numbers = #tpu.dot_dimension_numbers<[1], [1], [0], [0], [0, 0, 1, 0], [], []>} : vector<32x32xf32>, vector<1x32xf32>, vector<32x1xf32> -> vector<32x1xf32>
    %c0_66 = arith.constant 0 : index
    %c0_67 = arith.constant 0 : index
    %135 = vector.load %arg17[%c0_66, %c0_67] : memref<1x256xf32, #tpu.memory_space<vmem>>, vector<1x64xf32>
    tpu.vector_store %arg17[%c0_66, %c0_67], %127 {strides = array<i32>} : memref<1x256xf32, #tpu.memory_space<vmem>>, vector<1x64xf32>,
    %c0_68 = arith.constant 0 : index
    %c64 = arith.constant 64 : index
    %136 = vector.load %arg17[%c0_68, %c64] : memref<1x256xf32, #tpu.memory_space<vmem>>, vector<1x64xf32>
    tpu.vector_store %arg17[%c0_68, %c64], %129 {strides = array<i32>} : memref<1x256xf32, #tpu.memory_space<vmem>>, vector<1x64xf32>,
    %c0_69 = arith.constant 0 : index
    %c128 = arith.constant 128 : index
    %137 = vector.load %arg17[%c0_69, %c128] : memref<1x256xf32, #tpu.memory_space<vmem>>, vector<1x64xf32>
    tpu.vector_store %arg17[%c0_69, %c128], %132 {strides = array<i32>} : memref<1x256xf32, #tpu.memory_space<vmem>>, vector<1x64xf32>,
    %c0_70 = arith.constant 0 : index
    %c192 = arith.constant 192 : index
    %138 = vector.load %arg17[%c0_70, %c192] : memref<1x256xf32, #tpu.memory_space<vmem>>, vector<1x8xf32>
    tpu.vector_store %arg17[%c0_70, %c192], %119 {strides = array<i32>} : memref<1x256xf32, #tpu.memory_space<vmem>>, vector<1x8xf32>,
    %c0_71 = arith.constant 0 : index
    %c200 = arith.constant 200 : index
    %139 = vector.load %arg17[%c0_71, %c200] : memref<1x256xf32, #tpu.memory_space<vmem>>, vector<1x1xf32>
    tpu.vector_store %arg17[%c0_71, %c200], %21 {strides = array<i32>} : memref<1x256xf32, #tpu.memory_space<vmem>>, vector<1x1xf32>,
    %c0_72 = arith.constant 0 : index
    %c201 = arith.constant 201 : index
    %140 = vector.load %arg17[%c0_72, %c201] : memref<1x256xf32, #tpu.memory_space<vmem>>, vector<1x1xf32>
    tpu.vector_store %arg17[%c0_72, %c201], %37 {strides = array<i32>} : memref<1x256xf32, #tpu.memory_space<vmem>>, vector<1x1xf32>,
    %c0_73 = arith.constant 0 : index
    %c202 = arith.constant 202 : index
    %141 = vector.load %arg17[%c0_73, %c202] : memref<1x256xf32, #tpu.memory_space<vmem>>, vector<1x1xf32>
    tpu.vector_store %arg17[%c0_73, %c202], %45 {strides = array<i32>} : memref<1x256xf32, #tpu.memory_space<vmem>>, vector<1x1xf32>,
    %c0_74 = arith.constant 0 : index
    %c0_75 = arith.constant 0 : index
    %142 = vector.load %arg3[%c0_74, %c0_75] : memref<32x64xf32, #tpu.memory_space<vmem>>, vector<32x64xf32>
    %c0_76 = arith.constant 0 : index
    %c0_77 = arith.constant 0 : index
    %143 = vector.load %arg16[%c0_76, %c0_77] : memref<32x64xf32, #tpu.memory_space<vmem>>, vector<32x64xf32>
    tpu.vector_store %arg16[%c0_76, %c0_77], %142 {strides = array<i32>} : memref<32x64xf32, #tpu.memory_space<vmem>>, vector<32x64xf32>,
    %c0_78 = arith.constant 0 : index
    %c0_79 = arith.constant 0 : index
    %144 = vector.load %arg1[%c0_78, %c0_79] : memref<1x8xf32, #tpu.memory_space<vmem>>, vector<1x8xf32>
    %c0_80 = arith.constant 0 : index
    %c0_81 = arith.constant 0 : index
    %145 = vector.load %arg10[%c0_80, %c0_81] : memref<8x64xf32, #tpu.memory_space<vmem>>, vector<8x64xf32>
    %cst_82 = arith.constant dense<0.000000e+00> : vector<1x64xf32>
    %146 = tpu.matmul %144, %145, %cst_82 {dimension_numbers = #tpu.dot_dimension_numbers<[1], [0], [0], [1], [0, 0, 1, 1], [], []>} : vector<1x8xf32>, vector<8x64xf32>, vector<1x64xf32> -> vector<1x64xf32>
    %c0_83 = arith.constant 0 : index
    %c0_84 = arith.constant 0 : index
    %147 = vector.load %arg2[%c0_83, %c0_84] : memref<1x8xf32, #tpu.memory_space<vmem>>, vector<1x8xf32>
    %c0_85 = arith.constant 0 : index
    %c0_86 = arith.constant 0 : index
    %148 = vector.load %arg11[%c0_85, %c0_86] : memref<8x64xf32, #tpu.memory_space<vmem>>, vector<8x64xf32>
    %cst_87 = arith.constant dense<0.000000e+00> : vector<1x64xf32>
    %149 = tpu.matmul %147, %148, %cst_87 {dimension_numbers = #tpu.dot_dimension_numbers<[1], [0], [0], [1], [0, 0, 1, 1], [], []>} : vector<1x8xf32>, vector<8x64xf32>, vector<1x64xf32> -> vector<1x64xf32>
    %c0_88 = arith.constant 0 : index
    %c0_89 = arith.constant 0 : index
    %150 = vector.load %arg2[%c0_88, %c0_89] : memref<1x8xf32, #tpu.memory_space<vmem>>, vector<1x8xf32>
    %151 = tpu.iota {dimensions = array<i32: 1>} : vector<1x1xi32>
    %c0_i32 = arith.constant 0 : i32
    %152 = arith.index_cast %c0_i32 : i32 to index
    %c0_90 = arith.constant 0 : index
    %153 = vector.load %arg17[%152, %c0_90] : memref<1x256xf32, #tpu.memory_space<vmem>>, vector<1x256xf32>
    %154 = vector.extract_strided_slice %153 {offsets = [0, 0], sizes = [1, 64], strides = [1, 1]} : vector<1x256xf32> to vector<1x64xf32>
    %155 = vector.extract_strided_slice %153 {offsets = [0, 64], sizes = [1, 64], strides = [1, 1]} : vector<1x256xf32> to vector<1x64xf32>
    %156 = vector.extract_strided_slice %153 {offsets = [0, 128], sizes = [1, 64], strides = [1, 1]} : vector<1x256xf32> to vector<1x64xf32>
    %157 = vector.extract_strided_slice %153 {offsets = [0, 192], sizes = [1, 8], strides = [1, 1]} : vector<1x256xf32> to vector<1x8xf32>
    %158 = vector.extract_strided_slice %153 {offsets = [0, 200], sizes = [1, 1], strides = [1, 1]} : vector<1x256xf32> to vector<1x1xf32>
    %159 = vector.extract_strided_slice %153 {offsets = [0, 201], sizes = [1, 1], strides = [1, 1]} : vector<1x256xf32> to vector<1x1xf32>
    %160 = vector.extract_strided_slice %153 {offsets = [0, 202], sizes = [1, 1], strides = [1, 1]} : vector<1x256xf32> to vector<1x1xf32>
    %161 = vector.broadcast %c0_i32 : i32 to vector<1x1xi32>
    %162 = arith.cmpi eq, %151, %161 : vector<1x1xi32>
    %163 = arith.extui %162 : vector<1x1xi1> to vector<1x1xi32>
    %164 = arith.sitofp %163 : vector<1x1xi32> to vector<1x1xf32>
    %165 = vector.broadcast %164 : vector<1x1xf32> to vector<32x1xf32>
    %166 = arith.mulf %134, %165 : vector<32x1xf32>
    %cst_91 = arith.constant dense<0.000000e+00> : vector<32xf32>
    %167 = vector.multi_reduction <add>, %166, %cst_91 [1] : vector<32x1xf32> to vector<32xf32>
    %168 = vector.shape_cast %167 : vector<32xf32> to vector<32x1xf32>
    %c0_92 = arith.constant 0 : index
    %c0_93 = arith.constant 0 : index
    %169 = vector.load %arg16[%c0_92, %c0_93] : memref<32x64xf32, #tpu.memory_space<vmem>>, vector<32x64xf32>
    %170 = vector.broadcast %168 : vector<32x1xf32> to vector<32x64xf32>
    %171 = arith.mulf %170, %169 : vector<32x64xf32>
    %cst_94 = arith.constant dense<0.000000e+00> : vector<64xf32>
    %172 = vector.multi_reduction <add>, %171, %cst_94 [0] : vector<32x64xf32> to vector<64xf32>
    %173 = vector.shape_cast %172 : vector<64xf32> to vector<1x64xf32>
    %174 = vector.broadcast %158 : vector<1x1xf32> to vector<1x64xf32>
    %175 = arith.mulf %174, %154 : vector<1x64xf32>
    %cst_95 = arith.constant 1.000000e+00 : f32
    %176 = vector.broadcast %cst_95 : f32 to vector<1x1xf32>
    %177 = arith.subf %176, %158 : vector<1x1xf32>
    %178 = vector.broadcast %177 : vector<1x1xf32> to vector<1x64xf32>
    %179 = arith.mulf %178, %146 : vector<1x64xf32>
    %180 = arith.addf %175, %179 : vector<1x64xf32>
    %181 = vector.broadcast %159 : vector<1x1xf32> to vector<1x64xf32>
    %182 = arith.mulf %181, %155 : vector<1x64xf32>
    %cst_96 = arith.constant 1.000000e+00 : f32
    %183 = vector.broadcast %cst_96 : f32 to vector<1x1xf32>
    %184 = arith.subf %183, %159 : vector<1x1xf32>
    %185 = vector.broadcast %184 : vector<1x1xf32> to vector<1x64xf32>
    %186 = arith.mulf %185, %149 : vector<1x64xf32>
    %187 = arith.addf %182, %186 : vector<1x64xf32>
    %188 = vector.broadcast %159 : vector<1x1xf32> to vector<1x8xf32>
    %189 = arith.mulf %188, %157 : vector<1x8xf32>
    %cst_97 = arith.constant 1.000000e+00 : f32
    %190 = vector.broadcast %cst_97 : f32 to vector<1x1xf32>
    %191 = arith.subf %190, %159 : vector<1x1xf32>
    %192 = vector.broadcast %191 : vector<1x1xf32> to vector<1x8xf32>
    %193 = arith.mulf %192, %150 : vector<1x8xf32>
    %194 = arith.addf %189, %193 : vector<1x8xf32>
    %195 = arith.mulf %173, %180 : vector<1x64xf32>
    %196 = arith.index_cast %c0_i32 : i32 to index
    %c0_98 = arith.constant 0 : index
    %197 = vector.load %arg18[%196, %c0_98] : memref<1x128xf32, #tpu.memory_space<vmem>>, vector<1x64xf32>
    tpu.vector_store %arg18[%196, %c0_98], %195 {strides = array<i32>} : memref<1x128xf32, #tpu.memory_space<vmem>>, vector<1x64xf32>,
    %198 = vector.extract_strided_slice %180 {offsets = [0, 0], sizes = [1, 8], strides = [1, 1]} : vector<1x64xf32> to vector<1x8xf32>
    %199 = arith.index_cast %c0_i32 : i32 to index
    %c64_99 = arith.constant 64 : index
    %200 = vector.load %arg18[%199, %c64_99] : memref<1x128xf32, #tpu.memory_space<vmem>>, vector<1x8xf32>
    tpu.vector_store %arg18[%199, %c64_99], %198 {strides = array<i32>} : memref<1x128xf32, #tpu.memory_space<vmem>>, vector<1x8xf32>,
    %201 = arith.index_cast %c0_i32 : i32 to index
    %c72 = arith.constant 72 : index
    %202 = vector.load %arg18[%201, %c72] : memref<1x128xf32, #tpu.memory_space<vmem>>, vector<1x8xf32>
    tpu.vector_store %arg18[%201, %c72], %194 {strides = array<i32>} : memref<1x128xf32, #tpu.memory_space<vmem>>, vector<1x8xf32>,
    %203 = arith.mulf %187, %156 : vector<1x64xf32>
    %cst_100 = arith.constant 1.000000e+00 : f32
    %204 = vector.broadcast %cst_100 : f32 to vector<1x64xf32>
    %205 = arith.addf %204, %203 : vector<1x64xf32>
    %cst_101 = arith.constant 5.000000e-01 : f32
    %206 = vector.broadcast %cst_101 : f32 to vector<1x1xf32>
    %207 = arith.addf %206, %160 : vector<1x1xf32>
    %208 = vector.broadcast %168 : vector<32x1xf32> to vector<32x64xf32>
    %209 = vector.broadcast %205 : vector<1x64xf32> to vector<32x64xf32>
    %210 = arith.mulf %208, %209 : vector<32x64xf32>
    %211 = vector.broadcast %207 : vector<1x1xf32> to vector<32x64xf32>
    %212 = arith.mulf %211, %210 : vector<32x64xf32>
    %cst_102 = arith.constant 5.000000e-01 : f32
    %213 = vector.broadcast %cst_102 : f32 to vector<1x1xf32>
    %214 = arith.subf %213, %160 : vector<1x1xf32>
    %215 = vector.broadcast %214 : vector<1x1xf32> to vector<32x64xf32>
    %216 = arith.mulf %215, %169 : vector<32x64xf32>
    %217 = arith.addf %212, %216 : vector<32x64xf32>
    %c0_103 = arith.constant 0 : index
    %c0_104 = arith.constant 0 : index
    %218 = vector.load %arg16[%c0_103, %c0_104] : memref<32x64xf32, #tpu.memory_space<vmem>>, vector<32x64xf32>
    tpu.vector_store %arg16[%c0_103, %c0_104], %217 {strides = array<i32>} : memref<32x64xf32, #tpu.memory_space<vmem>>, vector<32x64xf32>,
    %c1_i32 = arith.constant 1 : i32
    %c0_105 = arith.constant 0 : index
    %c0_106 = arith.constant 0 : index
    %219 = vector.load %arg18[%c0_105, %c0_106] : memref<1x128xf32, #tpu.memory_space<vmem>>, vector<1x128xf32>
    %220 = vector.extract_strided_slice %219 {offsets = [0, 0], sizes = [1, 64], strides = [1, 1]} : vector<1x128xf32> to vector<1x64xf32>
    %c0_107 = arith.constant 0 : index
    %c0_108 = arith.constant 0 : index
    %221 = vector.load %arg12[%c0_107, %c0_108] : memref<64x16xf32, #tpu.memory_space<vmem>>, vector<64x16xf32>
    %cst_109 = arith.constant dense<0.000000e+00> : vector<1x16xf32>
    %222 = tpu.matmul %220, %221, %cst_109 {dimension_numbers = #tpu.dot_dimension_numbers<[1], [0], [0], [1], [0, 0, 1, 1], [], []>} : vector<1x64xf32>, vector<64x16xf32>, vector<1x16xf32> -> vector<1x16xf32>
    %c0_110 = arith.constant 0 : index
    %c0_111 = arith.constant 0 : index
    %223 = vector.load %arg13[%c0_110, %c0_111] : memref<1x16xf32, #tpu.memory_space<vmem>>, vector<1x16xf32>
    %224 = arith.addf %222, %223 : vector<1x16xf32>
    %cst_112 = arith.constant 0.000000e+00 : f32
    %225 = vector.broadcast %cst_112 : f32 to vector<1x16xf32>
    %226 = arith.maximumf %224, %225 : vector<1x16xf32>
    %c0_113 = arith.constant 0 : index
    %c0_114 = arith.constant 0 : index
    %227 = vector.load %arg15[%c0_113, %c0_114] : memref<1x128xf32, #tpu.memory_space<vmem>>, vector<1x16xf32>
    tpu.vector_store %arg15[%c0_113, %c0_114], %226 {strides = array<i32>} : memref<1x128xf32, #tpu.memory_space<vmem>>, vector<1x16xf32>,
    %228 = vector.extract_strided_slice %219 {offsets = [0, 64], sizes = [1, 16], strides = [1, 1]} : vector<1x128xf32> to vector<1x16xf32>
    %c0_115 = arith.constant 0 : index
    %c16 = arith.constant 16 : index
    %229 = vector.load %arg15[%c0_115, %c16] : memref<1x128xf32, #tpu.memory_space<vmem>>, vector<1x16xf32>
    tpu.vector_store %arg15[%c0_115, %c16], %228 {strides = array<i32>} : memref<1x128xf32, #tpu.memory_space<vmem>>, vector<1x16xf32>,
    %cst_116 = arith.constant 0.000000e+00 : f32
    %230 = vector.broadcast %cst_116 : f32 to vector<1x96xf32>
    %c0_117 = arith.constant 0 : index
    %c32 = arith.constant 32 : index
    %231 = vector.load %arg15[%c0_117, %c32] : memref<1x128xf32, #tpu.memory_space<vmem>>, vector<1x96xf32>
    tpu.vector_store %arg15[%c0_117, %c32], %230 {strides = array<i32>} : memref<1x128xf32, #tpu.memory_space<vmem>>, vector<1x96xf32>,
    return
  }
}

</mosaic_0001>

<bundles_post_ra>
// kernel: emm_forward.1
= control target key start
LH: loop header
LB: loop body
LE: loop exit
PB: predicated region body
PF: predicated region fallthrough
CT: control target
= control target key end

     0   :  { %s4824_s0 = inlined_call_operand.hbm [shape: f32[1,32], index: 0, kind: input, shape index: {}]   ;;  %s4825_s1 = inlined_call_operand.hbm [shape: f32[1,8], index: 1, kind: input, shape index: {}]   ;;  %s4826_s2 = inlined_call_operand.hbm [shape: f32[1,8], index: 2, kind: input, shape index: {}]   ;;  %s4827_s3 = inlined_call_operand.vmem [shape: f32[32,64], index: 3, kind: input, shape index: {}]   ;;  %s4828_s4 = inlined_call_operand.hbm [shape: f32[32,1152], index: 4, kind: input, shape index: {}]   ;;  %s4829_s5 = inlined_call_operand.hbm [shape: f32[1,1152], index: 5, kind: input, shape index: {}]   ;;  %s4830_s6 = inlined_call_operand.hbm [shape: f32[512,1024], index: 6, kind: input, shape index: {}]   ;;  %s4831_s7 = inlined_call_operand.hbm [shape: f32[1,1024], index: 7, kind: input, shape index: {}]   ;;  %s4832_s8 = inlined_call_operand.hbm [shape: f32[512,128], index: 8, kind: input, shape index: {}]   ;;  %s4833_s9 = inlined_call_operand.hbm [shape: f32[1,128], index: 9, kind: input, shape index: {}]   ;;  %s4834_s10 = inlined_call_operand.hbm [shape: f32[8,64], index: 10, kind: input, shape index: {}]   ;;  %s4835_s11 = inlined_call_operand.hbm [shape: f32[8,64], index: 11, kind: input, shape index: {}]   ;;  %s4836_s12 = inlined_call_operand.vmem [shape: f32[64,16], index: 12, kind: input, shape index: {}]   ;;  %s4837_s13 = inlined_call_operand.hbm [shape: f32[1,16], index: 13, kind: input, shape index: {}]   ;;  %s4838_s14 = inlined_call_operand.hbm [shape: f32[32,32], index: 14, kind: input, shape index: {}]   ;;  %s4839_s15 = inlined_call_operand.vmem [shape: f32[1,128], index: 15, kind: output, shape index: {0}]   ;;  %s4840_s16 = inlined_call_operand.vmem [shape: f32[32,64], index: 16, kind: output, shape index: {1}]  }
   0x1   :  { %4842 = sst [smem:[#allocation31_spill]] %s4824_s0 }
   0x2   :  { %22 = vsyncpa [#allocation5], 0 }
   0x3   :  { %23 = vsyncpa [#allocation7], 0 }
   0x4   :  { %24 = vsyncpa [#allocation10], 0 }
   0x5   :  { %25 = vsyncpa [#allocation13], 0 }
   0x6   :  { %26 = vsyncpa [#allocation16], 0 }
   0x7   :  { %27 = vsyncpa [#allocation19], 0 }
   0x8   :  { %28 = vsyncpa [#allocation22], 0  ;;  %s4155_s21 = smov [#allocation6]   ;;  %s4156_s23 = smov [#allocation9]  }
   0x9   :  { %s45_s22 = sshll.u32 %s4155_s21, 4  ;;  %s66_s24 = sshll.u32 %s4156_s23, 4  ;;  %s46_s22 = int_to_ptr.vmem [resolvable:$true] %s45_s22  ;;  %s4273_s24 = int_to_ptr.vmem [resolvable:$true] %s66_s24 }
   0xa   :  { %s3855_s27 = scalar_lea.hbm %s4825_s1, 16 }
   0xb   :  { %p3856_p0 = scmp.ne.s32.totalorder %s4825_s1, %s3855_s27  ;;  %p3859_p1 = scmp.lt.u32.totalorder %s3855_s27, %s4825_s1 }
   0xd   :  { %p3861_p2 = pnand %p3859_p1, %p3856_p0 }
   0xf   :  { %3864 = shalt.err (!%p3861_p2)
}
  0x10   :  { %s3865_s17 = scalar_lea.vmem %s46_s22, 16  ;;  %s3869_s18 = scalar_lea.vmem %s46_s22, 32 }
  0x11   :  { %p3866_p3 = scmp.ne.s32.totalorder %s46_s22, %s3865_s17  ;;  %p3870_p4 = scmp.lt.s32.totalorder %s46_s22, %s46_s22 }
  0x12   :  { %p3871_p5 = scmp.lt.s32.totalorder %s3869_s18, %s3865_s17 }
  0x14   :  { %p3872_p6 = por %p3871_p5, %p3870_p4 }
  0x16   :  { %p3873_p7 = pnand %p3872_p6, %p3866_p3 }
  0x18   :  { %3876 = shalt.err (!%p3873_p7)
}
  0x19   :  { %48 = dma.hbm_to_vmem [thread:$0]  %s4825_s1, 16, %s46_s22, [#allocation7]  }
  0x1a   :  { %s3877_s25 = scalar_lea.hbm %s4828_s4, 4608 }
  0x1b   :  { %p3878_p8 = scmp.ne.s32.totalorder %s4828_s4, %s3877_s25  ;;  %p3881_p9 = scmp.lt.u32.totalorder %s3877_s25, %s4828_s4 }
  0x1d   :  { %p3883_p10 = pnand %p3881_p9, %p3878_p8 }
  0x1f   :  { %3886 = shalt.err (!%p3883_p10)
}
  0x20   :  { %s3887_s30 = scalar_lea.vmem %s4273_s24, 4608  ;;  %p3892_p12 = scmp.lt.s32.totalorder %s4273_s24, %s4273_s24 }
  0x21   :  { %p3888_p11 = scmp.ne.s32.totalorder %s4273_s24, %s3887_s30  ;;  %p3893_p13 = scmp.lt.s32.totalorder %s3887_s30, %s3887_s30 }
  0x23   :  { %p3894_p0 = por %p3893_p13, %p3892_p12 }
  0x25   :  { %p3895_p1 = pnand %p3894_p0, %p3888_p11 }
  0x27   :  { %3898 = shalt.err (!%p3895_p1)
}
  0x28   :  { %s4157_s1 = smov 1152   ;;  %s4158_s22 = smov 72  }
  0x29   :  { %72 = dma.hbm_to_vmem [thread:$0]  %s4828_s4, 4608, %s4273_s24, [#allocation10], %s4157_s1, %s4157_s1, %s4158_s22  }
  0x2a   :  { %s4159_s18 = smov [#allocation12]   ;;  %s3899_s23 = scalar_lea.hbm %s4830_s6, 65536 }
  0x2b   :  { %s88_s19 = sshll.u32 %s4159_s18, 4  ;;  %p3900_p2 = scmp.ne.s32.totalorder %s4830_s6, %s3899_s23  ;;  %s89_s19 = int_to_ptr.vmem [resolvable:$true] %s88_s19 }
  0x2c   :  { %p3903_p3 = scmp.lt.u32.totalorder %s3899_s23, %s4830_s6 }
  0x2e   :  { %p3905_p4 = pnand %p3903_p3, %p3900_p2 }
  0x30   :  { %3908 = shalt.err (!%p3905_p4)
}
  0x31   :  { %s3909_s29 = scalar_lea.vmem %s89_s19, 65536  ;;  %p3914_p6 = scmp.lt.s32.totalorder %s89_s19, %s89_s19 }
  0x32   :  { %p3910_p5 = scmp.ne.s32.totalorder %s89_s19, %s3909_s29  ;;  %p3915_p7 = scmp.lt.s32.totalorder %s3909_s29, %s3909_s29 }
  0x34   :  { %p3916_p8 = por %p3915_p7, %p3914_p6 }
  0x36   :  { %p3917_p9 = pnand %p3916_p8, %p3910_p5 }
  0x38   :  { %3920 = shalt.err (!%p3917_p9)
}
  0x39   :  { %s4160_s4 = smov 1024   ;;  %s4161_s24 = smov 64  }
  0x3a   :  { %94 = dma.hbm_to_vmem [thread:$0]  %s4830_s6, 65536, %s89_s19, [#allocation13], %s4160_s4, %s4160_s4, %s4161_s24  }
  0x3b   :  { %s4162_s0 = smov [#allocation15]   ;;  %s3921_s21 = scalar_lea.hbm %s4832_s8, 8192 }
  0x3c   :  { %s110_s17 = sshll.u32 %s4162_s0, 4  ;;  %p3922_p10 = scmp.ne.s32.totalorder %s4832_s8, %s3921_s21  ;;  %s111_s17 = int_to_ptr.vmem [resolvable:$true] %s110_s17 }
  0x3d   :  { %p3925_p11 = scmp.lt.u32.totalorder %s3921_s21, %s4832_s8 }
  0x3f   :  { %p3927_p12 = pnand %p3925_p11, %p3922_p10 }
  0x41   :  { %3930 = shalt.err (!%p3927_p12)
}
  0x42   :  { %s3931_s28 = scalar_lea.vmem %s111_s17, 8192  ;;  %p3936_p0 = scmp.lt.s32.totalorder %s111_s17, %s111_s17 }
  0x43   :  { %p3932_p13 = scmp.ne.s32.totalorder %s111_s17, %s3931_s28  ;;  %p3937_p1 = scmp.lt.s32.totalorder %s3931_s28, %s3931_s28 }
  0x45   :  { %p3938_p2 = por %p3937_p1, %p3936_p0 }
  0x47   :  { %p3939_p3 = pnand %p3938_p2, %p3932_p13 }
  0x49   :  { %3942 = shalt.err (!%p3939_p3)
}
  0x4a   :  { %s4163_s6 = smov 128   ;;  %s4164_s19 = smov 8  }
  0x4b   :  { %116 = dma.hbm_to_vmem [thread:$0]  %s4832_s8, 8192, %s111_s17, [#allocation16], %s4163_s6, %s4163_s6, %s4164_s19  }
  0x4c   :  { %s4165_s30 = smov [#allocation18]   ;;  %s4166_s0 = smov [#allocation21]  }
  0x4d   :  { %s133_s1 = sshll.u32 %s4165_s30, 4  ;;  %s155_s18 = sshll.u32 %s4166_s0, 4  ;;  %s134_s1 = int_to_ptr.vmem [resolvable:$true] %s133_s1  ;;  %s156_s18 = int_to_ptr.vmem [resolvable:$true] %s155_s18 }
  0x4e   :  { %s3943_s23 = scalar_lea.hbm %s4834_s10, 128 }
  0x4f   :  { %p3944_p4 = scmp.ne.s32.totalorder %s4834_s10, %s3943_s23  ;;  %p3947_p5 = scmp.lt.u32.totalorder %s3943_s23, %s4834_s10 }
  0x51   :  { %p3949_p6 = pnand %p3947_p5, %p3944_p4 }
  0x53   :  { %3952 = shalt.err (!%p3949_p6)
}
  0x54   :  { %s3953_s8 = scalar_lea.vmem %s134_s1, 128  ;;  %p3958_p8 = scmp.lt.s32.totalorder %s134_s1, %s134_s1 }
  0x55   :  { %p3954_p7 = scmp.ne.s32.totalorder %s134_s1, %s3953_s8  ;;  %p3959_p9 = scmp.lt.s32.totalorder %s3953_s8, %s3953_s8 }
  0x57   :  { %p3960_p10 = por %p3959_p9, %p3958_p8 }
  0x59   :  { %p3961_p11 = pnand %p3960_p10, %p3954_p7 }
  0x5b   :  { %3964 = shalt.err (!%p3961_p11)
}
  0x5c   :  { %136 = dma.hbm_to_vmem [thread:$0]  %s4834_s10, 128, %s134_s1, [#allocation19]  }
  0x5d   :  { %s3965_s0 = scalar_lea.hbm %s4837_s13, 16 }
  0x5e   :  { %p3966_p12 = scmp.ne.s32.totalorder %s4837_s13, %s3965_s0  ;;  %p3969_p13 = scmp.lt.u32.totalorder %s3965_s0, %s4837_s13 }
  0x60   :  { %p3971_p0 = pnand %p3969_p13, %p3966_p12 }
  0x62   :  { %3974 = shalt.err (!%p3971_p0)
}
  0x63   :  { %s3975_s26 = scalar_lea.vmem %s156_s18, 16  ;;  %s3979_s27 = scalar_lea.vmem %s156_s18, 32 }
  0x64   :  { %p3976_p1 = scmp.ne.s32.totalorder %s156_s18, %s3975_s26  ;;  %p3980_p2 = scmp.lt.s32.totalorder %s156_s18, %s156_s18 }
  0x65   :  { %p3981_p3 = scmp.lt.s32.totalorder %s3979_s27, %s3975_s26 }
  0x67   :  { %p3982_p4 = por %p3981_p3, %p3980_p2 }
  0x69   :  { %p3983_p5 = pnand %p3982_p4, %p3976_p1 }
  0x6b   :  { %3986 = shalt.err (!%p3983_p5)
}
  0x6c   :  { %158 = dma.hbm_to_vmem [thread:$0]  %s4837_s13, 16, %s156_s18, [#allocation22]  }
  0x6d   :  { %s4167_s28 = smov [#allocation4]   ;;  %s4168_s17 = smov [#allocation8]  }
  0x6e   :  { %s35_s8 = sshll.u32 %s4167_s28, 4  ;;  %s55_s29 = sshll.u32 %s4168_s17, 4  ;;  %s36_s8 = int_to_ptr.vmem [resolvable:$true] %s35_s8  ;;  %s56_s29 = int_to_ptr.vmem [resolvable:$true] %s55_s29 }
  0x6f   :  { %s4843_s0 = sld [smem:[#allocation31_spill]] }
  0x75   :  { %s3987_s20 = scalar_lea.hbm %s4843_s0, 16 }
  0x76   :  { %p3988_p6 = scmp.ne.s32.totalorder %s4843_s0, %s3987_s20  ;;  %p3991_p7 = scmp.lt.u32.totalorder %s3987_s20, %s4843_s0 }
  0x78   :  { %p3993_p8 = pnand %p3991_p7, %p3988_p6 }
  0x7a   :  { %3996 = shalt.err (!%p3993_p8)
}
  0x7b   :  { %s3997_s13 = scalar_lea.vmem %s36_s8, 16  ;;  %s4001_s18 = scalar_lea.vmem %s36_s8, 32 }
  0x7c   :  { %p3998_p9 = scmp.ne.s32.totalorder %s36_s8, %s3997_s13  ;;  %p4002_p10 = scmp.lt.s32.totalorder %s36_s8, %s36_s8 }
  0x7d   :  { %p4003_p11 = scmp.lt.s32.totalorder %s4001_s18, %s3997_s13 }
  0x7f   :  { %p4004_p12 = por %p4003_p11, %p4002_p10 }
  0x81   :  { %p4005_p13 = pnand %p4004_p12, %p3998_p9 }
  0x83   :  { %4008 = shalt.err (!%p4005_p13)
}
  0x84   :  { %38 = dma.hbm_to_vmem [thread:$0]  %s4843_s0, 16, %s36_s8, [#allocation5]  }
  0x85   :  { %s4009_s17 = scalar_lea.hbm %s4826_s2, 16 }
  0x86   :  { %p4010_p0 = scmp.ne.s32.totalorder %s4826_s2, %s4009_s17  ;;  %p4013_p1 = scmp.lt.u32.totalorder %s4009_s17, %s4826_s2 }
  0x88   :  { %p4015_p2 = pnand %p4013_p1, %p4010_p0 }
  0x8a   :  { %4018 = shalt.err (!%p4015_p2)
}
  0x8b   :  { %s4019_s23 = scalar_lea.vmem %s56_s29, 16  ;;  %s4023_s25 = scalar_lea.vmem %s56_s29, 32 }
  0x8c   :  { %p4020_p3 = scmp.ne.s32.totalorder %s56_s29, %s4019_s23  ;;  %p4024_p4 = scmp.lt.s32.totalorder %s56_s29, %s56_s29 }
  0x8d   :  { %p4025_p5 = scmp.lt.s32.totalorder %s4023_s25, %s4019_s23 }
  0x8f   :  { %p4026_p6 = por %p4025_p5, %p4024_p4 }
  0x91   :  { %p4027_p7 = pnand %p4026_p6, %p4020_p3 }
  0x93   :  { %4030 = shalt.err (!%p4027_p7)
}
  0x94   :  { %58 = dma.hbm_to_vmem [thread:$0]  %s4826_s2, 16, %s56_s29, [#allocation7]  }
  0x95   :  { %s4169_s26 = smov [#allocation11]   ;;  %s4170_s18 = smov [#allocation14]  }
  0x96   :  { %s79_s13 = sshll.u32 %s4169_s26, 4  ;;  %s101_s27 = sshll.u32 %s4170_s18, 4  ;;  %s80_s13 = int_to_ptr.vmem [resolvable:$true] %s79_s13  ;;  %s102_s27 = int_to_ptr.vmem [resolvable:$true] %s101_s27 }
  0x97   :  { %s4031_s28 = scalar_lea.hbm %s4829_s5, 144 }
  0x98   :  { %p4032_p8 = scmp.ne.s32.totalorder %s4829_s5, %s4031_s28  ;;  %p4035_p9 = scmp.lt.u32.totalorder %s4031_s28, %s4829_s5 }
  0x9a   :  { %p4037_p10 = pnand %p4035_p9, %p4032_p8 }
  0x9c   :  { %4040 = shalt.err (!%p4037_p10)
}
  0x9d   :  { %s4041_s2 = scalar_lea.vmem %s80_s13, 144  ;;  %s4045_s29 = scalar_lea.vmem %s80_s13, 160 }
  0x9e   :  { %p4042_p11 = scmp.ne.s32.totalorder %s80_s13, %s4041_s2  ;;  %p4046_p12 = scmp.lt.s32.totalorder %s80_s13, %s80_s13 }
  0x9f   :  { %p4047_p13 = scmp.lt.s32.totalorder %s4045_s29, %s4041_s2 }
  0xa1   :  { %p4048_p0 = por %p4047_p13, %p4046_p12 }
  0xa3   :  { %p4049_p1 = pnand %p4048_p0, %p4042_p11 }
  0xa5   :  { %4052 = shalt.err (!%p4049_p1)
}
  0xa6   :  { %82 = dma.hbm_to_vmem [thread:$0]  %s4829_s5, 144, %s80_s13, [#allocation10]  }
  0xa7   :  { %s4053_s0 = scalar_lea.hbm %s4831_s7, 128 }
  0xa8   :  { %p4054_p2 = scmp.ne.s32.totalorder %s4831_s7, %s4053_s0  ;;  %p4057_p3 = scmp.lt.u32.totalorder %s4053_s0, %s4831_s7 }
  0xaa   :  { %p4059_p4 = pnand %p4057_p3, %p4054_p2 }
  0xac   :  { %4062 = shalt.err (!%p4059_p4)
}
  0xad   :  { %s4063_s28 = scalar_lea.vmem %s102_s27, 128  ;;  %p4068_p6 = scmp.lt.s32.totalorder %s102_s27, %s102_s27 }
  0xae   :  { %p4064_p5 = scmp.ne.s32.totalorder %s102_s27, %s4063_s28  ;;  %p4069_p7 = scmp.lt.s32.totalorder %s4063_s28, %s4063_s28 }
  0xb0   :  { %p4070_p8 = por %p4069_p7, %p4068_p6 }
  0xb2   :  { %p4071_p9 = pnand %p4070_p8, %p4064_p5 }
  0xb4   :  { %4074 = shalt.err (!%p4071_p9)
}
  0xb5   :  { %104 = dma.hbm_to_vmem [thread:$0]  %s4831_s7, 128, %s102_s27, [#allocation13]  }
  0xb6   :  { %s4171_s17 = smov [#allocation17]   ;;  %s4172_s30 = smov [#allocation20]  }
  0xb7   :  { %s123_s4 = sshll.u32 %s4171_s17, 4  ;;  %s143_s20 = sshll.u32 %s4172_s30, 4  ;;  %s124_s4 = int_to_ptr.vmem [resolvable:$true] %s123_s4  ;;  %s144_s20 = int_to_ptr.vmem [resolvable:$true] %s143_s20 }
  0xb8   :  { %s4075_s21 = scalar_lea.hbm %s4833_s9, 16 }
  0xb9   :  { %p4076_p10 = scmp.ne.s32.totalorder %s4833_s9, %s4075_s21  ;;  %p4079_p11 = scmp.lt.u32.totalorder %s4075_s21, %s4833_s9 }
  0xbb   :  { %p4081_p12 = pnand %p4079_p11, %p4076_p10 }
  0xbd   :  { %4084 = shalt.err (!%p4081_p12)
}
  0xbe   :  { %s4085_s7 = scalar_lea.vmem %s124_s4, 16  ;;  %s4089_s27 = scalar_lea.vmem %s124_s4, 32 }
  0xbf   :  { %p4086_p13 = scmp.ne.s32.totalorder %s124_s4, %s4085_s7  ;;  %p4090_p0 = scmp.lt.s32.totalorder %s124_s4, %s124_s4 }
  0xc0   :  { %p4091_p1 = scmp.lt.s32.totalorder %s4089_s27, %s4085_s7 }
  0xc2   :  { %p4092_p2 = por %p4091_p1, %p4090_p0 }
  0xc4   :  { %p4093_p3 = pnand %p4092_p2, %p4086_p13 }
  0xc6   :  { %4096 = shalt.err (!%p4093_p3)
}
  0xc7   :  { %126 = dma.hbm_to_vmem [thread:$0]  %s4833_s9, 16, %s124_s4, [#allocation16]  }
  0xc8   :  { %s4097_s28 = scalar_lea.hbm %s4835_s11, 128 }
  0xc9   :  { %p4098_p4 = scmp.ne.s32.totalorder %s4835_s11, %s4097_s28  ;;  %p4101_p5 = scmp.lt.u32.totalorder %s4097_s28, %s4835_s11 }
  0xcb   :  { %p4103_p6 = pnand %p4101_p5, %p4098_p4 }
  0xcd   :  { %4106 = shalt.err (!%p4103_p6)
}
  0xce   :  { %s4107_s2 = scalar_lea.vmem %s144_s20, 128  ;;  %p4112_p8 = scmp.lt.s32.totalorder %s144_s20, %s144_s20 }
  0xcf   :  { %p4108_p7 = scmp.ne.s32.totalorder %s144_s20, %s4107_s2  ;;  %p4113_p9 = scmp.lt.s32.totalorder %s4107_s2, %s4107_s2 }
  0xd1   :  { %p4114_p10 = por %p4113_p9, %p4112_p8 }
  0xd3   :  { %p4115_p11 = pnand %p4114_p10, %p4108_p7 }
  0xd5   :  { %4118 = shalt.err (!%p4115_p11)
}
  0xd6   :  { %146 = dma.hbm_to_vmem [thread:$0]  %s4835_s11, 128, %s144_s20, [#allocation19]  }
  0xd7   :  { %s4173_s29 = smov [#allocation23]   ;;  %s4119_s8 = scalar_lea.hbm %s4838_s14, 512 }
  0xd8   :  { %s164_s21 = sshll.u32 %s4173_s29, 4  ;;  %p4120_p12 = scmp.ne.s32.totalorder %s4838_s14, %s4119_s8  ;;  %s165_s21 = int_to_ptr.vmem [resolvable:$true] %s164_s21 }
  0xd9   :  { %p4123_p13 = scmp.lt.u32.totalorder %s4119_s8, %s4838_s14 }
  0xdb   :  { %p4125_p0 = pnand %p4123_p13, %p4120_p12 }
  0xdd   :  { %4128 = shalt.err (!%p4125_p0)
}
  0xde   :  { %s4129_s18 = scalar_lea.vmem %s165_s21, 512  ;;  %p4134_p2 = scmp.lt.s32.totalorder %s165_s21, %s165_s21 }
  0xdf   :  { %p4130_p1 = scmp.ne.s32.totalorder %s165_s21, %s4129_s18  ;;  %p4135_p3 = scmp.lt.s32.totalorder %s4129_s18, %s4129_s18 }
  0xe1   :  { %p4136_p4 = por %p4135_p3, %p4134_p2 }
  0xe3   :  { %p4137_p5 = pnand %p4136_p4, %p4130_p1 }
  0xe5   :  { %4140 = shalt.err (!%p4137_p5)
}
  0xe6   :  { %170 = dma.hbm_to_vmem [thread:$0]  %s4838_s14, 512, %s165_s21, [#allocation22], %s4163_s6, %s4163_s6, %s4164_s19  }
  0xe7   :  { %4141 = dma.done.wait [#allocation5], 16  }
  0xe8   :  { %4142 = vsyncadd [#allocation5], 4294967280 }
  0xe9   :  { %4143 = dma.done.wait [#allocation7], 32  }
  0xea   :  { %4144 = vsyncadd [#allocation7], 4294967264 }
  0xeb   :  { %4145 = dma.done.wait [#allocation10], 4752  }
  0xec   :  { %4146 = vsyncadd [#allocation10], 4294962544 }
  0xed   :  { %4147 = dma.done.wait [#allocation13], 65664  }
  0xee   :  { %4148 = vsyncadd [#allocation13], 4294901632 }
  0xef   :  { %4149 = dma.done.wait [#allocation16], 8208  }
  0xf0   :  { %4150 = vsyncadd [#allocation16], 4294959088 }
  0xf1   :  { %4151 = dma.done.wait [#allocation19], 256  }
  0xf2   :  { %4152 = vsyncadd [#allocation19], 4294967040 }
  0xf3   :  { %4153 = dma.done.wait [#allocation22], 528  }
  0xf4   :  { %4154 = vsyncadd [#allocation22], 4294966768  ;;  %v4174_v0 = vmov 0.0   ;;  %v212_v1 = vld [vmem:[#allocation9 + $0x8] sm:$0xff]  ;;  %v221_v2 = vld [vmem:[#allocation9 + $0x50] sm:$0xff]  ;;  %vm296_vm0 = vcmask 261120  }
  0xf5   :  { %364 = vmatprep.mubr.f32.mxu0 %v4174_v0  ;;  %577 = vmatprep.mubr.f32.mxu1 %v4174_v0  ;;  %v211_v3 = vld [vmem:[#allocation9] sm:$0xff]  ;;  %v3138_v4 = vpack.c.bf16 %v221_v2, %v212_v1  ;;  %v220_v5 = vld [vmem:[#allocation9 + $0x48] sm:$0xff]  ;;  %v230_v6 = vld [vmem:[#allocation9 + $0x98] sm:$0xff]  ;;  %vm4176_vm1 = vmmov 0   ;;  %vm2071_vm2 = vcmask 319744   ;;  %vm2088_vm3 = vcmask 385344  }
  0xf6   :  { %v239_v7 = vld [vmem:[#allocation9 + $0xe0] sm:$0xff]  ;;  %v3140_v8 = vpack.c.bf16 %v220_v5, %v211_v3  ;;  %v229_v10 = vld [vmem:[#allocation9 + $0x90] sm:$0xff]  ;;  %v238_v11 = vld [vmem:[#allocation9 + $0xd8] sm:$0xff]  ;;  %s4177_s14 = smov 96   ;;  %s4178_s6 = smov 88   ;;  %vm2082_vm4 = vcmask 57344  }
  0xf7   :  { %v3142_v9 = vpack.c.bf16 %v239_v7, %v230_v6  ;;  %3139 = vmatprep.subr.bf16.mxu0 %v3138_v4  ;;  %v214_v12 = vld [vmem:[#allocation9 + $0x18] sm:$0xff]  ;;  %v223_v13 = vld [vmem:[#allocation9 + $0x60] sm:$0xff]  ;;  %v3144_v15 = vpack.c.bf16 %v238_v11, %v229_v10  ;;  %v213_v17 = vld [vmem:[#allocation9 + $0x10] sm:$0xff]  ;;  %vm2059_vm5 = vcmask 253952   ;;  %vm2109_vm6 = vcmask 64512   ;;  %s4183_s10 = smov 56  }
  0xf8   :  { %v218_v14 = vld [vmem:[#allocation9 + $0x38] sm:$0xff]  ;;  %3141 = vmatpush1.bf16.msra.mxu0 %v3140_v8  ;;  %v227_v16 = vld [vmem:[#allocation9 + $0x80] sm:$0xff]  ;;  %v3146_v19 = vpack.c.bf16 %v223_v13, %v214_v12  ;;  %v217_v21 = vld [vmem:[#allocation9 + $0x30] sm:$0xff]  ;;  %s4184_s1 = smov 55   ;;  %s4186_s9 = smov 54  }
  0xf9   :  { %v222_v18 = vld [vmem:[#allocation9 + $0x58] sm:$0xff]  ;;  %3143 = vmatprep.subr.bf16.mxu0 %v3142_v9  ;;  %v3162_v20 = vpack.c.bf16 %v227_v16, %v218_v14  ;;  %v232_v23 = vld [vmem:[#allocation9 + $0xa8] sm:$0xff]  ;;  %v241_v25 = vld [vmem:[#allocation9 + $0xf0] sm:$0xff]  ;;  %s4187_s0 = smov 80  }
  0xfa   :  { %v226_v22 = vld [vmem:[#allocation9 + $0x78] sm:$0xff]  ;;  %v236_v26 = vld [vmem:[#allocation9 + $0xc8] sm:$0xff]  ;;  %v245_v27 = vld [vmem:[#allocation9 + $0x110] sm:$0xff]  ;;  %v3148_v31 = vpack.c.bf16 %v222_v18, %v213_v17  ;;  %v3150_v33 = vpack.c.bf16 %v241_v25, %v232_v23 }
  0xfb   :  { %v3164_v24 = vpack.c.bf16 %v226_v22, %v217_v21  ;;  %3163 = vmatprep.subr.bf16.mxu1 %v3162_v20  ;;  %v3166_v28 = vpack.c.bf16 %v245_v27, %v236_v26  ;;  %v235_v29 = vld [vmem:[#allocation9 + $0xc0] sm:$0xff]  ;;  %v4446_v30 = vld [vmem:[#allocation4] sm:$0x1]  ;;  %v244_v32 = vld [vmem:[#allocation9 + $0x108] sm:$0xff] }
  0xfc   :  { %3145 = vmatpush1.bf16.msra.mxu0 %v3144_v15  ;;  %v231_v34 = vld [vmem:[#allocation9 + $0xa0] sm:$0xff]  ;;  %v240_v35 = vld [vmem:[#allocation9 + $0xe8] sm:$0xff]  ;;  %v3168_v36 = vpack.c.bf16 %v244_v32, %v235_v29  ;;  %v225_v38 = vld [vmem:[#allocation9 + $0x70] sm:$0xff]  ;;  %v4175_v15 = vmov 0.0|0.0  }
  0xfd   :  { %3165 = vmatpush1.bf16.msra.mxu1 %v3164_v24  ;;  %3147 = vmatprep.subr.bf16.mxu0 %v3146_v19  ;;  %v216_v37 = vld [vmem:[#allocation9 + $0x28] sm:$0xff]  ;;  %v3152_v39 = vpack.c.bf16 %v240_v35, %v231_v34  ;;  %v677_v40 = vld [vmem:[#allocation12 + $0x8] sm:$0xff]  ;;  %v215_v43 = vld [vmem:[#allocation9 + $0x20] sm:$0xff] }
  0xfe   :  { %3167 = vmatprep.subr.bf16.mxu1 %v3166_v28  ;;  %v685_v41 = vld [vmem:[#allocation12 + $0x48] sm:$0xff]  ;;  %v3154_v42 = vpack.c.bf16 %v225_v38, %v216_v37  ;;  %v224_v44 = vld [vmem:[#allocation9 + $0x68] sm:$0xff]  ;;  %v243_v48 = vld [vmem:[#allocation9 + $0x100] sm:$0xff] }
  0xff   :  { %2970 = vmatmul.mubr.msk.f32.vlgmr.msra.gmra.mrb[0].mxu0 %vm296_vm0, %v4446_v30  ;;  %v3176_v45 = vpack.c.bf16 %v685_v41, %v677_v40  ;;  %v676_v46 = vld [vmem:[#allocation12] sm:$0xff]  ;;  %v234_v47 = vld [vmem:[#allocation9 + $0xb8] sm:$0xff]  ;;  %v3156_v53 = vpack.c.bf16 %v224_v44, %v215_v43  ;;  %v219_v6 = vld [vmem:[#allocation9 + $0x40] sm:$0xff] }
 0x100   :  { %3149 = vmatpush1.bf16.msra.mxu0 %v3148_v31  ;;  %435 = vmatprep.mubr.f32.mxu0 %v4174_v0  ;;  %v684_v49 = vld [vmem:[#allocation12 + $0x40] sm:$0xff]  ;;  %v693_v51 = vld [vmem:[#allocation12 + $0x88] sm:$0xff]  ;;  %v3158_v57 = vpack.c.bf16 %v243_v48, %v234_v47  ;;  %v679_v18 = vld [vmem:[#allocation12 + $0x18] sm:$0xff] }
 0x101   :  { %3169 = vmatpush1.bf16.msra.mxu1 %v3168_v36  ;;  %3151 = vmatprep.subr.bf16.mxu0 %v3150_v33  ;;  %v3178_v50 = vpack.c.bf16 %v684_v49, %v676_v46  ;;  %v701_v52 = vld [vmem:[#allocation12 + $0xc8] sm:$0xff]  ;;  %v692_v55 = vld [vmem:[#allocation12 + $0x80] sm:$0xff]  ;;  %v687_v20 = vld [vmem:[#allocation12 + $0x58] sm:$0xff] }
 0x102   :  { %3177 = vmatprep.subr.bf16.mxu1 %v3176_v45  ;;  %v3180_v54 = vpack.c.bf16 %v701_v52, %v693_v51  ;;  %v700_v56 = vld [vmem:[#allocation12 + $0xc0] sm:$0xff]  ;;  %v242_v59 = vld [vmem:[#allocation9 + $0xf8] sm:$0xff]  ;;  %v3304_v27 = vpack.c.bf16 %v687_v20, %v679_v18  ;;  %v695_v31 = vld [vmem:[#allocation12 + $0x98] sm:$0xff] }
 0x103   :  { %v233_v58 = vld [vmem:[#allocation9 + $0xb0] sm:$0xff]  ;;  %v3182_v60 = vpack.c.bf16 %v700_v56, %v692_v55  ;;  %v228_v7 = vld [vmem:[#allocation9 + $0x88] sm:$0xff]  ;;  %v246_v17 = vld [vmem:[#allocation9 + $0x118] sm:$0xff] }
 0x104   :  { %2973 = vmatmul.mubr.msk.f32.vlgmr.msra.gmra.mrb[0].mxu1 %vm296_vm0, %v4446_v30  ;;  %3153 = vmatpush1.bf16.msra.mxu0 %v3152_v39  ;;  %v709_v61 = vld [vmem:[#allocation12 + $0x108] sm:$0xff]  ;;  %v708_v1 = vld [vmem:[#allocation12 + $0x100] sm:$0xff]  ;;  %v3160_v3 = vpack.c.bf16 %v242_v59, %v233_v58  ;;  %v3171_v14 = vpack.c.bf16 %v228_v7, %v219_v6  ;;  %v678_v28 = vld [vmem:[#allocation12 + $0x10] sm:$0xff] }
 0x105   :  { %3155 = vmatprep.subr.bf16.mxu0 %v3154_v42  ;;  %3179 = vmatpush1.bf16.msra.mxu1 %v3178_v50  ;;  %v717_v62 = vld [vmem:[#allocation12 + $0x148] sm:$0xff]  ;;  %v716_v2 = vld [vmem:[#allocation12 + $0x140] sm:$0xff]  ;;  %v686_v29 = vld [vmem:[#allocation12 + $0x50] sm:$0xff] }
 0x106   :  { %3181 = vmatprep.subr.bf16.mxu1 %v3180_v54  ;;  %v3184_v63 = vpack.c.bf16 %v717_v62, %v709_v61  ;;  %v725_v4 = vld [vmem:[#allocation12 + $0x188] sm:$0xff]  ;;  %v3186_v8 = vpack.c.bf16 %v716_v2, %v708_v1  ;;  %v724_v10 = vld [vmem:[#allocation12 + $0x180] sm:$0xff]  ;;  %v703_v33 = vld [vmem:[#allocation12 + $0xd8] sm:$0xff]  ;;  %v3306_v39 = vpack.c.bf16 %v686_v29, %v678_v28 }
 0x107   :  { %2971 = vmatmul.mubr.msk.f32.vlgmr.msra.gmra.mrb[2].mxu0 %vm296_vm0, %v4446_v30  ;;  %v733_v5 = vld [vmem:[#allocation12 + $0x1c8] sm:$0xff]  ;;  %v732_v11 = vld [vmem:[#allocation12 + $0x1c0] sm:$0xff]  ;;  %v3308_v40 = vpack.c.bf16 %v703_v33, %v695_v31  ;;  %v694_v41 = vld [vmem:[#allocation12 + $0x90] sm:$0xff] }
 0x108   :  { %3157 = vmatpush1.bf16.msra.mxu0 %v3156_v53  ;;  %506 = vmatprep.mubr.f32.mxu0 %v4174_v0  ;;  %v3188_v9 = vpack.c.bf16 %v733_v5, %v725_v4  ;;  %v741_v12 = vld [vmem:[#allocation12 + $0x208] sm:$0xff]  ;;  %v3190_v19 = vpack.c.bf16 %v732_v11, %v724_v10  ;;  %v740_v22 = vld [vmem:[#allocation12 + $0x200] sm:$0xff]  ;;  %v702_v42 = vld [vmem:[#allocation12 + $0xd0] sm:$0xff] }
 0x109   :  { %3159 = vmatprep.subr.bf16.mxu0 %v3158_v57  ;;  %3183 = vmatpush1.bf16.msra.mxu1 %v3182_v60  ;;  %v749_v13 = vld [vmem:[#allocation12 + $0x248] sm:$0xff]  ;;  %v748_v23 = vld [vmem:[#allocation12 + $0x240] sm:$0xff]  ;;  %v711_v43 = vld [vmem:[#allocation12 + $0x118] sm:$0xff]  ;;  %v3310_v51 = vpack.c.bf16 %v702_v42, %v694_v41 }
 0x10a   :  { %3185 = vmatprep.subr.bf16.mxu1 %v3184_v63  ;;  %v237_v16 = vld [vmem:[#allocation9 + $0xd0] sm:$0xff]  ;;  %v3192_v21 = vpack.c.bf16 %v749_v13, %v741_v12  ;;  %v3194_v32 = vpack.c.bf16 %v748_v23, %v740_v22  ;;  %v719_v45 = vld [vmem:[#allocation12 + $0x158] sm:$0xff]  ;;  %v710_v53 = vld [vmem:[#allocation12 + $0x110] sm:$0xff] }
 0x10b   :  { %v757_v24 = vld [vmem:[#allocation12 + $0x288] sm:$0xff]  ;;  %v3174_v26 = vpack.c.bf16 %v246_v17, %v237_v16  ;;  %v756_v35 = vld [vmem:[#allocation12 + $0x280] sm:$0xff]  ;;  %v3312_v52 = vpack.c.bf16 %v719_v45, %v711_v43  ;;  %v718_v54 = vld [vmem:[#allocation12 + $0x150] sm:$0xff] }
 0x10c   :  { %3161 = vmatpush1.bf16.msra.mxu0 %v3160_v3  ;;  %v765_v25 = vld [vmem:[#allocation12 + $0x2c8] sm:$0xff]  ;;  %v764_v36 = vld [vmem:[#allocation12 + $0x2c0] sm:$0xff]  ;;  %v727_v55 = vld [vmem:[#allocation12 + $0x198] sm:$0xff] }
 0x10d   :  { %3170 = vmatprep.subr.bf16.mxu0 %v4175_v15  ;;  %3187 = vmatpush1.bf16.msra.mxu1 %v3186_v8  ;;  %v3196_v34 = vpack.c.bf16 %v765_v25, %v757_v24  ;;  %v773_v37 = vld [vmem:[#allocation12 + $0x308] sm:$0xff]  ;;  %v3198_v44 = vpack.c.bf16 %v764_v36, %v756_v35  ;;  %v772_v47 = vld [vmem:[#allocation12 + $0x300] sm:$0xff]  ;;  %v735_v57 = vld [vmem:[#allocation12 + $0x1d8] sm:$0xff] }
 0x10e   :  { %3189 = vmatprep.subr.bf16.mxu1 %v3188_v9  ;;  %v781_v38 = vld [vmem:[#allocation12 + $0x348] sm:$0xff]  ;;  %v780_v48 = vld [vmem:[#allocation12 + $0x340] sm:$0xff]  ;;  %v3316_v63 = vpack.c.bf16 %v735_v57, %v727_v55  ;;  %v726_v1 = vld [vmem:[#allocation12 + $0x190] sm:$0xff] }
 0x10f   :  { %2972 = vmatmul.mubr.msk.f32.vlgmr.msra.gmra.mrb[4].mxu0 %vm296_vm0, %v4446_v30  ;;  %v3200_v46 = vpack.c.bf16 %v781_v38, %v773_v37  ;;  %v789_v49 = vld [vmem:[#allocation12 + $0x388] sm:$0xff]  ;;  %v3202_v56 = vpack.c.bf16 %v780_v48, %v772_v47  ;;  %v788_v59 = vld [vmem:[#allocation12 + $0x380] sm:$0xff]  ;;  %v734_v2 = vld [vmem:[#allocation12 + $0x1d0] sm:$0xff] }
 0x110   :  { %3172 = vmatpush3.bf16.msra.mxu0 %v3171_v14  ;;  %3091 = vmatprep.mubr.msk.f32.mxu0 %vm4176_vm1, %v4174_v0  ;;  %v797_v50 = vld [vmem:[#allocation12 + $0x3c8] sm:$0xff]  ;;  %v796_v60 = vld [vmem:[#allocation12 + $0x3c0] sm:$0xff]  ;;  %v743_v3 = vld [vmem:[#allocation12 + $0x218] sm:$0xff]  ;;  %v3318_v11 = vpack.c.bf16 %v734_v2, %v726_v1 }
 0x111   :  { %3173 = vmatprep.subr.bf16.mxu0 %v4175_v15  ;;  %3191 = vmatpush1.bf16.msra.mxu1 %v3190_v19  ;;  %v3204_v58 = vpack.c.bf16 %v797_v50, %v789_v49  ;;  %v805_v61 = vld [vmem:[#allocation12 + $0x408] sm:$0xff]  ;;  %v3206_v4 = vpack.c.bf16 %v796_v60, %v788_v59  ;;  %v751_v5 = vld [vmem:[#allocation12 + $0x258] sm:$0xff]  ;;  %v804_v7 = vld [vmem:[#allocation12 + $0x400] sm:$0xff] }
 0x112   :  { %3193 = vmatprep.subr.bf16.mxu1 %v3192_v21  ;;  %v813_v62 = vld [vmem:[#allocation12 + $0x448] sm:$0xff]  ;;  %v812_v8 = vld [vmem:[#allocation12 + $0x440] sm:$0xff]  ;;  %v3320_v12 = vpack.c.bf16 %v751_v5, %v743_v3  ;;  %v742_v13 = vld [vmem:[#allocation12 + $0x210] sm:$0xff] }
 0x113   :  { %v3208_v6 = vpack.c.bf16 %v813_v62, %v805_v61  ;;  %v821_v9 = vld [vmem:[#allocation12 + $0x488] sm:$0xff]  ;;  %v750_v14 = vld [vmem:[#allocation12 + $0x250] sm:$0xff]  ;;  %v759_v16 = vld [vmem:[#allocation12 + $0x298] sm:$0xff]  ;;  %v3210_v17 = vpack.c.bf16 %v812_v8, %v804_v7 }
 0x114   :  { %3175 = vmatpush3.bf16.msra.mxu0 %v3174_v26  ;;  %v829_v10 = vld [vmem:[#allocation12 + $0x4c8] sm:$0xff]  ;;  %v767_v18 = vld [vmem:[#allocation12 + $0x2d8] sm:$0xff]  ;;  %v820_v20 = vld [vmem:[#allocation12 + $0x480] sm:$0xff]  ;;  %v3322_v22 = vpack.c.bf16 %v750_v14, %v742_v13 }
 0x115   :  { %3305 = vmatprep.subr.bf16.mxu0 %v3304_v27  ;;  %3195 = vmatpush1.bf16.msra.mxu1 %v3194_v32  ;;  %v3212_v19 = vpack.c.bf16 %v829_v10, %v821_v9  ;;  %v828_v21 = vld [vmem:[#allocation12 + $0x4c0] sm:$0xff]  ;;  %v3324_v23 = vpack.c.bf16 %v767_v18, %v759_v16  ;;  %v758_v24 = vld [vmem:[#allocation12 + $0x290] sm:$0xff]  ;;  %v775_v27 = vld [vmem:[#allocation12 + $0x318] sm:$0xff] }
 0x116   :  { %3197 = vmatprep.subr.bf16.mxu1 %v3196_v34  ;;  %v766_v25 = vld [vmem:[#allocation12 + $0x2d0] sm:$0xff]  ;;  %v3214_v26 = vpack.c.bf16 %v828_v21, %v820_v20  ;;  %v783_v28 = vld [vmem:[#allocation12 + $0x358] sm:$0xff]  ;;  %v844_v59 = vld [vmem:[#allocation12 + $0x540] sm:$0xff] }
 0x117   :  { %3092 = vmatmul.mubr.msk.f32.vlgmr.msra.gmra.mrb[6].mxu0 %vm296_vm0, %v4446_v30  ;;  %v3314_v30 = vpack.c.bf16 %v718_v54, %v710_v53  ;;  %v3326_v29 = vpack.c.bf16 %v766_v25, %v758_v24  ;;  %v3328_v31 = vpack.c.bf16 %v783_v28, %v775_v27  ;;  %v774_v32 = vld [vmem:[#allocation12 + $0x310] sm:$0xff]  ;;  %v791_v34 = vld [vmem:[#allocation12 + $0x398] sm:$0xff]  ;;  %v837_v53 = vld [vmem:[#allocation12 + $0x508] sm:$0xff] }
 0x118   :  { %3307 = vmatpush1.bf16.msra.mxu0 %v3306_v39  ;;  %v782_v33 = vld [vmem:[#allocation12 + $0x350] sm:$0xff]  ;;  %v799_v35 = vld [vmem:[#allocation12 + $0x3d8] sm:$0xff]  ;;  %v845_v54 = vld [vmem:[#allocation12 + $0x548] sm:$0xff] }
 0x119   :  { %3309 = vmatprep.subr.bf16.mxu0 %v3308_v40  ;;  %3199 = vmatpush1.bf16.msra.mxu1 %v3198_v44  ;;  %v3330_v36 = vpack.c.bf16 %v782_v33, %v774_v32  ;;  %v3332_v37 = vpack.c.bf16 %v799_v35, %v791_v34  ;;  %v790_v38 = vld [vmem:[#allocation12 + $0x390] sm:$0xff]  ;;  %v807_v40 = vld [vmem:[#allocation12 + $0x418] sm:$0xff]  ;;  %v853_v1 = vld [vmem:[#allocation12 + $0x588] sm:$0xff] }
 0x11a   :  { %3201 = vmatprep.subr.bf16.mxu1 %v3200_v46  ;;  %v798_v39 = vld [vmem:[#allocation12 + $0x3d0] sm:$0xff]  ;;  %v815_v41 = vld [vmem:[#allocation12 + $0x458] sm:$0xff]  ;;  %v861_v2 = vld [vmem:[#allocation12 + $0x5c8] sm:$0xff] }
 0x11b   :  { %v3334_v42 = vpack.c.bf16 %v798_v39, %v790_v38  ;;  %v3336_v43 = vpack.c.bf16 %v815_v41, %v807_v40  ;;  %v806_v44 = vld [vmem:[#allocation12 + $0x410] sm:$0xff]  ;;  %v823_v46 = vld [vmem:[#allocation12 + $0x498] sm:$0xff]  ;;  %v860_v7 = vld [vmem:[#allocation12 + $0x5c0] sm:$0xff] }
 0x11c   :  { %3311 = vmatpush1.bf16.msra.mxu0 %v3310_v51  ;;  %v814_v45 = vld [vmem:[#allocation12 + $0x450] sm:$0xff]  ;;  %v831_v47 = vld [vmem:[#allocation12 + $0x4d8] sm:$0xff]  ;;  %v869_v13 = vld [vmem:[#allocation12 + $0x608] sm:$0xff] }
 0x11d   :  { %3313 = vmatprep.subr.bf16.mxu0 %v3312_v52  ;;  %3203 = vmatpush1.bf16.msra.mxu1 %v3202_v56  ;;  %v3338_v48 = vpack.c.bf16 %v814_v45, %v806_v44  ;;  %v3340_v49 = vpack.c.bf16 %v831_v47, %v823_v46  ;;  %v822_v50 = vld [vmem:[#allocation12 + $0x490] sm:$0xff]  ;;  %v839_v55 = vld [vmem:[#allocation12 + $0x518] sm:$0xff]  ;;  %v3216_v56 = vpack.c.bf16 %v845_v54, %v837_v53  ;;  %v877_v14 = vld [vmem:[#allocation12 + $0x648] sm:$0xff] }
 0x11e   :  { %3205 = vmatprep.subr.bf16.mxu1 %v3204_v58  ;;  %v830_v51 = vld [vmem:[#allocation12 + $0x4d0] sm:$0xff]  ;;  %v847_v57 = vld [vmem:[#allocation12 + $0x558] sm:$0xff]  ;;  %v836_v58 = vld [vmem:[#allocation12 + $0x500] sm:$0xff] }
 0x11f   :  { %v3342_v52 = vpack.c.bf16 %v830_v51, %v822_v50  ;;  %v3344_v60 = vpack.c.bf16 %v847_v57, %v839_v55  ;;  %v3218_v61 = vpack.c.bf16 %v844_v59, %v836_v58  ;;  %v838_v62 = vld [vmem:[#allocation12 + $0x510] sm:$0xff]  ;;  %v855_v3 = vld [vmem:[#allocation12 + $0x598] sm:$0xff]  ;;  %v876_v20 = vld [vmem:[#allocation12 + $0x640] sm:$0xff] }
 0x120   :  { %3315 = vmatpush1.bf16.msra.mxu0 %v3314_v30  ;;  %v846_v30 = vld [vmem:[#allocation12 + $0x550] sm:$0xff]  ;;  %v863_v5 = vld [vmem:[#allocation12 + $0x5d8] sm:$0xff]  ;;  %v893_v27 = vld [vmem:[#allocation12 + $0x6c8] sm:$0xff] }
 0x121   :  { %3317 = vmatprep.subr.bf16.mxu0 %v3316_v63  ;;  %3207 = vmatpush1.bf16.msra.mxu1 %v3206_v4  ;;  %v3346_v63 = vpack.c.bf16 %v846_v30, %v838_v62  ;;  %v3220_v4 = vpack.c.bf16 %v861_v2, %v853_v1  ;;  %v3348_v8 = vpack.c.bf16 %v863_v5, %v855_v3  ;;  %v854_v10 = vld [vmem:[#allocation12 + $0x590] sm:$0xff]  ;;  %v871_v16 = vld [vmem:[#allocation12 + $0x618] sm:$0xff]  ;;  %v884_v32 = vld [vmem:[#allocation12 + $0x680] sm:$0xff]  ;;  %v251_v5 = vlaneseq }
 0x122   :  { %3209 = vmatprep.subr.bf16.mxu1 %v3208_v6  ;;  %v852_v6 = vld [vmem:[#allocation12 + $0x580] sm:$0xff]  ;;  %v879_v18 = vld [vmem:[#allocation12 + $0x658] sm:$0xff]  ;;  %v878_v24 = vld [vmem:[#allocation12 + $0x650] sm:$0xff] }
 0x123   :  { %v3222_v9 = vpack.c.bf16 %v860_v7, %v852_v6  ;;  %v3352_v21 = vpack.c.bf16 %v879_v18, %v871_v16  ;;  %v887_v28 = vld [vmem:[#allocation12 + $0x698] sm:$0xff]  ;;  %v892_v33 = vld [vmem:[#allocation12 + $0x6c0] sm:$0xff]  ;;  %v901_v39 = vld [vmem:[#allocation12 + $0x708] sm:$0xff]  ;;  %v4465_v6 = vshrl.u32 %v251_v5, 7  ;;  %vm4604_vm7 = vcmp.lt.s32.totalorder %v251_v5, 64 }
 0x124   :  { %3319 = vmatpush1.bf16.msra.mxu0 %v3318_v11  ;;  %v862_v11 = vld [vmem:[#allocation12 + $0x5d0] sm:$0xff]  ;;  %v3230_v35 = vpack.c.bf16 %v892_v33, %v884_v32  ;;  %v909_v40 = vld [vmem:[#allocation12 + $0x748] sm:$0xff]  ;;  %v903_v41 = vld [vmem:[#allocation12 + $0x718] sm:$0xff]  ;;  %vm4611_vm8 = vcmp.ge.s32.totalorder %v251_v5, 64  ;;  %vm4616_vm9 = vcmp.lt.s32.totalorder %v251_v5, 72  ;;  %vm4622_vm10 = vcmp.ge.s32.totalorder %v251_v5, 72 }
 0x125   :  { %3321 = vmatprep.subr.bf16.mxu0 %v3320_v12  ;;  %3211 = vmatpush1.bf16.msra.mxu1 %v3210_v17  ;;  %v3350_v12 = vpack.c.bf16 %v862_v11, %v854_v10  ;;  %v3224_v17 = vpack.c.bf16 %v877_v14, %v869_v13  ;;  %v900_v44 = vld [vmem:[#allocation12 + $0x700] sm:$0xff]  ;;  %v917_v51 = vld [vmem:[#allocation12 + $0x788] sm:$0xff]  ;;  %v919_v53 = vld [vmem:[#allocation12 + $0x798] sm:$0xff]  ;;  %v277_v7 = vsub.s32 6, %v4465_v6  ;;  %v261_v11 = vsub.s32 2, %v4465_v6 }
 0x126   :  { %3213 = vmatprep.subr.bf16.mxu1 %v3212_v19  ;;  %v868_v19 = vld [vmem:[#allocation12 + $0x600] sm:$0xff]  ;;  %v927_v55 = vld [vmem:[#allocation12 + $0x7d8] sm:$0xff]  ;;  %v933_v30 = vld [vmem:[#allocation12 + $0x808] sm:$0xff]  ;;  %v265_v13 = vsub.s32 3, %v4465_v6  ;;  %vm4627_vm11 = vcmp.lt.s32.totalorder %v251_v5, 73  ;;  %vm4632_vm12 = vcmp.ge.s32.totalorder %v251_v5, 73 }
 0x127   :  { %v908_v45 = vld [vmem:[#allocation12 + $0x740] sm:$0xff]  ;;  %v3364_v58 = vpack.c.bf16 %v927_v55, %v919_v53  ;;  %v935_v1 = vld [vmem:[#allocation12 + $0x818] sm:$0xff]  ;;  %vm4637_vm13 = vcmp.lt.s32.totalorder %v251_v5, 74  ;;  %vm2408_vm14 = vmand %vm4611_vm8, %vm4616_vm9  ;;  %vm4646_vm15 = vcmp.ge.s32.totalorder %v251_v5, 74 }
 0x128   :  { %3323 = vmatpush1.bf16.msra.mxu0 %v3322_v22  ;;  %v3226_v22 = vpack.c.bf16 %v876_v20, %v868_v19  ;;  %v3234_v47 = vpack.c.bf16 %v908_v45, %v900_v44  ;;  %v924_v57 = vld [vmem:[#allocation12 + $0x7c0] sm:$0xff]  ;;  %v943_v3 = vld [vmem:[#allocation12 + $0x858] sm:$0xff] }
 0x129   :  { %3325 = vmatprep.subr.bf16.mxu0 %v3324_v23  ;;  %3215 = vmatpush1.bf16.msra.mxu1 %v3214_v26  ;;  %v870_v23 = vld [vmem:[#allocation12 + $0x610] sm:$0xff]  ;;  %v885_v26 = vld [vmem:[#allocation12 + $0x688] sm:$0xff]  ;;  %v932_v44 = vld [vmem:[#allocation12 + $0x800] sm:$0xff] }
 0x12a   :  { %3217 = vmatprep.subr.bf16.mxu1 %v3216_v56  ;;  %v3354_v25 = vpack.c.bf16 %v878_v24, %v870_v23  ;;  %v916_v56 = vld [vmem:[#allocation12 + $0x780] sm:$0xff]  ;;  %v4482_v24 = vsub.s32 0, %v4465_v6  ;;  %v959_v53 = vld [vmem:[#allocation12 + $0x8d8] sm:$0xff] }
 0x12b   :  { %v3238_v59 = vpack.c.bf16 %v924_v57, %v916_v56  ;;  %v948_v57 = vld [vmem:[#allocation12 + $0x880] sm:$0xff] }
 0x12c   :  { %3327 = vmatpush1.bf16.msra.mxu0 %v3326_v29  ;;  %v3228_v29 = vpack.c.bf16 %v893_v27, %v885_v26  ;;  %v269_v27 = vsub.s32 4, %v4465_v6 }
 0x12d   :  { %3329 = vmatprep.subr.bf16.mxu0 %v3328_v31  ;;  %3219 = vmatpush1.bf16.msra.mxu1 %v3218_v61  ;;  %v895_v31 = vld [vmem:[#allocation12 + $0x6d8] sm:$0xff]  ;;  %v926_v61 = vld [vmem:[#allocation12 + $0x7d0] sm:$0xff] }
 0x12e   :  { %3221 = vmatprep.subr.bf16.mxu1 %v3220_v4  ;;  %v3356_v34 = vpack.c.bf16 %v895_v31, %v887_v28  ;;  %v3368_v4 = vpack.c.bf16 %v943_v3, %v935_v1  ;;  %v4488_v28 = vsub.s32 1, %v4465_v6  ;;  %v273_v31 = vsub.s32 5, %v4465_v6  ;;  %v973_v1 = vld [vmem:[#allocation12 + $0x948] sm:$0xff]  ;;  %v975_v3 = vld [vmem:[#allocation12 + $0x958] sm:$0xff] }
 0x130   :  { %3331 = vmatpush1.bf16.msra.mxu0 %v3330_v36  ;;  %v886_v36 = vld [vmem:[#allocation12 + $0x690] sm:$0xff] }
 0x131   :  { %3333 = vmatprep.subr.bf16.mxu0 %v3332_v37  ;;  %3223 = vmatpush1.bf16.msra.mxu1 %v3222_v9  ;;  %v894_v37 = vld [vmem:[#allocation12 + $0x6d0] sm:$0xff]  ;;  %v281_v9 = vsub.s32 7, %v4465_v6 }
 0x132   :  { %3225 = vmatprep.subr.bf16.mxu1 %v3224_v17  ;;  %v3358_v38 = vpack.c.bf16 %v894_v37, %v886_v36 }
 0x134   :  { %3335 = vmatpush1.bf16.msra.mxu0 %v3334_v42  ;;  %v3232_v42 = vpack.c.bf16 %v909_v40, %v901_v39 }
 0x135   :  { %3337 = vmatprep.subr.bf16.mxu0 %v3336_v43  ;;  %3227 = vmatpush1.bf16.msra.mxu1 %v3226_v22  ;;  %v911_v43 = vld [vmem:[#allocation12 + $0x758] sm:$0xff] }
 0x136   :  { %3229 = vmatprep.subr.bf16.mxu1 %v3228_v29  ;;  %v3360_v46 = vpack.c.bf16 %v911_v43, %v903_v41 }
 0x138   :  { %3339 = vmatpush1.bf16.msra.mxu0 %v3338_v48  ;;  %v902_v48 = vld [vmem:[#allocation12 + $0x710] sm:$0xff] }
 0x139   :  { %3341 = vmatprep.subr.bf16.mxu0 %v3340_v49  ;;  %3231 = vmatpush1.bf16.msra.mxu1 %v3230_v35  ;;  %v910_v49 = vld [vmem:[#allocation12 + $0x750] sm:$0xff] }
 0x13a   :  { %3233 = vmatprep.subr.bf16.mxu1 %v3232_v42  ;;  %v3362_v50 = vpack.c.bf16 %v910_v49, %v902_v48  ;;  %v942_v48 = vld [vmem:[#allocation12 + $0x850] sm:$0xff] }
 0x13c   :  { %3343 = vmatpush1.bf16.msra.mxu0 %v3342_v52  ;;  %v925_v52 = vld [vmem:[#allocation12 + $0x7c8] sm:$0xff] }
 0x13d   :  { %3345 = vmatprep.subr.bf16.mxu0 %v3344_v60  ;;  %3235 = vmatpush1.bf16.msra.mxu1 %v3234_v47  ;;  %v3236_v54 = vpack.c.bf16 %v925_v52, %v917_v51  ;;  %v918_v60 = vld [vmem:[#allocation12 + $0x790] sm:$0xff]  ;;  %v957_v51 = vld [vmem:[#allocation12 + $0x8c8] sm:$0xff]  ;;  %v951_v52 = vld [vmem:[#allocation12 + $0x898] sm:$0xff] }
 0x13e   :  { %v3366_v62 = vpack.c.bf16 %v926_v61, %v918_v60  ;;  %v934_v47 = vld [vmem:[#allocation12 + $0x810] sm:$0xff] }
 0x13f   :  { %3237 = vmatprep.subr.bf16.mxu1 %v3236_v54  ;;  %v3370_v56 = vpack.c.bf16 %v942_v48, %v934_v47  ;;  %v950_v60 = vld [vmem:[#allocation12 + $0x890] sm:$0xff]  ;;  %v1004_v47 = vld [vmem:[#allocation12 + $0xa40] sm:$0xff] }
 0x140   :  { %3347 = vmatpush1.bf16.msra.mxu0 %v3346_v63  ;;  %v941_v63 = vld [vmem:[#allocation12 + $0x848] sm:$0xff]  ;;  %v958_v61 = vld [vmem:[#allocation12 + $0x8d0] sm:$0xff] }
 0x141   :  { %3349 = vmatprep.subr.bf16.mxu0 %v3348_v8  ;;  %3239 = vmatpush1.bf16.msra.mxu1 %v3238_v59  ;;  %v3240_v2 = vpack.c.bf16 %v941_v63, %v933_v30  ;;  %v3372_v63 = vpack.c.bf16 %v959_v53, %v951_v52  ;;  %v1013_v52 = vld [vmem:[#allocation12 + $0xa88] sm:$0xff] }
 0x142   :  { %v1021_v53 = vld [vmem:[#allocation12 + $0xac8] sm:$0xff] }
 0x143   :  { %3241 = vmatprep.subr.bf16.mxu1 %v3240_v2  ;;  %v967_v2 = vld [vmem:[#allocation12 + $0x918] sm:$0xff] }
 0x144   :  { %3351 = vmatpush1.bf16.msra.mxu0 %v3350_v12  ;;  %v247_v12 = vld [vmem:[#allocation11] sm:$0xff] }
 0x145   :  { %3353 = vmatprep.subr.bf16.mxu0 %v3352_v21  ;;  %v278_v14 = vrot.slane %v247_v12, %v277_v7  ;;  %v282_v17 = vrot.slane %v247_v12, %v281_v9  ;;  %v262_v18 = vrot.slane %v247_v12, %v261_v11  ;;  %v266_v20 = vrot.slane %v247_v12, %v265_v13 }
 0x146   :  { %v270_v35 = vrot.slane %v247_v12, %v269_v27  ;;  %v258_v36 = vrot.slane %v247_v12, %v4488_v28  ;;  %v274_v37 = vrot.slane %v247_v12, %v273_v31 }
 0x148   :  { %3355 = vmatpush1.bf16.msra.mxu0 %v3354_v25 }
 0x149   :  { %3357 = vmatprep.subr.bf16.mxu0 %v3356_v34  ;;  %v254_v34 = vrot.slane %v247_v12, %v4482_v24  ;;  %v964_v12 = vld [vmem:[#allocation12 + $0x900] sm:$0xff] }
 0x14c   :  { %3359 = vmatpush1.bf16.msra.mxu0 %v3358_v38 }
 0x14d   :  { %3361 = vmatprep.subr.bf16.mxu0 %v3360_v46  ;;  %v940_v46 = vld [vmem:[#allocation12 + $0x840] sm:$0xff] }
 0x14e   :  { %v3242_v55 = vpack.c.bf16 %v940_v46, %v932_v44  ;;  %v996_v46 = vld [vmem:[#allocation12 + $0xa00] sm:$0xff] }
 0x150   :  { %3363 = vmatpush1.bf16.msra.mxu0 %v3362_v50  ;;  %v949_v50 = vld [vmem:[#allocation12 + $0x888] sm:$0xff] }
 0x151   :  { %3365 = vmatprep.subr.bf16.mxu0 %v3364_v58  ;;  %v956_v58 = vld [vmem:[#allocation12 + $0x8c0] sm:$0xff]  ;;  %v3244_v30 = vpack.c.bf16 %v957_v51, %v949_v50  ;;  %v998_v50 = vld [vmem:[#allocation12 + $0xa10] sm:$0xff] }
 0x152   :  { %v1006_v51 = vld [vmem:[#allocation12 + $0xa50] sm:$0xff] }
 0x154   :  { %3367 = vmatpush1.bf16.msra.mxu0 %v3366_v62  ;;  %v965_v62 = vld [vmem:[#allocation12 + $0x908] sm:$0xff] }
 0x155   :  { %3369 = vmatprep.subr.bf16.mxu0 %v3368_v4 }
 0x1d2   :  { %v366_v8 = vpop.f32.mrb[0].mxu0 }
 0x1d3   :  { %v368_v10 = vpop.f32.mrb[1].mxu0  ;;  %v367_v39 = vadd.f32 %v366_v8, %v254_v34  ;;  %v3246_v8 = vpack.c.bf16 %v956_v58, %v948_v57  ;;  %v980_v34 = vld [vmem:[#allocation12 + $0x980] sm:$0xff]  ;;  %v3258_v57 = vpack.c.bf16 %v1004_v47, %v996_v46  ;;  %v3386_v58 = vpack.c.bf16 %v1006_v51, %v998_v50  ;;  %v1063_v46 = vld [vmem:[#allocation12 + $0xc18] sm:$0xff] }
 0x1d4   :  { %v369_v42 = vadd.f32 %v368_v10, %v258_v36  ;;  %v3374_v10 = vpack.c.bf16 %v958_v61, %v950_v60  ;;  %v1012_v60 = vld [vmem:[#allocation12 + $0xa80] sm:$0xff]  ;;  %v1071_v47 = vld [vmem:[#allocation12 + $0xc58] sm:$0xff] }
 0x1d5   :  { %v1020_v61 = vld [vmem:[#allocation12 + $0xac0] sm:$0xff] }
 0x1d6   :  { %v1060_v50 = vld [vmem:[#allocation12 + $0xc00] sm:$0xff] }
 0x1d7   :  { %v579_v16 = vpop.f32.mrb[0].mxu1  ;;  %v1068_v51 = vld [vmem:[#allocation12 + $0xc40] sm:$0xff] }
 0x1d8   :  { %v581_v19 = vpop.f32.mrb[1].mxu1  ;;  %v4479_v21 = vadd.f32 %v579_v16, %v278_v14  ;;  %v972_v14 = vld [vmem:[#allocation12 + $0x940] sm:$0xff]  ;;  %v3248_v16 = vpack.c.bf16 %v973_v1, %v965_v62  ;;  %v3260_v62 = vpack.c.bf16 %v1021_v53, %v1013_v52  ;;  %v1022_v1 = vld [vmem:[#allocation12 + $0xad0] sm:$0xff]  ;;  %v3400_v53 = vpack.c.bf16 %v1071_v47, %v1063_v46  ;;  %v1125_v47 = vld [vmem:[#allocation12 + $0xe08] sm:$0xff] }
 0x1d9   :  { %v582_v23 = vadd.f32 %v581_v19, %v282_v17  ;;  %v3376_v17 = vpack.c.bf16 %v975_v3, %v967_v2  ;;  %v974_v19 = vld [vmem:[#allocation12 + $0x950] sm:$0xff]  ;;  %v1029_v2 = vld [vmem:[#allocation12 + $0xb08] sm:$0xff] }
 0x1da   :  { %v437_v22 = vpop.f32.mrb[2].mxu0  ;;  %v1037_v3 = vld [vmem:[#allocation12 + $0xb48] sm:$0xff]  ;;  %v1118_v46 = vld [vmem:[#allocation12 + $0xdd0] sm:$0xff] }
 0x1db   :  { %v4484_v25 = vadd.f32 %v437_v22, %v262_v18  ;;  %v439_v26 = vpop.f32.mrb[3].mxu0  ;;  %v966_v18 = vld [vmem:[#allocation12 + $0x910] sm:$0xff]  ;;  %v989_v22 = vld [vmem:[#allocation12 + $0x9c8] sm:$0xff] }
 0x1dc   :  { %v440_v29 = vadd.f32 %v439_v26, %v266_v20  ;;  %v981_v20 = vld [vmem:[#allocation12 + $0x988] sm:$0xff]  ;;  %v991_v26 = vld [vmem:[#allocation12 + $0x9d8] sm:$0xff] }
 0x1dd   :  { %v670_v32 = vmax.f32 %v4484_v25, %v4479_v21  ;;  %v3252_v36 = vpack.c.bf16 %v989_v22, %v981_v20  ;;  %v1030_v20 = vld [vmem:[#allocation12 + $0xb10] sm:$0xff] }
 0x1de   :  { %v671_v33 = vmax.f32 %v440_v29, %v582_v23  ;;  %v983_v23 = vld [vmem:[#allocation12 + $0x998] sm:$0xff]  ;;  %v3250_v29 = vpack.c.bf16 %v972_v14, %v964_v12  ;;  %v3262_v12 = vpack.c.bf16 %v1020_v61, %v1012_v60  ;;  %v1038_v22 = vld [vmem:[#allocation12 + $0xb50] sm:$0xff] }
 0x1df   :  { %v1079_v60 = vld [vmem:[#allocation12 + $0xc98] sm:$0xff] }
 0x1e0   :  { %v4505_v4 = vmax.f32 %v671_v33, 0.0  ;;  %v3378_v33 = vpack.c.bf16 %v974_v19, %v966_v18  ;;  %v3264_v18 = vpack.c.bf16 %v1037_v3, %v1029_v2  ;;  %v1087_v61 = vld [vmem:[#allocation12 + $0xcd8] sm:$0xff] }
 0x1e1   :  { %v3404_v3 = vpack.c.bf16 %v1087_v61, %v1079_v60  ;;  %v1134_v60 = vld [vmem:[#allocation12 + $0xe50] sm:$0xff]  ;;  %v1141_v61 = vld [vmem:[#allocation12 + $0xe88] sm:$0xff] }
 0x1e2   :  { %v508_v38 = vpop.f32.mrb[4].mxu0 }
 0x1e3   :  { %v509_v40 = vadd.f32 %v508_v38, %v270_v35  ;;  %v510_v41 = vpop.f32.mrb[5].mxu0  ;;  %v988_v35 = vld [vmem:[#allocation12 + $0x9c0] sm:$0xff]  ;;  %v982_v38 = vld [vmem:[#allocation12 + $0x990] sm:$0xff] }
 0x1e4   :  { %v511_v43 = vadd.f32 %v510_v41, %v274_v37  ;;  %v3380_v37 = vpack.c.bf16 %v991_v26, %v983_v23  ;;  %v1005_v41 = vld [vmem:[#allocation12 + $0xa48] sm:$0xff]  ;;  %v3254_v44 = vpack.c.bf16 %v988_v35, %v980_v34 }
 0x1e5   :  { %v668_v45 = vmax.f32 %v367_v39, %v509_v40  ;;  %v990_v39 = vld [vmem:[#allocation12 + $0x9d0] sm:$0xff]  ;;  %v997_v40 = vld [vmem:[#allocation12 + $0xa08] sm:$0xff] }
 0x1e6   :  { %v669_v49 = vmax.f32 %v369_v42, %v511_v43  ;;  %v999_v42 = vld [vmem:[#allocation12 + $0xa18] sm:$0xff]  ;;  %v3256_v48 = vpack.c.bf16 %v1005_v41, %v997_v40  ;;  %v1045_v23 = vld [vmem:[#allocation12 + $0xb88] sm:$0xff] }
 0x1e7   :  { %v4501_v59 = vmax.f32 %v668_v45, 0.0  ;;  %v1007_v43 = vld [vmem:[#allocation12 + $0xa58] sm:$0xff]  ;;  %v3382_v45 = vpack.c.bf16 %v990_v39, %v982_v38  ;;  %v1053_v26 = vld [vmem:[#allocation12 + $0xbc8] sm:$0xff]  ;;  %v1044_v38 = vld [vmem:[#allocation12 + $0xb80] sm:$0xff] }
 0x1e8   :  { %v4499_v54 = vmax.f32 %v669_v49, 0.0  ;;  %v3384_v49 = vpack.c.bf16 %v1007_v43, %v999_v42  ;;  %v1052_v39 = vld [vmem:[#allocation12 + $0xbc0] sm:$0xff]  ;;  %v3268_v40 = vpack.c.bf16 %v1053_v26, %v1045_v23  ;;  %v1046_v42 = vld [vmem:[#allocation12 + $0xb90] sm:$0xff] }
 0x1e9   :  { %v1054_v43 = vld [vmem:[#allocation12 + $0xbd0] sm:$0xff] }
 0x1ea   :  { %1294 = vmatprep.mubr.f32.mxu1 %v4499_v54  ;;  %1436 = vmatprep.mubr.f32.mxu0 %v4499_v54  ;;  %v4511_v34 = vpop.f32.mrb[6].mxu0 }
 0x1eb   :  { %1295 = vmatmul.mubr.f32.vlgmr.msra.gmra.mrb[2].mxu1 %v4501_v59  ;;  %1437 = vmatmul.mubr.f32.vlgmr.msra.gmra.mrb[8].mxu0 %v4501_v59  ;;  %v3093_v35 = vpop.f32.mrb[7].mxu0 }
 0x1ec   :  { %3243 = vmatpush1.bf16.msra.mxu1 %v3242_v55  ;;  %3371 = vmatpush1.bf16.msra.mxu0 %v3370_v56  ;;  %v1015_v55 = vld [vmem:[#allocation12 + $0xa98] sm:$0xff]  ;;  %v1109_v35 = vld [vmem:[#allocation12 + $0xd88] sm:$0xff] }
 0x1ed   :  { %1365 = vmatprep.mubr.f32.mxu1 %v4505_v4  ;;  %1507 = vmatprep.mubr.f32.mxu0 %v4505_v4  ;;  %v1023_v56 = vld [vmem:[#allocation12 + $0xad8] sm:$0xff] }
 0x1ee   :  { %3245 = vmatprep.subr.bf16.mxu1 %v3244_v30  ;;  %3373 = vmatprep.subr.bf16.mxu0 %v3372_v63  ;;  %v3388_v30 = vpack.c.bf16 %v1023_v56, %v1015_v55  ;;  %v1014_v63 = vld [vmem:[#allocation12 + $0xa90] sm:$0xff] }
 0x1ef   :  { %v3390_v14 = vpack.c.bf16 %v1022_v1, %v1014_v63  ;;  %v1062_v55 = vld [vmem:[#allocation12 + $0xc10] sm:$0xff]  ;;  %v1076_v63 = vld [vmem:[#allocation12 + $0xc80] sm:$0xff] }
 0x1f0   :  { %3247 = vmatpush1.bf16.msra.mxu1 %v3246_v8  ;;  %3375 = vmatpush1.bf16.msra.mxu0 %v3374_v10  ;;  %v1031_v8 = vld [vmem:[#allocation12 + $0xb18] sm:$0xff]  ;;  %v1070_v56 = vld [vmem:[#allocation12 + $0xc50] sm:$0xff]  ;;  %v1084_v1 = vld [vmem:[#allocation12 + $0xcc0] sm:$0xff] }
 0x1f1   :  { %3249 = vmatprep.subr.bf16.mxu1 %v3248_v16  ;;  %3377 = vmatprep.subr.bf16.mxu0 %v3376_v17  ;;  %v1039_v10 = vld [vmem:[#allocation12 + $0xb58] sm:$0xff]  ;;  %v1028_v16 = vld [vmem:[#allocation12 + $0xb00] sm:$0xff] }
 0x1f2   :  { %v1036_v17 = vld [vmem:[#allocation12 + $0xb40] sm:$0xff]  ;;  %v3392_v19 = vpack.c.bf16 %v1039_v10, %v1031_v8  ;;  %v1078_v8 = vld [vmem:[#allocation12 + $0xc90] sm:$0xff] }
 0x1f3   :  { %v1086_v10 = vld [vmem:[#allocation12 + $0xcd0] sm:$0xff] }
 0x1f4   :  { %3251 = vmatpush1.bf16.msra.mxu1 %v3250_v29  ;;  %3379 = vmatpush1.bf16.msra.mxu0 %v3378_v33  ;;  %v1047_v29 = vld [vmem:[#allocation12 + $0xb98] sm:$0xff] }
 0x1f5   :  { %3253 = vmatprep.subr.bf16.mxu1 %v3252_v36  ;;  %3381 = vmatprep.subr.bf16.mxu0 %v3380_v37  ;;  %v1055_v33 = vld [vmem:[#allocation12 + $0xbd8] sm:$0xff]  ;;  %v3266_v36 = vpack.c.bf16 %v1036_v17, %v1028_v16  ;;  %v3394_v37 = vpack.c.bf16 %v1038_v22, %v1030_v20  ;;  %v1092_v20 = vld [vmem:[#allocation12 + $0xd00] sm:$0xff] }
 0x1f6   :  { %v3396_v41 = vpack.c.bf16 %v1055_v33, %v1047_v29  ;;  %v1095_v16 = vld [vmem:[#allocation12 + $0xd18] sm:$0xff]  ;;  %v1100_v22 = vld [vmem:[#allocation12 + $0xd40] sm:$0xff]  ;;  %v1094_v29 = vld [vmem:[#allocation12 + $0xd10] sm:$0xff] }
 0x1f7   :  { %v1103_v17 = vld [vmem:[#allocation12 + $0xd58] sm:$0xff]  ;;  %v1102_v33 = vld [vmem:[#allocation12 + $0xd50] sm:$0xff] }
 0x1f8   :  { %3255 = vmatpush1.bf16.msra.mxu1 %v3254_v44  ;;  %3383 = vmatpush1.bf16.msra.mxu0 %v3382_v45  ;;  %v1061_v44 = vld [vmem:[#allocation12 + $0xc08] sm:$0xff]  ;;  %v3408_v26 = vpack.c.bf16 %v1103_v17, %v1095_v16  ;;  %v1150_v16 = vld [vmem:[#allocation12 + $0xed0] sm:$0xff] }
 0x1f9   :  { %3257 = vmatprep.subr.bf16.mxu1 %v3256_v48  ;;  %3385 = vmatprep.subr.bf16.mxu0 %v3384_v49  ;;  %v1069_v45 = vld [vmem:[#allocation12 + $0xc48] sm:$0xff]  ;;  %v3270_v48 = vpack.c.bf16 %v1052_v39, %v1044_v38  ;;  %v3398_v49 = vpack.c.bf16 %v1054_v43, %v1046_v42  ;;  %v1119_v38 = vld [vmem:[#allocation12 + $0xdd8] sm:$0xff]  ;;  %v3282_v39 = vpack.c.bf16 %v1100_v22, %v1092_v20  ;;  %v1116_v42 = vld [vmem:[#allocation12 + $0xdc0] sm:$0xff] }
 0x1fa   :  { %v3272_v52 = vpack.c.bf16 %v1069_v45, %v1061_v44  ;;  %v1110_v45 = vld [vmem:[#allocation12 + $0xd90] sm:$0xff]  ;;  %v1157_v17 = vld [vmem:[#allocation12 + $0xf08] sm:$0xff]  ;;  %v1167_v20 = vld [vmem:[#allocation12 + $0xf58] sm:$0xff] }
 0x1fc   :  { %3259 = vmatpush1.bf16.msra.mxu1 %v3258_v57  ;;  %3387 = vmatpush1.bf16.msra.mxu0 %v3386_v58  ;;  %v1077_v57 = vld [vmem:[#allocation12 + $0xc88] sm:$0xff] }
 0x1fd   :  { %3261 = vmatprep.subr.bf16.mxu1 %v3260_v62  ;;  %3389 = vmatprep.subr.bf16.mxu0 %v3388_v30  ;;  %v1085_v58 = vld [vmem:[#allocation12 + $0xcc8] sm:$0xff]  ;;  %v3274_v62 = vpack.c.bf16 %v1068_v51, %v1060_v50  ;;  %v3402_v30 = vpack.c.bf16 %v1070_v56, %v1062_v55  ;;  %v1135_v50 = vld [vmem:[#allocation12 + $0xe58] sm:$0xff]  ;;  %v1132_v55 = vld [vmem:[#allocation12 + $0xe40] sm:$0xff] }
 0x1fe   :  { %v3276_v2 = vpack.c.bf16 %v1085_v58, %v1077_v57  ;;  %v1126_v58 = vld [vmem:[#allocation12 + $0xe10] sm:$0xff] }
 0x200   :  { %3263 = vmatpush1.bf16.msra.mxu1 %v3262_v12  ;;  %3391 = vmatpush1.bf16.msra.mxu0 %v3390_v14  ;;  %v1093_v12 = vld [vmem:[#allocation12 + $0xd08] sm:$0xff] }
 0x201   :  { %3265 = vmatprep.subr.bf16.mxu1 %v3264_v18  ;;  %3393 = vmatprep.subr.bf16.mxu0 %v3392_v19  ;;  %v1101_v14 = vld [vmem:[#allocation12 + $0xd48] sm:$0xff]  ;;  %v3278_v18 = vpack.c.bf16 %v1084_v1, %v1076_v63  ;;  %v3406_v19 = vpack.c.bf16 %v1086_v10, %v1078_v8  ;;  %v1151_v63 = vld [vmem:[#allocation12 + $0xed8] sm:$0xff]  ;;  %v1148_v8 = vld [vmem:[#allocation12 + $0xec0] sm:$0xff] }
 0x202   :  { %v3280_v23 = vpack.c.bf16 %v1101_v14, %v1093_v12  ;;  %v1142_v14 = vld [vmem:[#allocation12 + $0xe90] sm:$0xff] }
 0x204   :  { %3267 = vmatpush1.bf16.msra.mxu1 %v3266_v36  ;;  %3395 = vmatpush1.bf16.msra.mxu0 %v3394_v37  ;;  %v1117_v36 = vld [vmem:[#allocation12 + $0xdc8] sm:$0xff]  ;;  %v1111_v37 = vld [vmem:[#allocation12 + $0xd98] sm:$0xff] }
 0x205   :  { %3269 = vmatprep.subr.bf16.mxu1 %v3268_v40  ;;  %3397 = vmatprep.subr.bf16.mxu0 %v3396_v41  ;;  %v3410_v40 = vpack.c.bf16 %v1102_v33, %v1094_v29  ;;  %v1108_v41 = vld [vmem:[#allocation12 + $0xd80] sm:$0xff]  ;;  %v3284_v43 = vpack.c.bf16 %v1117_v36, %v1109_v35  ;;  %v3412_v44 = vpack.c.bf16 %v1119_v38, %v1111_v37  ;;  %v1158_v36 = vld [vmem:[#allocation12 + $0xf10] sm:$0xff]  ;;  %v1173_v38 = vld [vmem:[#allocation12 + $0xf88] sm:$0xff] }
 0x206   :  { %v3286_v51 = vpack.c.bf16 %v1116_v42, %v1108_v41  ;;  %v1164_v29 = vld [vmem:[#allocation12 + $0xf40] sm:$0xff]  ;;  %v1166_v37 = vld [vmem:[#allocation12 + $0xf50] sm:$0xff]  ;;  %v1183_v41 = vld [vmem:[#allocation12 + $0xfd8] sm:$0xff] }
 0x208   :  { %3271 = vmatpush1.bf16.msra.mxu1 %v3270_v48  ;;  %3399 = vmatpush1.bf16.msra.mxu0 %v3398_v49  ;;  %v1133_v48 = vld [vmem:[#allocation12 + $0xe48] sm:$0xff]  ;;  %v1127_v49 = vld [vmem:[#allocation12 + $0xe18] sm:$0xff] }
 0x209   :  { %3273 = vmatprep.subr.bf16.mxu1 %v3272_v52  ;;  %3401 = vmatprep.subr.bf16.mxu0 %v3400_v53  ;;  %v3414_v52 = vpack.c.bf16 %v1118_v46, %v1110_v45  ;;  %v1124_v53 = vld [vmem:[#allocation12 + $0xe00] sm:$0xff]  ;;  %v3288_v56 = vpack.c.bf16 %v1133_v48, %v1125_v47  ;;  %v3416_v57 = vpack.c.bf16 %v1135_v50, %v1127_v49  ;;  %v1174_v48 = vld [vmem:[#allocation12 + $0xf90] sm:$0xff]  ;;  %v681_v50 = vld [vmem:[#allocation12 + $0x28] sm:$0xff] }
 0x20a   :  { %v3290_v1 = vpack.c.bf16 %v1132_v55, %v1124_v53  ;;  %v1180_v45 = vld [vmem:[#allocation12 + $0xfc0] sm:$0xff]  ;;  %v1182_v49 = vld [vmem:[#allocation12 + $0xfd0] sm:$0xff]  ;;  %v691_v53 = vld [vmem:[#allocation12 + $0x78] sm:$0xff] }
 0x20c   :  { %3275 = vmatpush1.bf16.msra.mxu1 %v3274_v62  ;;  %3403 = vmatpush1.bf16.msra.mxu0 %v3402_v30  ;;  %v1149_v62 = vld [vmem:[#allocation12 + $0xec8] sm:$0xff]  ;;  %v1143_v30 = vld [vmem:[#allocation12 + $0xe98] sm:$0xff] }
 0x20d   :  { %3277 = vmatprep.subr.bf16.mxu1 %v3276_v2  ;;  %3405 = vmatprep.subr.bf16.mxu0 %v3404_v3  ;;  %v3418_v2 = vpack.c.bf16 %v1134_v60, %v1126_v58  ;;  %v1140_v3 = vld [vmem:[#allocation12 + $0xe80] sm:$0xff]  ;;  %v3292_v10 = vpack.c.bf16 %v1149_v62, %v1141_v61  ;;  %v3420_v12 = vpack.c.bf16 %v1151_v63, %v1143_v30  ;;  %v682_v62 = vld [vmem:[#allocation12 + $0x30] sm:$0xff]  ;;  %v697_v63 = vld [vmem:[#allocation12 + $0xa8] sm:$0xff] }
 0x20e   :  { %v3294_v22 = vpack.c.bf16 %v1148_v8, %v1140_v3  ;;  %v680_v60 = vld [vmem:[#allocation12 + $0x20] sm:$0xff]  ;;  %v690_v30 = vld [vmem:[#allocation12 + $0x70] sm:$0xff]  ;;  %v707_v3 = vld [vmem:[#allocation12 + $0xf8] sm:$0xff] }
 0x20f   :  { %v688_v61 = vld [vmem:[#allocation12 + $0x60] sm:$0xff] }
 0x210   :  { %3279 = vmatpush1.bf16.msra.mxu1 %v3278_v18  ;;  %3407 = vmatpush1.bf16.msra.mxu0 %v3406_v19  ;;  %v1165_v18 = vld [vmem:[#allocation12 + $0xf48] sm:$0xff]  ;;  %v1159_v19 = vld [vmem:[#allocation12 + $0xf18] sm:$0xff]  ;;  %v3434_v8 = vpack.c.bf16 %v688_v61, %v680_v60  ;;  %v752_v60 = vld [vmem:[#allocation12 + $0x260] sm:$0xff] }
 0x211   :  { %3281 = vmatprep.subr.bf16.mxu1 %v3280_v23  ;;  %3409 = vmatprep.subr.bf16.mxu0 %v3408_v26  ;;  %v3422_v23 = vpack.c.bf16 %v1150_v16, %v1142_v14  ;;  %v1156_v26 = vld [vmem:[#allocation12 + $0xf00] sm:$0xff]  ;;  %v3296_v33 = vpack.c.bf16 %v1165_v18, %v1157_v17  ;;  %v3424_v35 = vpack.c.bf16 %v1167_v20, %v1159_v19  ;;  %v698_v17 = vld [vmem:[#allocation12 + $0xb0] sm:$0xff] }
 0x212   :  { %v3298_v42 = vpack.c.bf16 %v1164_v29, %v1156_v26  ;;  %v696_v14 = vld [vmem:[#allocation12 + $0xa0] sm:$0xff]  ;;  %v706_v20 = vld [vmem:[#allocation12 + $0xf0] sm:$0xff]  ;;  %v715_v26 = vld [vmem:[#allocation12 + $0x138] sm:$0xff] }
 0x213   :  { %v704_v16 = vld [vmem:[#allocation12 + $0xe0] sm:$0xff]  ;;  %v723_v29 = vld [vmem:[#allocation12 + $0x178] sm:$0xff]  ;;  %v3566_v25 = vpack.c.bf16 %v706_v20, %v698_v17  ;;  %v746_v61 = vld [vmem:[#allocation12 + $0x230] sm:$0xff] }
 0x214   :  { %3283 = vmatpush1.bf16.msra.mxu1 %v3282_v39  ;;  %3411 = vmatpush1.bf16.msra.mxu0 %v3410_v40  ;;  %v1181_v39 = vld [vmem:[#allocation12 + $0xfc8] sm:$0xff]  ;;  %v1175_v40 = vld [vmem:[#allocation12 + $0xf98] sm:$0xff]  ;;  %v3438_v21 = vpack.c.bf16 %v704_v16, %v696_v14  ;;  %v760_v16 = vld [vmem:[#allocation12 + $0x2a0] sm:$0xff] }
 0x215   :  { %3285 = vmatprep.subr.bf16.mxu1 %v3284_v43  ;;  %3413 = vmatprep.subr.bf16.mxu0 %v3412_v44  ;;  %v3426_v43 = vpack.c.bf16 %v1166_v37, %v1158_v36  ;;  %v1172_v44 = vld [vmem:[#allocation12 + $0xf80] sm:$0xff]  ;;  %v3300_v46 = vpack.c.bf16 %v1181_v39, %v1173_v38  ;;  %v3428_v47 = vpack.c.bf16 %v1183_v41, %v1175_v40  ;;  %v714_v36 = vld [vmem:[#allocation12 + $0x130] sm:$0xff]  ;;  %v729_v39 = vld [vmem:[#allocation12 + $0x1a8] sm:$0xff] }
 0x216   :  { %v3302_v55 = vpack.c.bf16 %v1180_v45, %v1172_v44  ;;  %v3568_v37 = vpack.c.bf16 %v723_v29, %v715_v26  ;;  %v722_v38 = vld [vmem:[#allocation12 + $0x170] sm:$0xff]  ;;  %v737_v40 = vld [vmem:[#allocation12 + $0x1e8] sm:$0xff]  ;;  %v731_v41 = vld [vmem:[#allocation12 + $0x1b8] sm:$0xff] }
 0x217   :  { %v3570_v44 = vpack.c.bf16 %v722_v38, %v714_v36  ;;  %v3444_v45 = vpack.c.bf16 %v737_v40, %v729_v39  ;;  %v768_v17 = vld [vmem:[#allocation12 + $0x2e0] sm:$0xff]  ;;  %v770_v20 = vld [vmem:[#allocation12 + $0x2f0] sm:$0xff]  ;;  %v779_v26 = vld [vmem:[#allocation12 + $0x338] sm:$0xff] }
 0x218   :  { %3287 = vmatpush1.bf16.msra.mxu1 %v3286_v51  ;;  %3415 = vmatpush1.bf16.msra.mxu0 %v3414_v52  ;;  %v689_v51 = vld [vmem:[#allocation12 + $0x68] sm:$0xff]  ;;  %v683_v52 = vld [vmem:[#allocation12 + $0x38] sm:$0xff]  ;;  %v778_v36 = vld [vmem:[#allocation12 + $0x330] sm:$0xff] }
 0x219   :  { %3289 = vmatprep.subr.bf16.mxu1 %v3288_v56  ;;  %3417 = vmatprep.subr.bf16.mxu0 %v3416_v57  ;;  %v3430_v56 = vpack.c.bf16 %v1182_v49, %v1174_v48  ;;  %v3432_v57 = vpack.c.bf16 %v689_v51, %v681_v50  ;;  %v3560_v58 = vpack.c.bf16 %v691_v53, %v683_v52  ;;  %v738_v49 = vld [vmem:[#allocation12 + $0x1f0] sm:$0xff]  ;;  %v745_v50 = vld [vmem:[#allocation12 + $0x228] sm:$0xff]  ;;  %v747_v52 = vld [vmem:[#allocation12 + $0x238] sm:$0xff] }
 0x21a   :  { %v753_v51 = vld [vmem:[#allocation12 + $0x268] sm:$0xff]  ;;  %v755_v53 = vld [vmem:[#allocation12 + $0x278] sm:$0xff]  ;;  %v786_v38 = vld [vmem:[#allocation12 + $0x370] sm:$0xff] }
 0x21b   :  { %v787_v29 = vld [vmem:[#allocation12 + $0x378] sm:$0xff]  ;;  %v793_v39 = vld [vmem:[#allocation12 + $0x3a8] sm:$0xff] }
 0x21c   :  { %3291 = vmatpush1.bf16.msra.mxu1 %v3290_v1  ;;  %3419 = vmatpush1.bf16.msra.mxu0 %v3418_v2  ;;  %v705_v1 = vld [vmem:[#allocation12 + $0xe8] sm:$0xff]  ;;  %v699_v2 = vld [vmem:[#allocation12 + $0xb8] sm:$0xff] }
 0x21d   :  { %3293 = vmatprep.subr.bf16.mxu1 %v3292_v10  ;;  %3421 = vmatprep.subr.bf16.mxu0 %v3420_v12  ;;  %v4516_v10 = vmax.f32 %v670_v32, 0.0  ;;  %v3562_v12 = vpack.c.bf16 %v690_v30, %v682_v62  ;;  %v3436_v18 = vpack.c.bf16 %v705_v1, %v697_v63  ;;  %v3564_v19 = vpack.c.bf16 %v707_v3, %v699_v2  ;;  %v754_v30 = vld [vmem:[#allocation12 + $0x270] sm:$0xff]  ;;  %v761_v63 = vld [vmem:[#allocation12 + $0x2a8] sm:$0xff]  ;;  %v763_v2 = vld [vmem:[#allocation12 + $0x2b8] sm:$0xff] }
 0x21e   :  { %v3576_v62 = vpack.c.bf16 %v755_v53, %v747_v52  ;;  %v769_v1 = vld [vmem:[#allocation12 + $0x2e8] sm:$0xff]  ;;  %v771_v3 = vld [vmem:[#allocation12 + $0x2f8] sm:$0xff] }
 0x21f   :  { %v3452_v14 = vpack.c.bf16 %v769_v1, %v761_v63  ;;  %v801_v40 = vld [vmem:[#allocation12 + $0x3e8] sm:$0xff]  ;;  %v811_v52 = vld [vmem:[#allocation12 + $0x438] sm:$0xff] }
 0x220   :  { %3295 = vmatpush1.bf16.msra.mxu1 %v3294_v22  ;;  %3423 = vmatpush1.bf16.msra.mxu0 %v3422_v23  ;;  %v713_v22 = vld [vmem:[#allocation12 + $0x128] sm:$0xff]  ;;  %v819_v53 = vld [vmem:[#allocation12 + $0x478] sm:$0xff] }
 0x221   :  { %3297 = vmatprep.subr.bf16.mxu1 %v3296_v33  ;;  %3425 = vmatprep.subr.bf16.mxu0 %v3424_v35  ;;  %v721_v23 = vld [vmem:[#allocation12 + $0x168] sm:$0xff]  ;;  %v712_v33 = vld [vmem:[#allocation12 + $0x120] sm:$0xff] }
 0x222   :  { %v3440_v32 = vpack.c.bf16 %v721_v23, %v713_v22  ;;  %v720_v35 = vld [vmem:[#allocation12 + $0x160] sm:$0xff]  ;;  %v777_v22 = vld [vmem:[#allocation12 + $0x328] sm:$0xff] }
 0x223   :  { %v785_v23 = vld [vmem:[#allocation12 + $0x368] sm:$0xff] }
 0x224   :  { %3299 = vmatpush1.bf16.msra.mxu1 %v3298_v42  ;;  %3427 = vmatpush1.bf16.msra.mxu0 %v3426_v43  ;;  %v739_v42 = vld [vmem:[#allocation12 + $0x1f8] sm:$0xff]  ;;  %v3442_v43 = vpack.c.bf16 %v720_v35, %v712_v33  ;;  %v776_v33 = vld [vmem:[#allocation12 + $0x320] sm:$0xff]  ;;  %v825_v63 = vld [vmem:[#allocation12 + $0x4a8] sm:$0xff] }
 0x225   :  { %3301 = vmatprep.subr.bf16.mxu1 %v3300_v46  ;;  %3429 = vmatprep.subr.bf16.mxu0 %v3428_v47  ;;  %v736_v46 = vld [vmem:[#allocation12 + $0x1e0] sm:$0xff]  ;;  %v730_v47 = vld [vmem:[#allocation12 + $0x1b0] sm:$0xff]  ;;  %v3572_v48 = vpack.c.bf16 %v739_v42, %v731_v41  ;;  %v795_v41 = vld [vmem:[#allocation12 + $0x3b8] sm:$0xff] }
 0x226   :  { %v784_v35 = vld [vmem:[#allocation12 + $0x360] sm:$0xff]  ;;  %v803_v42 = vld [vmem:[#allocation12 + $0x3f8] sm:$0xff]  ;;  %v833_v1 = vld [vmem:[#allocation12 + $0x4e8] sm:$0xff] }
 0x228   :  { %3303 = vmatpush1.bf16.msra.mxu1 %v3302_v55  ;;  %3431 = vmatpush1.bf16.msra.mxu0 %v3430_v56  ;;  %v3574_v56 = vpack.c.bf16 %v738_v49, %v730_v47  ;;  %v794_v47 = vld [vmem:[#allocation12 + $0x3b0] sm:$0xff] }
 0x229   :  { %3433 = vmatprep.subr.bf16.mxu1 %v3432_v57  ;;  %3561 = vmatprep.subr.bf16.mxu0 %v3560_v58  ;;  %v3448_v57 = vpack.c.bf16 %v753_v51, %v745_v50  ;;  %v744_v58 = vld [vmem:[#allocation12 + $0x220] sm:$0xff]  ;;  %v802_v49 = vld [vmem:[#allocation12 + $0x3f0] sm:$0xff]  ;;  %v809_v50 = vld [vmem:[#allocation12 + $0x428] sm:$0xff] }
 0x22a   :  { %v817_v51 = vld [vmem:[#allocation12 + $0x468] sm:$0xff] }
 0x22b   :  { %1366 = vmatmul.mubr.f32.vlgmr.msra.gmra.mrb[2].mxu1 %v4516_v10  ;;  %1508 = vmatmul.mubr.f32.vlgmr.msra.gmra.mrb[8].mxu0 %v4516_v10 }
 0x22c   :  { %3435 = vmatpush1.bf16.msra.mxu1 %v3434_v8  ;;  %1578 = vmatprep.mubr.f32.mxu1 %v4499_v54  ;;  %v3450_v8 = vpack.c.bf16 %v752_v60, %v744_v58  ;;  %v808_v58 = vld [vmem:[#allocation12 + $0x420] sm:$0xff] }
 0x22d   :  { %3563 = vmatpush1.bf16.msra.mxu0 %v3562_v12  ;;  %1720 = vmatprep.mubr.f32.mxu0 %v4499_v54  ;;  %v728_v54 = vld [vmem:[#allocation12 + $0x1a0] sm:$0xff]  ;;  %v3578_v12 = vpack.c.bf16 %v754_v30, %v746_v61  ;;  %v810_v61 = vld [vmem:[#allocation12 + $0x430] sm:$0xff] }
 0x22e   :  { %3437 = vmatprep.subr.bf16.mxu1 %v3436_v18  ;;  %3565 = vmatprep.subr.bf16.mxu0 %v3564_v19  ;;  %v3446_v55 = vpack.c.bf16 %v736_v46, %v728_v54  ;;  %v762_v18 = vld [vmem:[#allocation12 + $0x2b0] sm:$0xff]  ;;  %v3580_v19 = vpack.c.bf16 %v771_v3, %v763_v2  ;;  %v792_v54 = vld [vmem:[#allocation12 + $0x3a0] sm:$0xff]  ;;  %v827_v2 = vld [vmem:[#allocation12 + $0x4b8] sm:$0xff] }
 0x22f   :  { %v800_v46 = vld [vmem:[#allocation12 + $0x3e0] sm:$0xff]  ;;  %v818_v30 = vld [vmem:[#allocation12 + $0x470] sm:$0xff]  ;;  %v835_v3 = vld [vmem:[#allocation12 + $0x4f8] sm:$0xff] }
 0x230   :  { %3439 = vmatpush1.bf16.msra.mxu1 %v3438_v21  ;;  %v3454_v21 = vpack.c.bf16 %v768_v17, %v760_v16  ;;  %v816_v60 = vld [vmem:[#allocation12 + $0x460] sm:$0xff] }
 0x231   :  { %3567 = vmatpush1.bf16.msra.mxu0 %v3566_v25  ;;  %3441 = vmatprep.subr.bf16.mxu1 %v3440_v32  ;;  %v3582_v25 = vpack.c.bf16 %v770_v20, %v762_v18  ;;  %v3456_v32 = vpack.c.bf16 %v785_v23, %v777_v22  ;;  %v824_v16 = vld [vmem:[#allocation12 + $0x4a0] sm:$0xff]  ;;  %v826_v18 = vld [vmem:[#allocation12 + $0x4b0] sm:$0xff]  ;;  %v841_v22 = vld [vmem:[#allocation12 + $0x528] sm:$0xff] }
 0x232   :  { %3569 = vmatprep.subr.bf16.mxu0 %v3568_v37  ;;  %v3584_v37 = vpack.c.bf16 %v787_v29, %v779_v26  ;;  %v832_v17 = vld [vmem:[#allocation12 + $0x4e0] sm:$0xff]  ;;  %v834_v20 = vld [vmem:[#allocation12 + $0x4f0] sm:$0xff]  ;;  %v849_v23 = vld [vmem:[#allocation12 + $0x568] sm:$0xff] }
 0x233   :  { %v843_v26 = vld [vmem:[#allocation12 + $0x538] sm:$0xff] }
 0x234   :  { %3443 = vmatpush1.bf16.msra.mxu1 %v3442_v43  ;;  %v3458_v43 = vpack.c.bf16 %v784_v35, %v776_v33  ;;  %v851_v29 = vld [vmem:[#allocation12 + $0x578] sm:$0xff]  ;;  %v840_v33 = vld [vmem:[#allocation12 + $0x520] sm:$0xff] }
 0x235   :  { %3571 = vmatpush1.bf16.msra.mxu0 %v3570_v44  ;;  %3445 = vmatprep.subr.bf16.mxu1 %v3444_v45  ;;  %v3586_v44 = vpack.c.bf16 %v786_v38, %v778_v36  ;;  %v3460_v45 = vpack.c.bf16 %v801_v40, %v793_v39  ;;  %v848_v35 = vld [vmem:[#allocation12 + $0x560] sm:$0xff]  ;;  %v842_v36 = vld [vmem:[#allocation12 + $0x530] sm:$0xff]  ;;  %v857_v39 = vld [vmem:[#allocation12 + $0x5a8] sm:$0xff] }
 0x236   :  { %3573 = vmatprep.subr.bf16.mxu0 %v3572_v48  ;;  %v3588_v48 = vpack.c.bf16 %v803_v42, %v795_v41  ;;  %v850_v38 = vld [vmem:[#allocation12 + $0x570] sm:$0xff]  ;;  %v865_v40 = vld [vmem:[#allocation12 + $0x5e8] sm:$0xff]  ;;  %v859_v41 = vld [vmem:[#allocation12 + $0x5b8] sm:$0xff] }
 0x237   :  { %v867_v42 = vld [vmem:[#allocation12 + $0x5f8] sm:$0xff] }
 0x238   :  { %3447 = vmatpush1.bf16.msra.mxu1 %v3446_v55  ;;  %v3462_v55 = vpack.c.bf16 %v800_v46, %v792_v54  ;;  %v856_v54 = vld [vmem:[#allocation12 + $0x5a0] sm:$0xff] }
 0x239   :  { %3575 = vmatpush1.bf16.msra.mxu0 %v3574_v56  ;;  %3449 = vmatprep.subr.bf16.mxu1 %v3448_v57  ;;  %v3590_v56 = vpack.c.bf16 %v802_v49, %v794_v47  ;;  %v3464_v57 = vpack.c.bf16 %v817_v51, %v809_v50  ;;  %v864_v46 = vld [vmem:[#allocation12 + $0x5e0] sm:$0xff]  ;;  %v858_v47 = vld [vmem:[#allocation12 + $0x5b0] sm:$0xff]  ;;  %v873_v50 = vld [vmem:[#allocation12 + $0x628] sm:$0xff] }
 0x23a   :  { %3577 = vmatprep.subr.bf16.mxu0 %v3576_v62  ;;  %v3592_v62 = vpack.c.bf16 %v819_v53, %v811_v52  ;;  %v866_v49 = vld [vmem:[#allocation12 + $0x5f0] sm:$0xff]  ;;  %v881_v51 = vld [vmem:[#allocation12 + $0x668] sm:$0xff]  ;;  %v875_v52 = vld [vmem:[#allocation12 + $0x638] sm:$0xff] }
 0x23b   :  { %v883_v53 = vld [vmem:[#allocation12 + $0x678] sm:$0xff] }
 0x23c   :  { %3451 = vmatpush1.bf16.msra.mxu1 %v3450_v8  ;;  %v3466_v8 = vpack.c.bf16 %v816_v60, %v808_v58  ;;  %v872_v58 = vld [vmem:[#allocation12 + $0x620] sm:$0xff] }
 0x23d   :  { %3579 = vmatpush1.bf16.msra.mxu0 %v3578_v12  ;;  %3453 = vmatprep.subr.bf16.mxu1 %v3452_v14  ;;  %v3594_v12 = vpack.c.bf16 %v818_v30, %v810_v61  ;;  %v3468_v14 = vpack.c.bf16 %v833_v1, %v825_v63  ;;  %v880_v60 = vld [vmem:[#allocation12 + $0x660] sm:$0xff]  ;;  %v874_v61 = vld [vmem:[#allocation12 + $0x630] sm:$0xff]  ;;  %v889_v63 = vld [vmem:[#allocation12 + $0x6a8] sm:$0xff] }
 0x23e   :  { %3581 = vmatprep.subr.bf16.mxu0 %v3580_v19  ;;  %v3596_v19 = vpack.c.bf16 %v835_v3, %v827_v2  ;;  %v882_v30 = vld [vmem:[#allocation12 + $0x670] sm:$0xff]  ;;  %v897_v1 = vld [vmem:[#allocation12 + $0x6e8] sm:$0xff]  ;;  %v891_v2 = vld [vmem:[#allocation12 + $0x6b8] sm:$0xff] }
 0x23f   :  { %v899_v3 = vld [vmem:[#allocation12 + $0x6f8] sm:$0xff] }
 0x240   :  { %3455 = vmatpush1.bf16.msra.mxu1 %v3454_v21  ;;  %v3470_v21 = vpack.c.bf16 %v832_v17, %v824_v16  ;;  %v888_v16 = vld [vmem:[#allocation12 + $0x6a0] sm:$0xff] }
 0x241   :  { %3583 = vmatpush1.bf16.msra.mxu0 %v3582_v25  ;;  %3457 = vmatprep.subr.bf16.mxu1 %v3456_v32  ;;  %v3598_v25 = vpack.c.bf16 %v834_v20, %v826_v18  ;;  %v3472_v32 = vpack.c.bf16 %v849_v23, %v841_v22  ;;  %v896_v17 = vld [vmem:[#allocation12 + $0x6e0] sm:$0xff]  ;;  %v890_v18 = vld [vmem:[#allocation12 + $0x6b0] sm:$0xff]  ;;  %v905_v22 = vld [vmem:[#allocation12 + $0x728] sm:$0xff] }
 0x242   :  { %3585 = vmatprep.subr.bf16.mxu0 %v3584_v37  ;;  %v3600_v37 = vpack.c.bf16 %v851_v29, %v843_v26  ;;  %v898_v20 = vld [vmem:[#allocation12 + $0x6f0] sm:$0xff]  ;;  %v913_v23 = vld [vmem:[#allocation12 + $0x768] sm:$0xff]  ;;  %v907_v26 = vld [vmem:[#allocation12 + $0x738] sm:$0xff] }
 0x243   :  { %v915_v29 = vld [vmem:[#allocation12 + $0x778] sm:$0xff] }
 0x244   :  { %3459 = vmatpush1.bf16.msra.mxu1 %v3458_v43  ;;  %v3474_v43 = vpack.c.bf16 %v848_v35, %v840_v33  ;;  %v904_v33 = vld [vmem:[#allocation12 + $0x720] sm:$0xff] }
 0x245   :  { %3587 = vmatpush1.bf16.msra.mxu0 %v3586_v44  ;;  %3461 = vmatprep.subr.bf16.mxu1 %v3460_v45  ;;  %v3602_v44 = vpack.c.bf16 %v850_v38, %v842_v36  ;;  %v3476_v45 = vpack.c.bf16 %v865_v40, %v857_v39  ;;  %v912_v35 = vld [vmem:[#allocation12 + $0x760] sm:$0xff]  ;;  %v906_v36 = vld [vmem:[#allocation12 + $0x730] sm:$0xff]  ;;  %v921_v39 = vld [vmem:[#allocation12 + $0x7a8] sm:$0xff] }
 0x246   :  { %3589 = vmatprep.subr.bf16.mxu0 %v3588_v48  ;;  %v3604_v48 = vpack.c.bf16 %v867_v42, %v859_v41  ;;  %v914_v38 = vld [vmem:[#allocation12 + $0x770] sm:$0xff]  ;;  %v929_v40 = vld [vmem:[#allocation12 + $0x7e8] sm:$0xff]  ;;  %v923_v41 = vld [vmem:[#allocation12 + $0x7b8] sm:$0xff] }
 0x247   :  { %v931_v42 = vld [vmem:[#allocation12 + $0x7f8] sm:$0xff] }
 0x248   :  { %3463 = vmatpush1.bf16.msra.mxu1 %v3462_v55  ;;  %v3478_v55 = vpack.c.bf16 %v864_v46, %v856_v54  ;;  %v920_v54 = vld [vmem:[#allocation12 + $0x7a0] sm:$0xff] }
 0x249   :  { %3591 = vmatpush1.bf16.msra.mxu0 %v3590_v56  ;;  %3465 = vmatprep.subr.bf16.mxu1 %v3464_v57  ;;  %v3606_v56 = vpack.c.bf16 %v866_v49, %v858_v47  ;;  %v3480_v57 = vpack.c.bf16 %v881_v51, %v873_v50  ;;  %v928_v46 = vld [vmem:[#allocation12 + $0x7e0] sm:$0xff]  ;;  %v922_v47 = vld [vmem:[#allocation12 + $0x7b0] sm:$0xff]  ;;  %v937_v50 = vld [vmem:[#allocation12 + $0x828] sm:$0xff] }
 0x24a   :  { %3593 = vmatprep.subr.bf16.mxu0 %v3592_v62  ;;  %v3608_v62 = vpack.c.bf16 %v883_v53, %v875_v52  ;;  %v930_v49 = vld [vmem:[#allocation12 + $0x7f0] sm:$0xff]  ;;  %v945_v51 = vld [vmem:[#allocation12 + $0x868] sm:$0xff]  ;;  %v939_v52 = vld [vmem:[#allocation12 + $0x838] sm:$0xff] }
 0x24b   :  { %v947_v53 = vld [vmem:[#allocation12 + $0x878] sm:$0xff] }
 0x24c   :  { %3467 = vmatpush1.bf16.msra.mxu1 %v3466_v8  ;;  %v3482_v8 = vpack.c.bf16 %v880_v60, %v872_v58  ;;  %v936_v58 = vld [vmem:[#allocation12 + $0x820] sm:$0xff] }
 0x24d   :  { %3595 = vmatpush1.bf16.msra.mxu0 %v3594_v12  ;;  %3469 = vmatprep.subr.bf16.mxu1 %v3468_v14  ;;  %v3610_v12 = vpack.c.bf16 %v882_v30, %v874_v61  ;;  %v3484_v14 = vpack.c.bf16 %v897_v1, %v889_v63  ;;  %v944_v60 = vld [vmem:[#allocation12 + $0x860] sm:$0xff]  ;;  %v3624_v61 = vpack.c.bf16 %v947_v53, %v939_v52  ;;  %v946_v30 = vld [vmem:[#allocation12 + $0x870] sm:$0xff]  ;;  %v953_v63 = vld [vmem:[#allocation12 + $0x8a8] sm:$0xff] }
 0x24e   :  { %3597 = vmatprep.subr.bf16.mxu0 %v3596_v19  ;;  %v3612_v19 = vpack.c.bf16 %v899_v3, %v891_v2  ;;  %v961_v1 = vld [vmem:[#allocation12 + $0x8e8] sm:$0xff]  ;;  %v3498_v2 = vpack.c.bf16 %v944_v60, %v936_v58  ;;  %v955_v3 = vld [vmem:[#allocation12 + $0x8b8] sm:$0xff]  ;;  %v1002_v58 = vld [vmem:[#allocation12 + $0xa30] sm:$0xff] }
 0x250   :  { %3471 = vmatpush1.bf16.msra.mxu1 %v3470_v21  ;;  %v3486_v21 = vpack.c.bf16 %v896_v17, %v888_v16  ;;  %v960_v16 = vld [vmem:[#allocation12 + $0x8e0] sm:$0xff]  ;;  %v954_v17 = vld [vmem:[#allocation12 + $0x8b0] sm:$0xff] }
 0x251   :  { %3599 = vmatpush1.bf16.msra.mxu0 %v3598_v25  ;;  %3473 = vmatprep.subr.bf16.mxu1 %v3472_v32  ;;  %v3614_v25 = vpack.c.bf16 %v898_v20, %v890_v18  ;;  %v3488_v32 = vpack.c.bf16 %v913_v23, %v905_v22  ;;  %v3500_v18 = vpack.c.bf16 %v961_v1, %v953_v63  ;;  %v969_v20 = vld [vmem:[#allocation12 + $0x928] sm:$0xff]  ;;  %v1019_v63 = vld [vmem:[#allocation12 + $0xab8] sm:$0xff] }
 0x252   :  { %3601 = vmatprep.subr.bf16.mxu0 %v3600_v37  ;;  %v3616_v37 = vpack.c.bf16 %v915_v29, %v907_v26  ;;  %v977_v22 = vld [vmem:[#allocation12 + $0x968] sm:$0xff]  ;;  %v971_v26 = vld [vmem:[#allocation12 + $0x938] sm:$0xff] }
 0x253   :  { %v979_v29 = vld [vmem:[#allocation12 + $0x978] sm:$0xff] }
 0x254   :  { %3475 = vmatpush1.bf16.msra.mxu1 %v3474_v43  ;;  %v3490_v43 = vpack.c.bf16 %v912_v35, %v904_v33  ;;  %v968_v33 = vld [vmem:[#allocation12 + $0x920] sm:$0xff]  ;;  %v1027_v1 = vld [vmem:[#allocation12 + $0xaf8] sm:$0xff] }
 0x255   :  { %3603 = vmatpush1.bf16.msra.mxu0 %v3602_v44  ;;  %3477 = vmatprep.subr.bf16.mxu1 %v3476_v45  ;;  %v3618_v44 = vpack.c.bf16 %v914_v38, %v906_v36  ;;  %v3492_v45 = vpack.c.bf16 %v929_v40, %v921_v39  ;;  %v976_v35 = vld [vmem:[#allocation12 + $0x960] sm:$0xff]  ;;  %v970_v36 = vld [vmem:[#allocation12 + $0x930] sm:$0xff]  ;;  %v985_v39 = vld [vmem:[#allocation12 + $0x9a8] sm:$0xff] }
 0x256   :  { %3605 = vmatprep.subr.bf16.mxu0 %v3604_v48  ;;  %v3620_v48 = vpack.c.bf16 %v931_v42, %v923_v41  ;;  %v978_v38 = vld [vmem:[#allocation12 + $0x970] sm:$0xff]  ;;  %v993_v40 = vld [vmem:[#allocation12 + $0x9e8] sm:$0xff]  ;;  %v987_v41 = vld [vmem:[#allocation12 + $0x9b8] sm:$0xff]  ;;  %v3506_v42 = vpack.c.bf16 %v976_v35, %v968_v33 }
 0x257   :  { %v1034_v33 = vld [vmem:[#allocation12 + $0xb30] sm:$0xff] }
 0x258   :  { %3479 = vmatpush1.bf16.msra.mxu1 %v3478_v55  ;;  %v3494_v55 = vpack.c.bf16 %v928_v46, %v920_v54  ;;  %v992_v54 = vld [vmem:[#allocation12 + $0x9e0] sm:$0xff]  ;;  %v986_v46 = vld [vmem:[#allocation12 + $0x9b0] sm:$0xff] }
 0x259   :  { %3607 = vmatpush1.bf16.msra.mxu0 %v3606_v56  ;;  %3481 = vmatprep.subr.bf16.mxu1 %v3480_v57  ;;  %v3622_v56 = vpack.c.bf16 %v930_v49, %v922_v47  ;;  %v3496_v57 = vpack.c.bf16 %v945_v51, %v937_v50  ;;  %v1009_v49 = vld [vmem:[#allocation12 + $0xa68] sm:$0xff]  ;;  %v1003_v50 = vld [vmem:[#allocation12 + $0xa38] sm:$0xff] }
 0x25a   :  { %3609 = vmatprep.subr.bf16.mxu0 %v3608_v62  ;;  %v938_v62 = vld [vmem:[#allocation12 + $0x830] sm:$0xff]  ;;  %v1011_v51 = vld [vmem:[#allocation12 + $0xa78] sm:$0xff] }
 0x25b   :  { %v3640_v60 = vpack.c.bf16 %v1011_v51, %v1003_v50 }
 0x25c   :  { %3483 = vmatpush1.bf16.msra.mxu1 %v3482_v8  ;;  %v963_v8 = vld [vmem:[#allocation12 + $0x8f8] sm:$0xff] }
 0x25d   :  { %3611 = vmatpush1.bf16.msra.mxu0 %v3610_v12  ;;  %3485 = vmatprep.subr.bf16.mxu1 %v3484_v14  ;;  %v3626_v12 = vpack.c.bf16 %v946_v30, %v938_v62  ;;  %v952_v14 = vld [vmem:[#allocation12 + $0x8a0] sm:$0xff]  ;;  %v3628_v23 = vpack.c.bf16 %v963_v8, %v955_v3  ;;  %v1017_v62 = vld [vmem:[#allocation12 + $0xaa8] sm:$0xff] }
 0x25e   :  { %3613 = vmatprep.subr.bf16.mxu0 %v3612_v19  ;;  %v962_v19 = vld [vmem:[#allocation12 + $0x8f0] sm:$0xff]  ;;  %v1025_v30 = vld [vmem:[#allocation12 + $0xae8] sm:$0xff] }
 0x25f   :  { %v3516_v8 = vpack.c.bf16 %v1025_v30, %v1017_v62  ;;  %v1083_v62 = vld [vmem:[#allocation12 + $0xcb8] sm:$0xff] }
 0x260   :  { %3487 = vmatpush1.bf16.msra.mxu1 %v3486_v21  ;;  %v3502_v21 = vpack.c.bf16 %v960_v16, %v952_v14  ;;  %v1024_v14 = vld [vmem:[#allocation12 + $0xae0] sm:$0xff]  ;;  %v1018_v16 = vld [vmem:[#allocation12 + $0xab0] sm:$0xff]  ;;  %v1091_v30 = vld [vmem:[#allocation12 + $0xcf8] sm:$0xff] }
 0x261   :  { %3615 = vmatpush1.bf16.msra.mxu0 %v3614_v25  ;;  %3489 = vmatprep.subr.bf16.mxu1 %v3488_v32  ;;  %v3630_v25 = vpack.c.bf16 %v962_v19, %v954_v17  ;;  %v3504_v32 = vpack.c.bf16 %v977_v22, %v969_v20  ;;  %v3644_v17 = vpack.c.bf16 %v1027_v1, %v1019_v63  ;;  %v1033_v19 = vld [vmem:[#allocation12 + $0xb28] sm:$0xff]  ;;  %v1035_v22 = vld [vmem:[#allocation12 + $0xb38] sm:$0xff] }
 0x262   :  { %3617 = vmatprep.subr.bf16.mxu0 %v3616_v37  ;;  %v3632_v37 = vpack.c.bf16 %v979_v29, %v971_v26  ;;  %v1041_v20 = vld [vmem:[#allocation12 + $0xb68] sm:$0xff] }
 0x264   :  { %3491 = vmatpush1.bf16.msra.mxu1 %v3490_v43  ;;  %v3634_v43 = vpack.c.bf16 %v978_v38, %v970_v36  ;;  %v1042_v36 = vld [vmem:[#allocation12 + $0xb70] sm:$0xff]  ;;  %v1057_v38 = vld [vmem:[#allocation12 + $0xbe8] sm:$0xff] }
 0x265   :  { %3619 = vmatpush1.bf16.msra.mxu0 %v3618_v44  ;;  %3493 = vmatprep.subr.bf16.mxu1 %v3492_v45  ;;  %v3508_v44 = vpack.c.bf16 %v993_v40, %v985_v39  ;;  %v984_v45 = vld [vmem:[#allocation12 + $0x9a0] sm:$0xff]  ;;  %v1051_v39 = vld [vmem:[#allocation12 + $0xbb8] sm:$0xff] }
 0x266   :  { %3621 = vmatprep.subr.bf16.mxu0 %v3620_v48  ;;  %v1001_v48 = vld [vmem:[#allocation12 + $0xa28] sm:$0xff]  ;;  %v3510_v52 = vpack.c.bf16 %v992_v54, %v984_v45  ;;  %v1059_v40 = vld [vmem:[#allocation12 + $0xbf8] sm:$0xff]  ;;  %v1050_v45 = vld [vmem:[#allocation12 + $0xbb0] sm:$0xff] }
 0x267   :  { %v3652_v54 = vpack.c.bf16 %v1059_v40, %v1051_v39 }
 0x268   :  { %3495 = vmatpush1.bf16.msra.mxu1 %v3494_v55  ;;  %v3512_v55 = vpack.c.bf16 %v1009_v49, %v1001_v48  ;;  %v1067_v48 = vld [vmem:[#allocation12 + $0xc38] sm:$0xff] }
 0x269   :  { %3623 = vmatpush1.bf16.msra.mxu0 %v3622_v56  ;;  %3497 = vmatprep.subr.bf16.mxu1 %v3496_v57  ;;  %v1000_v56 = vld [vmem:[#allocation12 + $0xa20] sm:$0xff]  ;;  %v1075_v49 = vld [vmem:[#allocation12 + $0xc78] sm:$0xff] }
 0x26a   :  { %3625 = vmatprep.subr.bf16.mxu0 %v3624_v61  ;;  %v1008_v57 = vld [vmem:[#allocation12 + $0xa60] sm:$0xff]  ;;  %v1010_v61 = vld [vmem:[#allocation12 + $0xa70] sm:$0xff] }
 0x26b   :  { %1579 = vmatmul.mubr.f32.vlgmr.msra.gmra.mrb[4].mxu1 %v4501_v59  ;;  %v3642_v3 = vpack.c.bf16 %v1010_v61, %v1002_v58  ;;  %v1074_v58 = vld [vmem:[#allocation12 + $0xc70] sm:$0xff]  ;;  %v1089_v61 = vld [vmem:[#allocation12 + $0xce8] sm:$0xff] }
 0x26c   :  { %1721 = vmatmul.mubr.f32.vlgmr.msra.gmra.mrb[10].mxu0 %v4501_v59  ;;  %3499 = vmatpush1.bf16.msra.mxu1 %v3498_v2  ;;  %v995_v59 = vld [vmem:[#allocation12 + $0x9f8] sm:$0xff]  ;;  %v3514_v2 = vpack.c.bf16 %v1008_v57, %v1000_v56  ;;  %v1066_v56 = vld [vmem:[#allocation12 + $0xc30] sm:$0xff]  ;;  %v3656_v57 = vpack.c.bf16 %v1075_v49, %v1067_v48 }
 0x26d   :  { %1649 = vmatprep.mubr.f32.mxu1 %v4505_v4  ;;  %3627 = vmatpush1.bf16.msra.mxu0 %v3626_v12  ;;  %v3636_v47 = vpack.c.bf16 %v995_v59, %v987_v41  ;;  %v1016_v12 = vld [vmem:[#allocation12 + $0xaa0] sm:$0xff]  ;;  %v3650_v59 = vpack.c.bf16 %v1042_v36, %v1034_v33  ;;  %v3658_v1 = vpack.c.bf16 %v1074_v58, %v1066_v56  ;;  %v1106_v33 = vld [vmem:[#allocation12 + $0xd70] sm:$0xff]  ;;  %v1121_v36 = vld [vmem:[#allocation12 + $0xde8] sm:$0xff] }
 0x26e   :  { %1791 = vmatprep.mubr.f32.mxu0 %v4505_v4  ;;  %3501 = vmatprep.subr.bf16.mxu1 %v3500_v18  ;;  %v994_v4 = vld [vmem:[#allocation12 + $0x9f0] sm:$0xff]  ;;  %v3518_v26 = vpack.c.bf16 %v1024_v14, %v1016_v12  ;;  %v3660_v14 = vpack.c.bf16 %v1091_v30, %v1083_v62  ;;  %v1153_v58 = vld [vmem:[#allocation12 + $0xee8] sm:$0xff] }
 0x26f   :  { %3629 = vmatprep.subr.bf16.mxu0 %v3628_v23  ;;  %v3638_v53 = vpack.c.bf16 %v994_v4, %v986_v46  ;;  %v1026_v18 = vld [vmem:[#allocation12 + $0xaf0] sm:$0xff]  ;;  %v1043_v23 = vld [vmem:[#allocation12 + $0xb78] sm:$0xff]  ;;  %v1073_v4 = vld [vmem:[#allocation12 + $0xc68] sm:$0xff] }
 0x270   :  { %3503 = vmatpush1.bf16.msra.mxu1 %v3502_v21  ;;  %v3646_v29 = vpack.c.bf16 %v1026_v18, %v1018_v16  ;;  %v3520_v21 = vpack.c.bf16 %v1041_v20, %v1033_v19  ;;  %v3648_v35 = vpack.c.bf16 %v1043_v23, %v1035_v22  ;;  %v1058_v46 = vld [vmem:[#allocation12 + $0xbf0] sm:$0xff]  ;;  %v1105_v18 = vld [vmem:[#allocation12 + $0xd68] sm:$0xff]  ;;  %v1099_v19 = vld [vmem:[#allocation12 + $0xd38] sm:$0xff] }
 0x271   :  { %3631 = vmatpush1.bf16.msra.mxu0 %v3630_v25  ;;  %3505 = vmatprep.subr.bf16.mxu1 %v3504_v32  ;;  %v1032_v25 = vld [vmem:[#allocation12 + $0xb20] sm:$0xff]  ;;  %v3654_v51 = vpack.c.bf16 %v1058_v46, %v1050_v45  ;;  %v1082_v12 = vld [vmem:[#allocation12 + $0xcb0] sm:$0xff]  ;;  %v1107_v20 = vld [vmem:[#allocation12 + $0xd78] sm:$0xff] }
 0x272   :  { %3633 = vmatprep.subr.bf16.mxu0 %v3632_v37  ;;  %v1040_v32 = vld [vmem:[#allocation12 + $0xb60] sm:$0xff]  ;;  %v1049_v37 = vld [vmem:[#allocation12 + $0xba8] sm:$0xff]  ;;  %v1090_v16 = vld [vmem:[#allocation12 + $0xcf0] sm:$0xff] }
 0x273   :  { %v3522_v41 = vpack.c.bf16 %v1040_v32, %v1032_v25  ;;  %v3662_v23 = vpack.c.bf16 %v1090_v16, %v1082_v12  ;;  %v1098_v25 = vld [vmem:[#allocation12 + $0xd30] sm:$0xff]  ;;  %v3664_v32 = vpack.c.bf16 %v1107_v20, %v1099_v19  ;;  %v1137_v46 = vld [vmem:[#allocation12 + $0xe68] sm:$0xff] }
 0x274   :  { %3507 = vmatpush1.bf16.msra.mxu1 %v3506_v42  ;;  %v3524_v42 = vpack.c.bf16 %v1057_v38, %v1049_v37  ;;  %v1115_v37 = vld [vmem:[#allocation12 + $0xdb8] sm:$0xff]  ;;  %v3666_v40 = vpack.c.bf16 %v1106_v33, %v1098_v25  ;;  %v1122_v45 = vld [vmem:[#allocation12 + $0xdf0] sm:$0xff]  ;;  %v1169_v16 = vld [vmem:[#allocation12 + $0xf68] sm:$0xff] }
 0x275   :  { %3635 = vmatpush1.bf16.msra.mxu0 %v3634_v43  ;;  %3509 = vmatprep.subr.bf16.mxu1 %v3508_v44  ;;  %v1048_v43 = vld [vmem:[#allocation12 + $0xba0] sm:$0xff]  ;;  %v1123_v38 = vld [vmem:[#allocation12 + $0xdf8] sm:$0xff]  ;;  %v1138_v56 = vld [vmem:[#allocation12 + $0xe70] sm:$0xff] }
 0x276   :  { %3637 = vmatprep.subr.bf16.mxu0 %v3636_v47  ;;  %v1056_v44 = vld [vmem:[#allocation12 + $0xbe0] sm:$0xff]  ;;  %v1065_v47 = vld [vmem:[#allocation12 + $0xc28] sm:$0xff]  ;;  %v1154_v12 = vld [vmem:[#allocation12 + $0xef0] sm:$0xff] }
 0x277   :  { %v3526_v50 = vpack.c.bf16 %v1056_v44, %v1048_v43  ;;  %v1114_v43 = vld [vmem:[#allocation12 + $0xdb0] sm:$0xff]  ;;  %v3668_v44 = vpack.c.bf16 %v1123_v38, %v1115_v37  ;;  %v1185_v33 = vld [vmem:[#allocation12 + $0xfe8] sm:$0xff] }
 0x278   :  { %3511 = vmatpush1.bf16.msra.mxu1 %v3510_v52  ;;  %v3528_v52 = vpack.c.bf16 %v1073_v4, %v1065_v47  ;;  %v1131_v47 = vld [vmem:[#allocation12 + $0xe38] sm:$0xff]  ;;  %v3670_v49 = vpack.c.bf16 %v1122_v45, %v1114_v43  ;;  %v1170_v25 = vld [vmem:[#allocation12 + $0xf70] sm:$0xff] }
 0x279   :  { %3639 = vmatpush1.bf16.msra.mxu0 %v3638_v53  ;;  %3513 = vmatprep.subr.bf16.mxu1 %v3512_v55  ;;  %v1064_v53 = vld [vmem:[#allocation12 + $0xc20] sm:$0xff]  ;;  %v1139_v4 = vld [vmem:[#allocation12 + $0xe78] sm:$0xff]  ;;  %v1186_v43 = vld [vmem:[#allocation12 + $0xff0] sm:$0xff] }
 0x27a   :  { %3641 = vmatprep.subr.bf16.mxu0 %v3640_v60  ;;  %v1072_v55 = vld [vmem:[#allocation12 + $0xc60] sm:$0xff]  ;;  %v1081_v60 = vld [vmem:[#allocation12 + $0xca8] sm:$0xff] }
 0x27b   :  { %v3530_v63 = vpack.c.bf16 %v1072_v55, %v1064_v53  ;;  %v1130_v53 = vld [vmem:[#allocation12 + $0xe30] sm:$0xff]  ;;  %v3672_v55 = vpack.c.bf16 %v1139_v4, %v1131_v47 }
 0x27c   :  { %3515 = vmatpush1.bf16.msra.mxu1 %v3514_v2  ;;  %v3532_v2 = vpack.c.bf16 %v1089_v61, %v1081_v60  ;;  %v1147_v60 = vld [vmem:[#allocation12 + $0xeb8] sm:$0xff]  ;;  %v3674_v30 = vpack.c.bf16 %v1138_v56, %v1130_v53  ;;  %v1846_v53 = vld [vmem:[#allocation15] sm:$0xff] }
 0x27d   :  { %3643 = vmatpush1.bf16.msra.mxu0 %v3642_v3  ;;  %3517 = vmatprep.subr.bf16.mxu1 %v3516_v8  ;;  %v1080_v3 = vld [vmem:[#allocation12 + $0xca0] sm:$0xff]  ;;  %v1155_v61 = vld [vmem:[#allocation12 + $0xef8] sm:$0xff] }
 0x27e   :  { %3645 = vmatprep.subr.bf16.mxu0 %v3644_v17  ;;  %v1088_v8 = vld [vmem:[#allocation12 + $0xce0] sm:$0xff]  ;;  %v1097_v17 = vld [vmem:[#allocation12 + $0xd28] sm:$0xff] }
 0x27f   :  { %v3534_v22 = vpack.c.bf16 %v1088_v8, %v1080_v3  ;;  %v1146_v3 = vld [vmem:[#allocation12 + $0xeb0] sm:$0xff]  ;;  %v3676_v8 = vpack.c.bf16 %v1155_v61, %v1147_v60  ;;  %v1864_v61 = vld [vmem:[#allocation15 + $0x90] sm:$0xff] }
 0x280   :  { %3519 = vmatpush1.bf16.msra.mxu1 %v3518_v26  ;;  %v3536_v26 = vpack.c.bf16 %v1105_v18, %v1097_v17  ;;  %v1163_v17 = vld [vmem:[#allocation12 + $0xf38] sm:$0xff]  ;;  %v3678_v20 = vpack.c.bf16 %v1154_v12, %v1146_v3  ;;  %v1879_v60 = vld [vmem:[#allocation15 + $0x108] sm:$0xff]  ;;  %v1849_v3 = vld [vmem:[#allocation15 + $0x18] sm:$0xff] }
 0x281   :  { %3647 = vmatpush1.bf16.msra.mxu0 %v3646_v29  ;;  %3521 = vmatprep.subr.bf16.mxu1 %v3520_v21  ;;  %v1096_v29 = vld [vmem:[#allocation12 + $0xd20] sm:$0xff]  ;;  %v1171_v18 = vld [vmem:[#allocation12 + $0xf78] sm:$0xff] }
 0x282   :  { %3649 = vmatprep.subr.bf16.mxu0 %v3648_v35  ;;  %v1104_v21 = vld [vmem:[#allocation12 + $0xd60] sm:$0xff]  ;;  %v1113_v35 = vld [vmem:[#allocation12 + $0xda8] sm:$0xff] }
 0x283   :  { %v3538_v39 = vpack.c.bf16 %v1104_v21, %v1096_v29  ;;  %v1162_v29 = vld [vmem:[#allocation12 + $0xf30] sm:$0xff]  ;;  %v3680_v21 = vpack.c.bf16 %v1171_v18, %v1163_v17  ;;  %v1866_v18 = vld [vmem:[#allocation15 + $0xa0] sm:$0xff] }
 0x284   :  { %3523 = vmatpush1.bf16.msra.mxu1 %v3522_v41  ;;  %v3540_v41 = vpack.c.bf16 %v1121_v36, %v1113_v35  ;;  %v1179_v35 = vld [vmem:[#allocation12 + $0xfb8] sm:$0xff]  ;;  %v3682_v38 = vpack.c.bf16 %v1170_v25, %v1162_v29  ;;  %v1851_v29 = vld [vmem:[#allocation15 + $0x28] sm:$0xff] }
 0x285   :  { %3651 = vmatpush1.bf16.msra.mxu0 %v3650_v59  ;;  %3525 = vmatprep.subr.bf16.mxu1 %v3524_v42  ;;  %v1112_v59 = vld [vmem:[#allocation12 + $0xda0] sm:$0xff]  ;;  %v1187_v36 = vld [vmem:[#allocation12 + $0xff8] sm:$0xff] }
 0x286   :  { %3653 = vmatprep.subr.bf16.mxu0 %v3652_v54  ;;  %v1120_v42 = vld [vmem:[#allocation12 + $0xde0] sm:$0xff]  ;;  %v1129_v54 = vld [vmem:[#allocation12 + $0xe28] sm:$0xff] }
 0x287   :  { %v3542_v48 = vpack.c.bf16 %v1120_v42, %v1112_v59  ;;  %v3684_v59 = vpack.c.bf16 %v1187_v36, %v1179_v35  ;;  %v1178_v42 = vld [vmem:[#allocation12 + $0xfb0] sm:$0xff]  ;;  %v1868_v36 = vld [vmem:[#allocation15 + $0xb0] sm:$0xff] }
 0x288   :  { %3527 = vmatpush1.bf16.msra.mxu1 %v3526_v50  ;;  %v3544_v50 = vpack.c.bf16 %v1137_v46, %v1129_v54  ;;  %v3686_v45 = vpack.c.bf16 %v1186_v43, %v1178_v42 }
 0x289   :  { %3655 = vmatpush1.bf16.msra.mxu0 %v3654_v51  ;;  %3529 = vmatprep.subr.bf16.mxu1 %v3528_v52  ;;  %v1128_v51 = vld [vmem:[#allocation12 + $0xe20] sm:$0xff] }
 0x28a   :  { %3657 = vmatprep.subr.bf16.mxu0 %v3656_v57  ;;  %v1136_v52 = vld [vmem:[#allocation12 + $0xe60] sm:$0xff]  ;;  %v1145_v57 = vld [vmem:[#allocation12 + $0xea8] sm:$0xff] }
 0x28b   :  { %v3546_v62 = vpack.c.bf16 %v1136_v52, %v1128_v51  ;;  %v1895_v52 = vld [vmem:[#allocation15 + $0x188] sm:$0xff] }
 0x28c   :  { %3531 = vmatpush1.bf16.msra.mxu1 %v3530_v63  ;;  %v3548_v63 = vpack.c.bf16 %v1153_v58, %v1145_v57  ;;  %v1878_v58 = vld [vmem:[#allocation15 + $0x100] sm:$0xff] }
 0x28d   :  { %3659 = vmatpush1.bf16.msra.mxu0 %v3658_v1  ;;  %3533 = vmatprep.subr.bf16.mxu1 %v3532_v2  ;;  %v1144_v1 = vld [vmem:[#allocation12 + $0xea0] sm:$0xff] }
 0x28e   :  { %3661 = vmatprep.subr.bf16.mxu0 %v3660_v14  ;;  %v1152_v2 = vld [vmem:[#allocation12 + $0xee0] sm:$0xff]  ;;  %v1161_v14 = vld [vmem:[#allocation12 + $0xf28] sm:$0xff] }
 0x28f   :  { %v3550_v19 = vpack.c.bf16 %v1152_v2, %v1144_v1  ;;  %v1897_v1 = vld [vmem:[#allocation15 + $0x198] sm:$0xff]  ;;  %v1848_v2 = vld [vmem:[#allocation15 + $0x10] sm:$0xff] }
 0x290   :  { %3535 = vmatpush1.bf16.msra.mxu1 %v3534_v22  ;;  %v3552_v22 = vpack.c.bf16 %v1169_v16, %v1161_v14  ;;  %v3694_v12 = vpack.c.bf16 %v1849_v3, %v1848_v2  ;;  %v1880_v14 = vld [vmem:[#allocation15 + $0x110] sm:$0xff]  ;;  %v1881_v16 = vld [vmem:[#allocation15 + $0x118] sm:$0xff] }
 0x291   :  { %3663 = vmatpush1.bf16.msra.mxu0 %v3662_v23  ;;  %3537 = vmatprep.subr.bf16.mxu1 %v3536_v26  ;;  %v1160_v23 = vld [vmem:[#allocation12 + $0xf20] sm:$0xff]  ;;  %v3726_v17 = vpack.c.bf16 %v1881_v16, %v1880_v14  ;;  %v1888_v14 = vld [vmem:[#allocation15 + $0x150] sm:$0xff] }
 0x292   :  { %3665 = vmatprep.subr.bf16.mxu0 %v3664_v32  ;;  %v1168_v26 = vld [vmem:[#allocation12 + $0xf60] sm:$0xff]  ;;  %v1177_v32 = vld [vmem:[#allocation12 + $0xfa8] sm:$0xff] }
 0x293   :  { %v3554_v37 = vpack.c.bf16 %v1168_v26, %v1160_v23  ;;  %v1899_v23 = vld [vmem:[#allocation15 + $0x1a8] sm:$0xff]  ;;  %v1850_v26 = vld [vmem:[#allocation15 + $0x20] sm:$0xff] }
 0x294   :  { %3539 = vmatpush1.bf16.msra.mxu1 %v3538_v39  ;;  %v3556_v39 = vpack.c.bf16 %v1185_v33, %v1177_v32  ;;  %v3698_v25 = vpack.c.bf16 %v1851_v29, %v1850_v26  ;;  %v1882_v32 = vld [vmem:[#allocation15 + $0x120] sm:$0xff]  ;;  %v1883_v33 = vld [vmem:[#allocation15 + $0x128] sm:$0xff] }
 0x295   :  { %3667 = vmatpush1.bf16.msra.mxu0 %v3666_v40  ;;  %3541 = vmatprep.subr.bf16.mxu1 %v3540_v41  ;;  %v1176_v40 = vld [vmem:[#allocation12 + $0xfa0] sm:$0xff]  ;;  %v3730_v35 = vpack.c.bf16 %v1883_v33, %v1882_v32  ;;  %v1907_v26 = vld [vmem:[#allocation15 + $0x1e8] sm:$0xff]  ;;  %v1858_v29 = vld [vmem:[#allocation15 + $0x60] sm:$0xff] }
 0x296   :  { %3669 = vmatprep.subr.bf16.mxu0 %v3668_v44  ;;  %v1184_v41 = vld [vmem:[#allocation12 + $0xfe0] sm:$0xff]  ;;  %v1890_v32 = vld [vmem:[#allocation15 + $0x160] sm:$0xff]  ;;  %v1891_v33 = vld [vmem:[#allocation15 + $0x168] sm:$0xff] }
 0x297   :  { %v3558_v44 = vpack.c.bf16 %v1184_v41, %v1176_v40  ;;  %v1901_v40 = vld [vmem:[#allocation15 + $0x1b8] sm:$0xff]  ;;  %v1852_v41 = vld [vmem:[#allocation15 + $0x30] sm:$0xff] }
 0x298   :  { %3543 = vmatpush1.bf16.msra.mxu1 %v3542_v48  ;;  %v1862_v48 = vld [vmem:[#allocation15 + $0x80] sm:$0xff] }
 0x299   :  { %3671 = vmatpush1.bf16.msra.mxu0 %v3670_v49  ;;  %3545 = vmatprep.subr.bf16.mxu1 %v3544_v50  ;;  %v1863_v49 = vld [vmem:[#allocation15 + $0x88] sm:$0xff]  ;;  %v1894_v50 = vld [vmem:[#allocation15 + $0x180] sm:$0xff] }
 0x29a   :  { %3673 = vmatprep.subr.bf16.mxu0 %v3672_v55  ;;  %v3688_v51 = vpack.c.bf16 %v1863_v49, %v1862_v48  ;;  %v1847_v55 = vld [vmem:[#allocation15 + $0x8] sm:$0xff]  ;;  %v3720_v56 = vpack.c.bf16 %v1895_v52, %v1894_v50  ;;  %v1870_v49 = vld [vmem:[#allocation15 + $0xc0] sm:$0xff] }
 0x29b   :  { %v3690_v57 = vpack.c.bf16 %v1847_v55, %v1846_v53  ;;  %v1871_v50 = vld [vmem:[#allocation15 + $0xc8] sm:$0xff]  ;;  %v1854_v55 = vld [vmem:[#allocation15 + $0x40] sm:$0xff] }
 0x29c   :  { %3547 = vmatpush1.bf16.msra.mxu1 %v3546_v62  ;;  %v1865_v62 = vld [vmem:[#allocation15 + $0x98] sm:$0xff]  ;;  %v3704_v52 = vpack.c.bf16 %v1871_v50, %v1870_v49  ;;  %v1903_v53 = vld [vmem:[#allocation15 + $0x1c8] sm:$0xff] }
 0x29d   :  { %3675 = vmatpush1.bf16.msra.mxu0 %v3674_v30  ;;  %3549 = vmatprep.subr.bf16.mxu1 %v3548_v63  ;;  %v1896_v30 = vld [vmem:[#allocation15 + $0x190] sm:$0xff]  ;;  %v3692_v63 = vpack.c.bf16 %v1865_v62, %v1864_v61  ;;  %v1188_v50 = vld [vmem:[#allocation14] sm:$0xff] }
 0x29e   :  { %3677 = vmatprep.subr.bf16.mxu0 %v3676_v8  ;;  %v3724_v8 = vpack.c.bf16 %v1897_v1, %v1896_v30  ;;  %v1872_v61 = vld [vmem:[#allocation15 + $0xd0] sm:$0xff]  ;;  %v1873_v30 = vld [vmem:[#allocation15 + $0xd8] sm:$0xff] }
 0x29f   :  { %v1905_v1 = vld [vmem:[#allocation15 + $0x1d8] sm:$0xff]  ;;  %v3708_v2 = vpack.c.bf16 %v1873_v30, %v1872_v61 }
 0x2a0   :  { %3551 = vmatpush1.bf16.msra.mxu1 %v3550_v19  ;;  %v1867_v19 = vld [vmem:[#allocation15 + $0xa8] sm:$0xff] }
 0x2a1   :  { %3679 = vmatpush1.bf16.msra.mxu0 %v3678_v20  ;;  %3553 = vmatprep.subr.bf16.mxu1 %v3552_v22  ;;  %v1898_v20 = vld [vmem:[#allocation15 + $0x1a0] sm:$0xff]  ;;  %v3696_v22 = vpack.c.bf16 %v1867_v19, %v1866_v18  ;;  %v1875_v19 = vld [vmem:[#allocation15 + $0xe8] sm:$0xff] }
 0x2a2   :  { %3681 = vmatprep.subr.bf16.mxu0 %v3680_v21  ;;  %v3728_v21 = vpack.c.bf16 %v1899_v23, %v1898_v20  ;;  %v1874_v18 = vld [vmem:[#allocation15 + $0xe0] sm:$0xff] }
 0x2a3   :  { %v1906_v23 = vld [vmem:[#allocation15 + $0x1e0] sm:$0xff] }
 0x2a4   :  { %3555 = vmatpush1.bf16.msra.mxu1 %v3554_v37  ;;  %v1869_v37 = vld [vmem:[#allocation15 + $0xb8] sm:$0xff] }
 0x2a5   :  { %3683 = vmatpush1.bf16.msra.mxu0 %v3682_v38  ;;  %3557 = vmatprep.subr.bf16.mxu1 %v3556_v39  ;;  %v1900_v38 = vld [vmem:[#allocation15 + $0x1b0] sm:$0xff]  ;;  %v3700_v39 = vpack.c.bf16 %v1869_v37, %v1868_v36  ;;  %v1877_v36 = vld [vmem:[#allocation15 + $0xf8] sm:$0xff] }
 0x2a6   :  { %3685 = vmatprep.subr.bf16.mxu0 %v3684_v59  ;;  %v1853_v59 = vld [vmem:[#allocation15 + $0x38] sm:$0xff]  ;;  %v3732_v42 = vpack.c.bf16 %v1901_v40, %v1900_v38  ;;  %v1908_v37 = vld [vmem:[#allocation15 + $0x1f0] sm:$0xff]  ;;  %v3746_v40 = vpack.c.bf16 %v1891_v33, %v1890_v32 }
 0x2a7   :  { %v3702_v43 = vpack.c.bf16 %v1853_v59, %v1852_v41  ;;  %v1860_v59 = vld [vmem:[#allocation15 + $0x70] sm:$0xff] }
 0x2a8   :  { %3559 = vmatpush1.bf16.msra.mxu1 %v3558_v44  ;;  %v1884_v44 = vld [vmem:[#allocation15 + $0x130] sm:$0xff] }
 0x2a9   :  { %3687 = vmatpush1.bf16.msra.mxu0 %v3686_v45  ;;  %3689 = vmatprep.subr.bf16.mxu1 %v3688_v51  ;;  %v1885_v45 = vld [vmem:[#allocation15 + $0x138] sm:$0xff]  ;;  %v1902_v51 = vld [vmem:[#allocation15 + $0x1c0] sm:$0xff] }
 0x2aa   :  { %3721 = vmatprep.subr.bf16.mxu0 %v3720_v56  ;;  %v3734_v48 = vpack.c.bf16 %v1885_v45, %v1884_v44  ;;  %v1855_v56 = vld [vmem:[#allocation15 + $0x48] sm:$0xff]  ;;  %v1892_v44 = vld [vmem:[#allocation15 + $0x170] sm:$0xff]  ;;  %v1893_v45 = vld [vmem:[#allocation15 + $0x178] sm:$0xff] }
 0x2ab   :  { %1650 = vmatmul.mubr.f32.vlgmr.msra.gmra.mrb[4].mxu1 %v4516_v10  ;;  %v3750_v49 = vpack.c.bf16 %v1893_v45, %v1892_v44 }
 0x2ac   :  { %1792 = vmatmul.mubr.f32.vlgmr.msra.gmra.mrb[10].mxu0 %v4516_v10  ;;  %v3722_v10 = vpack.c.bf16 %v1879_v60, %v1878_v58  ;;  %3691 = vmatpush3.bf16.msra.mxu1 %v3690_v57  ;;  %v3736_v57 = vpack.c.bf16 %v1903_v53, %v1902_v51  ;;  %v3706_v58 = vpack.c.bf16 %v1855_v56, %v1854_v55  ;;  %v1886_v60 = vld [vmem:[#allocation15 + $0x140] sm:$0xff] }
 0x2ad   :  { %3693 = vmatprep.subr.bf16.mxu1 %v3692_v63  ;;  %v1904_v63 = vld [vmem:[#allocation15 + $0x1d0] sm:$0xff]  ;;  %v1193_v51 = vrot.slane %v1188_v50, %v4482_v24  ;;  %v1201_v53 = vrot.slane %v1188_v50, %v261_v11  ;;  %v1197_v55 = vrot.slane %v1188_v50, %v4488_v28  ;;  %v1217_v56 = vrot.slane %v1188_v50, %v277_v7 }
 0x2ae   :  { %3723 = vmatpush3.bf16.msra.mxu0 %v3722_v10  ;;  %v1887_v10 = vld [vmem:[#allocation15 + $0x148] sm:$0xff]  ;;  %v3740_v3 = vpack.c.bf16 %v1905_v1, %v1904_v63 }
 0x2af   :  { %3725 = vmatprep.subr.bf16.mxu0 %v3724_v8  ;;  %v3738_v62 = vpack.c.bf16 %v1887_v10, %v1886_v60  ;;  %v1856_v8 = vld [vmem:[#allocation15 + $0x50] sm:$0xff]  ;;  %v1221_v60 = vrot.slane %v1188_v50, %v281_v9 }
 0x2b0   :  { %3695 = vmatpush3.bf16.msra.mxu1 %v3694_v12  ;;  %v1857_v12 = vld [vmem:[#allocation15 + $0x58] sm:$0xff] }
 0x2b1   :  { %3697 = vmatprep.subr.bf16.mxu1 %v3696_v22  ;;  %v3710_v16 = vpack.c.bf16 %v1857_v12, %v1856_v8  ;;  %v3712_v22 = vpack.c.bf16 %v1875_v19, %v1874_v18 }
 0x2b2   :  { %3727 = vmatpush3.bf16.msra.mxu0 %v3726_v17  ;;  %v1889_v17 = vld [vmem:[#allocation15 + $0x158] sm:$0xff] }
 0x2b3   :  { %3729 = vmatprep.subr.bf16.mxu0 %v3728_v21  ;;  %v3742_v20 = vpack.c.bf16 %v1889_v17, %v1888_v14  ;;  %v3744_v21 = vpack.c.bf16 %v1907_v26, %v1906_v23 }
 0x2b4   :  { %3699 = vmatpush3.bf16.msra.mxu1 %v3698_v25  ;;  %v1859_v25 = vld [vmem:[#allocation15 + $0x68] sm:$0xff] }
 0x2b5   :  { %3701 = vmatprep.subr.bf16.mxu1 %v3700_v39  ;;  %v3714_v38 = vpack.c.bf16 %v1859_v25, %v1858_v29  ;;  %v1909_v39 = vld [vmem:[#allocation15 + $0x1f8] sm:$0xff] }
 0x2b6   :  { %3731 = vmatpush3.bf16.msra.mxu0 %v3730_v35  ;;  %v1876_v35 = vld [vmem:[#allocation15 + $0xf0] sm:$0xff] }
 0x2b7   :  { %3733 = vmatprep.subr.bf16.mxu0 %v3732_v42  ;;  %v3716_v41 = vpack.c.bf16 %v1877_v36, %v1876_v35  ;;  %v1861_v42 = vld [vmem:[#allocation15 + $0x78] sm:$0xff] }
 0x2b8   :  { %3703 = vmatpush3.bf16.msra.mxu1 %v3702_v43  ;;  %v3748_v43 = vpack.c.bf16 %v1909_v39, %v1908_v37 }
 0x2b9   :  { %3705 = vmatprep.subr.bf16.mxu1 %v3704_v52  ;;  %v1209_v52 = vrot.slane %v1188_v50, %v269_v27 }
 0x2ba   :  { %3735 = vmatpush3.bf16.msra.mxu0 %v3734_v48  ;;  %v3718_v48 = vpack.c.bf16 %v1861_v42, %v1860_v59 }
 0x2bb   :  { %3737 = vmatprep.subr.bf16.mxu0 %v3736_v57  ;;  %v1213_v57 = vrot.slane %v1188_v50, %v273_v31 }
 0x2bc   :  { %3707 = vmatpush3.bf16.msra.mxu1 %v3706_v58  ;;  %v1205_v58 = vrot.slane %v1188_v50, %v265_v13 }
 0x2bd   :  { %3709 = vmatprep.subr.bf16.mxu1 %v3708_v2 }
 0x2be   :  { %3739 = vmatpush3.bf16.msra.mxu0 %v3738_v62 }
 0x2bf   :  { %3741 = vmatprep.subr.bf16.mxu0 %v3740_v3 }
 0x2c0   :  { %3711 = vmatpush3.bf16.msra.mxu1 %v3710_v16 }
 0x2c1   :  { %3713 = vmatprep.subr.bf16.mxu1 %v3712_v22 }
 0x2c2   :  { %3743 = vmatpush3.bf16.msra.mxu0 %v3742_v20 }
 0x2c3   :  { %3745 = vmatprep.subr.bf16.mxu0 %v3744_v21 }
 0x2c4   :  { %3715 = vmatpush3.bf16.msra.mxu1 %v3714_v38 }
 0x2c5   :  { %3717 = vmatprep.subr.bf16.mxu1 %v3716_v41 }
 0x2c6   :  { %3747 = vmatpush3.bf16.msra.mxu0 %v3746_v40 }
 0x2c7   :  { %3749 = vmatprep.subr.bf16.mxu0 %v3748_v43 }
 0x2c8   :  { %3719 = vmatpush3.bf16.msra.mxu1 %v3718_v48 }
 0x2c9   :  { %3094 = vmatprep.subr.mxu1 %v4174_v0 }
 0x2ca   :  { %3751 = vmatpush3.bf16.msra.mxu0 %v3750_v49 }
 0x2cb   :  { %3104 = vmatprep.subr.mxu0 %v4174_v0 }
 0x2fe   :  { %v4528_v54 = vpop.f32.mrb[2].mxu1  ;;  %v4530_v46 = vpop.f32.mrb[8].mxu0 }
 0x2ff   :  { %v4532_v47 = vpop.f32.mrb[3].mxu1  ;;  %v4534_v4 = vpop.f32.mrb[9].mxu0  ;;  %v3764_v27 = vadd.f32 %v4528_v54, %v1193_v51  ;;  %v3766_v30 = vadd.f32 %v4530_v46, %v1201_v53 }
 0x300   :  { %v3765_v63 = vadd.f32 %v4532_v47, %v1197_v55  ;;  %v3767_v31 = vadd.f32 %v4534_v4, %v1205_v58 }
 0x37e   :  { %v1651_v10 = vpop.f32.mrb[4].mxu1 }
 0x37f   :  { %v3768_v61 = vadd.f32 %v1651_v10, %v1209_v52  ;;  %v1793_v62 = vpop.f32.mrb[10].mxu0  ;;  %v1653_v11 = vpop.f32.mrb[5].mxu1 }
 0x380   :  { %v3770_v7 = vadd.f32 %v1793_v62, %v1217_v56  ;;  %v3769_v1 = vadd.f32 %v1653_v11, %v1213_v57  ;;  %v1795_v2 = vpop.f32.mrb[11].mxu0 }
 0x381   :  { %v1798_v3 = vmax.f32 %v3764_v27, %v3768_v61  ;;  %v3771_v13 = vadd.f32 %v1795_v2, %v1221_v60  ;;  %v1910_v27 = vld [vmem:[#allocation17] sm:$0x1] }
 0x382   :  { %v1800_v8 = vmax.f32 %v3766_v30, %v3770_v7  ;;  %v1799_v12 = vmax.f32 %v3765_v63, %v3769_v1 }
 0x383   :  { %v1802_v9 = vmax.f32 %v1798_v3, 0.0  ;;  %v1801_v14 = vmax.f32 %v3767_v31, %v3771_v13 }
 0x384   :  { %v1804_v16 = vmax.f32 %v1800_v8, 0.0  ;;  %v1803_v54 = vmax.f32 %v1799_v12, 0.0 }
 0x385   :  { %v1806_v17 = vsub.f32 0.0, %v1802_v9  ;;  %v1805_v18 = vmax.f32 %v1801_v14, 0.0 }
 0x386   :  { %v1808_v19 = vsub.f32 0.0, %v1804_v16  ;;  %v1807_v20 = vsub.f32 0.0, %v1803_v54  ;;  %v2969_v54 = vld [vmem:[#allocation11 + $0x8] ss:$0 sm:$0xff] }
 0x387   :  { %v1810_v46 = vmul.f32 1.442695, %v1806_v17  ;;  %v1809_v22 = vsub.f32 0.0, %v1805_v18  ;;  %v651_v17 = vadd.f32 %v2969_v54, %v4511_v34 }
 0x388   :  { %v1814_v47 = vmul.f32 1.442695, %v1808_v19  ;;  %v1812_v23 = vmul.f32 1.442695, %v1807_v20 }
 0x389   :  { %3817 = vpow2.f32 %v1810_v46  ;;  %v1816_v26 = vmul.f32 1.442695, %v1809_v22  ;;  %v654_v19 = vsub.f32 0.0, %v651_v17 }
 0x38a   :  { %3819 = vpow2.f32 %v1814_v47 }
 0x38b   :  { %3821 = vpow2.f32 %v1812_v23  ;;  %v655_v46 = vmul.f32 1.442695, %v654_v19 }
 0x38c   :  { %3823 = vpow2.f32 %v1816_v26 }
 0x393   :  { %v3818_v4 = vpop.eup %3817 }
 0x394   :  { %v3820_v29 = vpop.eup %3819  ;;  %v1818_v21 = vadd.f32 1.0, %v3818_v4 }
 0x395   :  { %v3822_v25 = vpop.eup %3821  ;;  %v1820_v32 = vadd.f32 1.0, %v3820_v29 }
 0x396   :  { %v3824_v33 = vpop.eup %3823  ;;  %3825 = vrcp.f32 %v1818_v21  ;;  %v1819_v35 = vadd.f32 1.0, %v3822_v25 }
 0x397   :  { %3827 = vrcp.f32 %v1820_v32  ;;  %v1821_v36 = vadd.f32 1.0, %v3824_v33 }
 0x398   :  { %3829 = vrcp.f32 %v1819_v35 }
 0x399   :  { %3831 = vrcp.f32 %v1821_v36 }
 0x3a0   :  { %v3826_v37 = vpop.eup %3825 }
 0x3a1   :  { %v3828_v38 = vpop.eup %3827  ;;  %v1830_v39 = vmul.f32 1.2, %v3826_v37 }
 0x3a2   :  { %v3830_v40 = vpop.eup %3829  ;;  %v1832_v41 = vmul.f32 1.2, %v3828_v38 }
 0x3a3   :  { %v3832_v59 = vpop.eup %3831  ;;  %v1831_v42 = vmul.f32 1.2, %v3830_v40  ;;  %v2977_v43 = vadd.f32 -0.1, %v1830_v39  ;;  %v4179_v39 = vmov 1966171168  }
 0x3a4   :  { %v1833_v44 = vmul.f32 1.2, %v3832_v59  ;;  %v2979_v45 = vadd.f32 -0.1, %v1832_v41  ;;  %v2369_v40 = vunpack.c.l.s4 %v4179_v39 }
 0x3a5   :  { %v2978_v48 = vadd.f32 -0.1, %v1831_v42  ;;  %v1838_v50 = vmax.f32 %v2977_v43, 0.0 }
 0x3a6   :  { %v2980_v49 = vadd.f32 -0.1, %v1833_v44  ;;  %v1840_v52 = vmax.f32 %v2979_v45, 0.0  ;;  %v2370_v59 = vunpack.c.0.s8 %v2369_v40 }
 0x3a7   :  { %v1839_v51 = vmax.f32 %v2978_v48, 0.0  ;;  %v1842_v57 = vmin.f32 %v1838_v50, 1.0 }
 0x3a8   :  { %v1841_v53 = vmax.f32 %v2980_v49, 0.0  ;;  %v1844_v58 = vmin.f32 %v1840_v52, 1.0  ;;  %v4575_v43 = vsub.s32 %v2370_v59, %v4465_v6  ;;  %v2105_v49 = vld [vmem:[#allocation18] sm:$0xff] }
 0x3a9   :  { %v1843_v55 = vmin.f32 %v1839_v51, 1.0 }
 0x3aa   :  { %v1845_v56 = vmin.f32 %v1841_v53, 1.0 }
 0x3ab   :  { %1975 = vmatprep.mubr.f32.mxu1 %v1843_v55 }
 0x3ac   :  { %2045 = vmatprep.mubr.f32.mxu0 %v1845_v56  ;;  %1976 = vmatmul.mubr.f32.vlgmr.msra.gmra.mrb[6].mxu1 %v1842_v57 }
 0x3ad   :  { %2046 = vmatmul.mubr.f32.vlgmr.msra.gmra.mrb[12].mxu0 %v1844_v58  ;;  %3096 = vmatprep.mubr.msk.f32.mxu1 %vm4176_vm1, %v4174_v0 }
 0x3ae   :  { %3106 = vmatprep.mubr.msk.f32.mxu0 %vm4176_vm1, %v4174_v0  ;;  %3095 = vmatpush3.msra.mxu1 %v2105_v49 }
 0x3af   :  { %3105 = vmatpush3.msra.mxu0 %v2105_v49  ;;  %3099 = vmatprep.subr.mxu1 %v4174_v0 }
 0x3b0   :  { %3114 = vmatprep.subr.mxu0 %v4174_v0 }
 0x47f   :  { %v3026_v60 = vpop.f32.mrb[6].mxu1 }
 0x480   :  { %v3061_v10 = vpop.f32.mrb[12].mxu0  ;;  %v3027_v61 = vpop.f32.mrb[7].mxu1 }
 0x481   :  { %v3028_v62 = vadd.f32 %v3027_v61, %v3026_v60  ;;  %v3062_v11 = vpop.f32.mrb[13].mxu0 }
 0x482   :  { %v3063_v30 = vadd.f32 %v3062_v11, %v3061_v10 }
 0x483   :  { %v1978_v63 = vadd.f32 %v3028_v62, %v1910_v27 }
 0x485   :  { %v4560_v7 = vadd.f32 %v3063_v30, %v1978_v63  ;;  %v2182_v30 = vld [vmem:[#allocation20] sm:$0xff] }
 0x487   :  { %v2072_v1 = vsel %vm2071_vm2, %v4560_v7, -inf  ;;  %v2089_v2 = vsel %vm2088_vm3, %v4560_v7, -inf  ;;  %v2051_v18 = vsub.f32 0.0, %v4560_v7  ;;  %v2104_v45 = vmax.f32 %v4560_v7, 0.0  ;;  %vm2430_vm3 = vmand %vm4622_vm10, %vm4627_vm11 }
 0x488   :  { %2073 = vmax.xlane.f32.xlu0 %v2072_v1  ;;  %vm4651_vm2 = vcmp.lt.s32.totalorder %v251_v5, 75  ;;  %vm2769_vm10 = vcmask 647744   ;;  %vm2941_vm11 = vcmask 122880  }
 0x489   :  { %v2052_v20 = vmul.f32 1.442695, %v2051_v18  ;;  %vm2456_vm9 = vmand %vm4646_vm15, %vm4651_vm2 }
 0x48c   :  { %2090 = vmax.xlane.f32.xlu0 %v2089_v2  ;;  %v2458_v2 = vld [vmem:[%s4827_s3] sm:$0xff] }
 0x515   :  { %v2074_v31 = vpop.xlane.xlu0 %2073 }
 0x516   :  { %v2075_v3 = vsub.f32 %v4560_v7, %v2074_v31 }
 0x518   :  { %v2076_v13 = vmul.f32 1.442695, %v2075_v3 }
 0x519   :  { %v2091_v8 = vpop.xlane.xlu0 %2090 }
 0x51a   :  { %3833 = vpow2.f32 %v2076_v13  ;;  %v2092_v12 = vsub.f32 %v4560_v7, %v2091_v8 }
 0x51c   :  { %v2093_v9 = vmul.f32 1.442695, %v2092_v12 }
 0x51e   :  { %3835 = vpow2.f32 %v2093_v9 }
 0x51f   :  { %3837 = vpow2.f32 %v2052_v20  ;;  %v2858_v20 = vld [vmem:[%s4836_s12] sm:$0xff] }
 0x520   :  { %3839 = vpow2.f32 %v655_v46  ;;  %v2859_v46 = vld [vmem:[%s4836_s12 + $0x8] sm:$0xff] }
 0x524   :  { %v3834_v14 = vpop.eup %3833 }
 0x525   :  { %2079 = vrot.lane.b32.xlu1 %v3834_v14, %s4177_s14 }
 0x528   :  { %v3836_v16 = vpop.eup %3835 }
 0x529   :  { %2096 = vrot.lane.b32.xlu1 %v3836_v16, %s4178_s6  ;;  %v3838_v22 = vpop.eup %3837 }
 0x52a   :  { %v2054_v47 = vadd.f32 1.0, %v3838_v22  ;;  %v3840_v23 = vpop.eup %3839 }
 0x52b   :  { %v657_v26 = vadd.f32 1.0, %v3840_v23 }
 0x52c   :  { %3841 = vrcp.f32 %v2054_v47 }
 0x52d   :  { %3843 = vrcp.f32 %v657_v26  ;;  %v2467_v26 = vld [vmem:[#allocation6] sm:$0x1] }
 0x52e   :  { %3845 = vtanh.f32 %v651_v17 }
 0x536   :  { %v3842_v4 = vpop.eup %3841 }
 0x537   :  { %v2057_v25 = vmul.f32 1.2, %v3842_v4  ;;  %v3844_v32 = vpop.eup %3843  ;;  %v4660_v4 = vld [vmem:[#allocation8] sm:$0x1] }
 0x538   :  { %v660_v36 = vmul.f32 1.2, %v3844_v32  ;;  %v3846_v51 = vpop.eup %3845 }
 0x539   :  { %v4570_v35 = vadd.f32 -0.1, %v2057_v25  ;;  %v665_v53 = vmul.f32 0.6, %v3846_v51 }
 0x53a   :  { %v2975_v38 = vadd.f32 -0.1, %v660_v36 }
 0x53b   :  { %v2060_v37 = vsel %vm2059_vm5, %v4570_v35, -inf  ;;  %v2976_v58 = vclamps-f32 %v665_v53, 0.5  ;;  %v2341_v53 = vld [vmem:[#allocation23 + $0x18] sm:$0xff] }
 0x53c   :  { %v662_v41 = vmax.f32 %v2975_v38, 0.0  ;;  %v4182_v38 = vmov 72  }
 0x53d   :  { %v2443_v27 = vrot.slane %v2976_v58, %v4575_v43  ;;  %3813 = vset.pattern.permute.xlu0 %v4182_v38  ;;  %v4185_v58 = vmov 0   ;;  %v2863_v38 = vld [vmem:[%s4836_s12 + $0x28] sm:$0xff] }
 0x53e   :  { %v663_v42 = vmin.f32 %v662_v41, 1.0 }
 0x53f   :  { %v2450_v61 = vrot.slane %v2443_v27, %v4575_v43 }
 0x540   :  { %v2417_v44 = vrot.slane %v663_v42, %v4575_v43  ;;  %v2339_v42 = vld [vmem:[#allocation23 + $0x8] sm:$0xff] }
 0x542   :  { %v2424_v48 = vrot.slane %v2417_v44, %v4575_v43  ;;  %v2338_v44 = vld [vmem:[#allocation23] sm:$0xff] }
 0x597   :  { %v2080_v29 = vpop.permute.xlu1 %2079 }
 0x598   :  { %v2083_v21 = vsel %vm2082_vm4, %v2080_v29, 0.0 }
 0x599   :  { %2084 = vadd.xlane.f32.xlu0 %v2083_v21 }
 0x59b   :  { %v2097_v34 = vpop.permute.xlu1 %2096 }
 0x59c   :  { %v2099_v33 = vsel %vm2082_vm4, %v2097_v34, 0.0  ;;  %vm2434_vm4 = vmand %vm4632_vm12, %vm4637_vm13  ;;  %vm2950_vm12 = vcmask 254080   ;;  %vm2952_vm13 = vcmask 1040640  }
 0x59d   :  { %2100 = vadd.xlane.f32.xlu1 %v2099_v33 }
 0x5a1   :  { %2061 = vmax.xlane.f32.xlu1 %v2060_v37  ;;  %v4181_v37 = vmov 73  }
 0x5a2   :  { %3814 = vset.pattern.permute.xlu1 %v4181_v37  ;;  %v2862_v37 = vld [vmem:[%s4836_s12 + $0x20] sm:$0xff] }
 0x5af   :  { %2259 = vrot.lane.b32.xlu0 %v2104_v45, %s4164_s19  ;;  %s4180_s19 = smov 24  }
 0x5b2   :  { %2425 = vrot.lane.b32.xlu1 %v2424_v48, %s4158_s22  ;;  %v2340_v48 = vld [vmem:[#allocation23 + $0x10] sm:$0xff] }
 0x626   :  { %v2085_v6 = vpop.xlane.xlu0 %2084 }
 0x627   :  { %3847 = vrcp.f32 %v2085_v6 }
 0x62a   :  { %v2101_v50 = vpop.xlane.xlu1 %2100  ;;  %v2260_v60 = vpop.permute.xlu0 %2259 }
 0x62b   :  { %3849 = vrcp.f32 %v2101_v50  ;;  %v2262_v10 = vsub.f32 %v2104_v45, %v2260_v60 }
 0x62e   :  { %v2062_v8 = vpop.xlane.xlu1 %2061 }
 0x62f   :  { %v2063_v32 = vsub.f32 %v4570_v35, %v2062_v8  ;;  %v2459_v8 = vld [vmem:[%s4827_s3 + $0x8] sm:$0xff] }
 0x631   :  { %v3848_v52 = vpop.eup %3847  ;;  %v2064_v34 = vmul.f32 1.442695, %v2063_v32 }
 0x632   :  { %v2087_v55 = vmul.f32 %v3848_v52, %v3834_v14  ;;  %v2426_v25 = vpop.permute.xlu1 %2425  ;;  %v2461_v14 = vld [vmem:[%s4827_s3 + $0x18] sm:$0xff] }
 0x633   :  { %3851 = vpow2.f32 %v2064_v34 }
 0x634   :  { %2107 = vrot.lane.b32.xlu0 %v2087_v55, %s4177_s14 }
 0x635   :  { %v3850_v56 = vpop.eup %3849 }
 0x636   :  { %v2103_v57 = vmul.f32 %v3850_v56, %v3836_v16 }
 0x638   :  { %2184 = vrot.lane.b32.xlu0 %v2103_v57, %s4178_s6  ;;  %v2396_v62 = vrot.slane %v2103_v57, %v4575_v43 }
 0x63a   :  { %v2403_v11 = vrot.slane %v2396_v62, %v4575_v43 }
 0x63c   :  { %2264 = vrot.lane.b32.xlu0 %v2262_v10, %s4158_s22 }
 0x63d   :  { %v3852_v33 = vpop.eup %3851 }
 0x63e   :  { %v2066_v36 = vsel %vm2059_vm5, %v3852_v33, 0.0 }
 0x640   :  { %2451 = vrot.lane.b32.xlu0 %v2450_v61, %s4158_s22 }
 0x644   :  { %2404 = vrot.lane.b32.xlu0 %v2403_v11, %s4180_s19 }
 0x6a6   :  { %v2108_v63 = vpop.permute.xlu0 %2107 }
 0x6a7   :  { %3097 = vmatmul.mubr.msk.f32.vlgmr.msra.gmra.mrb[8].mxu1 %vm2109_vm6, %v2108_v63 }
 0x6a8   :  { %3100 = vmatpush3.msra.mxu1 %v2182_v30  ;;  %3101 = vmatprep.mubr.msk.f32.mxu1 %vm4176_vm1, %v4174_v0 }
 0x6a9   :  { %3109 = vmatprep.subr.mxu1 %v4174_v0 }
 0x6aa   :  { %v2185_v7 = vpop.permute.xlu0 %2184 }
 0x6ab   :  { %3102 = vmatmul.mubr.msk.f32.vlgmr.msra.gmra.mrb[10].mxu1 %vm2109_vm6, %v2185_v7 }
 0x6ac   :  { %3110 = vmatpush3.msra.mxu1 %v2105_v49  ;;  %3111 = vmatprep.mubr.msk.f32.mxu1 %vm4176_vm1, %v4174_v0 }
 0x6ad   :  { %3752 = vmatprep.subr.bf16.mxu1 %v4175_v15 }
 0x6ae   :  { %v2265_v1 = vpop.permute.xlu0 %2264 }
 0x6af   :  { %3107 = vmatmul.mubr.msk.f32.vlgmr.msra.gmra.mrb[14].mxu0 %vm2109_vm6, %v2265_v1  ;;  %3112 = vmatmul.mubr.msk.f32.vlgmr.msra.gmra.mrb[12].mxu1 %vm2109_vm6, %v2467_v26 }
 0x6b0   :  { %3115 = vmatpush3.msra.mxu0 %v2182_v30  ;;  %3116 = vmatprep.mubr.msk.f32.mxu0 %vm4176_vm1, %v4174_v0 }
 0x6b1   :  { %3135 = vmatprep.mubr.msk.f32.mxu1 %vm4176_vm1, %v4174_v0 }
 0x6b2   :  { %v2452_v13 = vpop.permute.xlu0 %2451 }
 0x6b3   :  { %3117 = vmatmul.mubr.msk.f32.vlgmr.msra.gmra.mrb[16].mxu0 %vm2109_vm6, %v4660_v4  ;;  %vm2386_vm6 = vcmp.lt.s32.totalorder %v251_v5, 128 }
 0x6b4   :  { %vm2387_vm1 = vmand %vm4611_vm8, %vm2386_vm6  ;;  %vm2759_vm8 = vcmask 582144  }
 0x6b6   :  { %v2405_v29 = vpop.permute.xlu0 %2404 }
 0x77a   :  { %v2178_v31 = vpop.f32.mrb[8].mxu1 }
 0x77b   :  { %2366 = vst.msk [vmem:[#allocation2] sm:$0x1] %vm4604_vm7, %v2178_v31  ;;  %v3098_v3 = vpop.f32.mrb[9].mxu1  ;;  %v2618_v31 = vand.u32 127, %v251_v5 }
 0x77d   :  { %vm2620_vm5 = vcmp.eq.s32.totalorder %v2618_v31, 0 }
 0x77e   :  { %v2254_v12 = vpop.f32.mrb[10].mxu1  ;;  %v2987_v3 = vsel %vm2620_vm5, 1.0, %v4174_v0 }
 0x77f   :  { %v2374_v16 = vrot.slane %v2254_v12, %v4575_v43  ;;  %v3103_v54 = vpop.f32.mrb[11].mxu1 }
 0x781   :  { %v2381_v47 = vrot.slane %v2374_v16, %v4575_v43 }
 0x782   :  { %v2334_v23 = vpop.f32.mrb[14].mxu0  ;;  %v2538_v11 = vpop.f32.mrb[12].mxu1 }
 0x783   :  { %2389 = vst.msk [vmem:[#allocation2 + $0x1] sm:$0x1] %vm4604_vm7, %v2334_v23  ;;  %2382 = vrot.lane.b32.xlu0 %v2381_v47, %s4161_s24  ;;  %v3108_v21 = vpop.f32.mrb[15].mxu0  ;;  %v3113_v30 = vpop.f32.mrb[13].mxu1  ;;  %v3753_v23 = vpack.c.bf16 %v2859_v46, %v2858_v20  ;;  %vm2749_vm7 = vcmask 516096  }
 0x784   :  { %2409 = vst.msk [vmem:[#allocation2 + $0x1] sm:$0x1] %vm2408_vm14, %v2405_v29  ;;  %v2860_v29 = vld [vmem:[%s4836_s12 + $0x10] sm:$0xff]  ;;  %v2861_v21 = vld [vmem:[%s4836_s12 + $0x18] sm:$0xff] }
 0x785   :  { %2431 = vst.msk [vmem:[#allocation2 + $0x1] sm:$0x1] %vm2430_vm3, %v2426_v25  ;;  %3754 = vmatpush3.bf16.msra.mxu1 %v3753_v23  ;;  %v3756_v32 = vpack.c.bf16 %v2861_v21, %v2860_v29 }
 0x786   :  { %2435 = vst.msk [vmem:[#allocation2 + $0x1] sm:$0x1] %vm2434_vm4, %v2426_v25  ;;  %v2613_v7 = vpop.f32.mrb[16].mxu0  ;;  %3755 = vmatprep.subr.bf16.mxu1 %v4175_v15 }
 0x787   :  { %2457 = vst.msk [vmem:[#allocation2 + $0x1] sm:$0x1] %vm2456_vm9, %v2452_v13  ;;  %v3118_v1 = vpop.f32.mrb[17].mxu0  ;;  %v2460_v13 = vld [vmem:[%s4827_s3 + $0x10] sm:$0xff] }
 0x789   :  { %3757 = vmatpush3.bf16.msra.mxu1 %v3756_v32 }
 0x78a   :  { %3758 = vmatprep.subr.bf16.mxu1 %v4175_v15 }
 0x7a2   :  { %2067 = vadd.xlane.f32.xlu0 %v2066_v36 }
 0x7f5   :  { %v2383_v39 = vpop.permute.xlu0 %2382 }
 0x7f6   :  { %2388 = vst.msk [vmem:[#allocation2] sm:$0x1] %vm2387_vm1, %v2383_v39 }
 0x7fd   :  { %v4683_v40 = vld [vmem:[#allocation2] sm:$0x3] }
 0x7fe   :  { %2682 = vrot.lane.b32.xlu1 %v4683_v40, %s4183_s10 }
 0x802   :  { %2707 = vrot.lane.b32.xlu1 %v4683_v40, %s4184_s1 }
 0x82f   :  { %v2068_v35 = vpop.xlane.xlu0 %2067 }
 0x830   :  { %3853 = vrcp.f32 %v2068_v35  ;;  %v3759_v35 = vpack.c.bf16 %v2863_v38, %v2862_v37 }
 0x832   :  { %3760 = vmatpush3.bf16.msra.mxu1 %v3759_v35 }
 0x833   :  { %3761 = vmatprep.subr.bf16.mxu1 %v4175_v15 }
 0x83a   :  { %v3854_v41 = vpop.eup %3853 }
 0x83b   :  { %v2070_v59 = vmul.f32 %v3854_v41, %v3852_v33 }
 0x83d   :  { %v2345_v45 = vrot.slane %v2070_v59, %v4482_v24 }
 0x83f   :  { %v2347_v49 = vmul.f32 %v2345_v45, %v2339_v42  ;;  %v2346_v6 = vmul.f32 %v2345_v45, %v2338_v44  ;;  %v2348_v52 = vmul.f32 %v2345_v45, %v2340_v48  ;;  %v2349_v56 = vmul.f32 %v2345_v45, %v2341_v53  ;;  %v2864_v45 = vld [vmem:[%s4836_s12 + $0x30] sm:$0xff]  ;;  %v2865_v48 = vld [vmem:[%s4836_s12 + $0x38] sm:$0xff] }
 0x841   :  { %v2353_v50 = vsel %vm296_vm0, %v2347_v49, 0.0  ;;  %v2350_v51 = vsel %vm296_vm0, %v2346_v6, 0.0  ;;  %v2356_v55 = vsel %vm296_vm0, %v2348_v52, 0.0  ;;  %v2359_v57 = vsel %vm296_vm0, %v2349_v56, 0.0 }
 0x842   :  { %2354 = vadd.xlane.f32.xlu0 %v2353_v50  ;;  %2351 = vadd.xlane.f32.xlu1 %v2350_v51  ;;  %vm2462_vm0 = vcmask 523264   ;;  %v3762_v6 = vpack.c.bf16 %v2865_v48, %v2864_v45 }
 0x843   :  { %2463 = vst.msk [vmem:[%s4840_s16] sm:$0xff] %vm2462_vm0, %v2458_v2  ;;  %2465 = vst.msk [vmem:[%s4840_s16 + $0x10] sm:$0xff] %vm2462_vm0, %v2460_v13 }
 0x844   :  { %2464 = vst.msk [vmem:[%s4840_s16 + $0x8] sm:$0xff] %vm2462_vm0, %v2459_v8  ;;  %2466 = vst.msk [vmem:[%s4840_s16 + $0x18] sm:$0xff] %vm2462_vm0, %v2461_v14  ;;  %3763 = vmatpush3.bf16.msra.mxu1 %v3762_v6 }
 0x846   :  { %2357 = vadd.xlane.f32.xlu0 %v2356_v55 }
 0x84a   :  { %2360 = vadd.xlane.f32.xlu0 %v2359_v57 }
 0x853   :  { %2699 = vperm.xlu1 %3814, %v4683_v40  }
 0x857   :  { %3815 = vset.pattern.permute.xlu1 %v4185_v58 }
 0x860   :  { %2674 = vperm.xlu0 %3813, %v4683_v40  }
 0x864   :  { %3816 = vset.pattern.permute.xlu0 %v4185_v58  ;;  %v2633_v58 = vld [vmem:[%s4840_s16 + $0x10] sm:$0xff] }
 0x870   :  { %v2683_v60 = vpop.permute.xlu1 %2682 }
 0x871   :  { %v2684_v10 = vrot.slane %v2683_v60, 1  ;;  %v2632_v60 = vld [vmem:[%s4840_s16 + $0x8] sm:$0xff] }
 0x873   :  { %v2686_v27 = vsub.f32 1.0, %v2684_v10 }
 0x874   :  { %v2708_v61 = vpop.permute.xlu1 %2707 }
 0x875   :  { %v2709_v62 = vrot.slane %v2708_v61, 1  ;;  %2689 = vperm.xlu1 %3815, %v2686_v27  }
 0x877   :  { %v2711_v63 = vsub.f32 1.0, %v2709_v62 }
 0x879   :  { %2714 = vperm.xlu1 %3815, %v2711_v63  }
 0x87d   :  { %2741 = vrot.lane.b32.xlu1 %v4683_v40, %s4161_s24 }
 0x8cf   :  { %v2355_v12 = vpop.xlane.xlu0 %2354  ;;  %v2352_v9 = vpop.xlane.xlu1 %2351 }
 0x8d0   :  { %v2623_v5 = vmul.f32 %v2987_v3, %v2352_v9  ;;  %v2624_v54 = vmul.f32 %v2987_v3, %v2355_v12 }
 0x8d2   :  { %2637 = vperm.xlu1 %3815, %v2623_v5  }
 0x8d3   :  { %v2358_v16 = vpop.xlane.xlu0 %2357  ;;  %v2700_v22 = vpop.permute.xlu1 %2699 }
 0x8d4   :  { %v2625_v17 = vmul.f32 %v2987_v3, %v2358_v16  ;;  %v2705_v50 = vrot.slane %v2700_v22, %v4488_v28 }
 0x8d6   :  { %2647 = vperm.xlu0 %3816, %v2625_v17   ;;  %2642 = vperm.xlu1 %3815, %v2624_v54   ;;  %v2706_v22 = vmul.f32 %v2705_v50, %v4683_v40 }
 0x8d7   :  { %v2361_v18 = vpop.xlane.xlu0 %2360 }
 0x8d8   :  { %v2626_v19 = vmul.f32 %v2987_v3, %v2361_v18 }
 0x8da   :  { %2652 = vperm.xlu1 %3815, %v2626_v19  }
 0x8df   :  { %v2675_v47 = vpop.permute.xlu0 %2674 }
 0x8e0   :  { %v2680_v26 = vrot.slane %v2675_v47, %v4488_v28  ;;  %v2631_v28 = vld [vmem:[%s4840_s16] sm:$0xff] }
 0x8e2   :  { %v2681_v33 = vmul.f32 %v2680_v26, %v4683_v40 }
 0x8f4   :  { %v2690_v25 = vpop.permute.xlu1 %2689 }
 0x8f5   :  { %v2695_v34 = vrot.slane %v2690_v25, %v4482_v24 }
 0x8f7   :  { %v2696_v36 = vmul.f32 %v2695_v34, %v2538_v11  ;;  %v2634_v11 = vld [vmem:[%s4840_s16 + $0x18] sm:$0xff] }
 0x8f8   :  { %v2715_v39 = vpop.permute.xlu1 %2714 }
 0x8f9   :  { %v2697_v41 = vadd.f32 %v2696_v36, %v2681_v33  ;;  %v2720_v59 = vrot.slane %v2715_v39, %v4482_v24 }
 0x8fb   :  { %v2721_v42 = vmul.f32 %v2720_v59, %v2613_v7  ;;  %v2755_v44 = vrot.slane %v2697_v41, %v4482_v24  ;;  %v2746_v52 = vmul.f32 %v2720_v59, %v4660_v4 }
 0x8fc   :  { %v2742_v49 = vpop.permute.xlu1 %2741 }
 0x8fd   :  { %v2743_v51 = vrot.slane %v2742_v49, 1  ;;  %2756 = vrot.lane.b32.xlu1 %v2755_v44, %s4161_s24  ;;  %v2729_v15 = vrot.slane %v2721_v42, %v4575_v43 }
 0x8ff   :  { %v2745_v53 = vmul.f32 %v2743_v51, %v2705_v50  ;;  %v2736_v56 = vrot.slane %v2729_v15, %v4575_v43  ;;  %v2771_v25 = vsel %vm2462_vm0, %v2742_v49, %v2743_v51  ;;  %v2866_v49 = vld [vmem:[#allocation21] sm:$0x1] }
 0x901   :  { %2775 = vrot.lane.b32.xlu1 %v4683_v40, %s4186_s9  ;;  %v2747_v55 = vadd.f32 %v2746_v52, %v2745_v53 }
 0x903   :  { %v2765_v57 = vrot.slane %v2747_v55, %v4482_v24 }
 0x905   :  { %2737 = vrot.lane.b32.xlu1 %v2736_v56, %s4161_s24  ;;  %2766 = vrot.lane.b32.xlu0 %v2765_v57, %s4158_s22 }
 0x951   :  { %v2638_v4 = vpop.permute.xlu1 %2637 }
 0x952   :  { %v2655_v43 = vmul.f32 %v2638_v4, %v2631_v28 }
 0x954   :  { %v2659_v30 = vsel %vm2462_vm0, %v2655_v43, 0.0 }
 0x955   :  { %v2648_v10 = vpop.permute.xlu0 %2647  ;;  %v2643_v27 = vpop.permute.xlu1 %2642 }
 0x956   :  { %v2657_v61 = vmul.f32 %v2648_v10, %v2633_v58  ;;  %v2656_v62 = vmul.f32 %v2643_v27, %v2632_v60 }
 0x958   :  { %v2660_v63 = vsel %vm2462_vm0, %v2656_v62, 0.0  ;;  %v2662_v2 = vsel %vm2462_vm0, %v2657_v61, 0.0 }
 0x959   :  { %v2661_v7 = vadd.f32 %v2660_v63, %v2659_v30  ;;  %v2653_v1 = vpop.permute.xlu1 %2652 }
 0x95a   :  { %v2658_v31 = vmul.f32 %v2653_v1, %v2634_v11 }
 0x95b   :  { %v2663_v3 = vadd.f32 %v2662_v2, %v2661_v7 }
 0x95c   :  { %v2664_v13 = vsel %vm2462_vm0, %v2658_v31, 0.0 }
 0x95d   :  { %v2665_v8 = vadd.f32 %v2664_v13, %v2663_v3 }
 0x95f   :  { %v2666_v12 = vrot.slane %v2665_v8, 4 }
 0x961   :  { %v2667_v9 = vadd.f32 %v2666_v12, %v2665_v8 }
 0x963   :  { %v2668_v5 = vrot.slane %v2667_v9, 2 }
 0x965   :  { %v2669_v14 = vadd.f32 %v2668_v5, %v2667_v9 }
 0x967   :  { %v2670_v16 = vrot.slane %v2669_v14, 1 }
 0x969   :  { %v2671_v54 = vadd.f32 %v2670_v16, %v2669_v14 }
 0x96b   :  { %v2748_v17 = vmul.f32 %v2697_v41, %v2671_v54 }
 0x96d   :  { %2750 = vst.msk [vmem:[#allocation3] sm:$0x1] %vm2749_vm7, %v2748_v17 }
 0x96f   :  { %v2757_v18 = vpop.permute.xlu1 %2756 }
 0x970   :  { %2760 = vst.msk [vmem:[#allocation3] sm:$0x1] %vm2759_vm8, %v2757_v18 }
 0x973   :  { %v2776_v19 = vpop.permute.xlu1 %2775 }
 0x974   :  { %v2777_v20 = vrot.slane %v2776_v19, 1 }
 0x976   :  { %v2803_v46 = vsub.f32 0.5, %v2777_v20  ;;  %v2779_v26 = vadd.f32 0.5, %v2777_v20 }
 0x977   :  { %v2767_v47 = vpop.permute.xlu0 %2766  ;;  %v2738_v23 = vpop.permute.xlu1 %2737 }
 0x978   :  { %2770 = vst.msk [vmem:[#allocation3] sm:$0x1] %vm2769_vm10, %v2767_v47  ;;  %v2740_v29 = vadd.f32 %v2738_v23, %v2706_v22  ;;  %v2808_v21 = vrot.slane %v2803_v46, %v4482_v24  ;;  %v2794_v33 = vrot.slane %v2779_v26, %v4482_v24 }
 0x97a   :  { %v2773_v32 = vmul.f32 %v2771_v25, %v2740_v29  ;;  %2810 = vperm.xlu0 %3816, %v2808_v21  }
 0x97c   :  { %v2774_v34 = vadd.f32 1.0, %v2773_v32 }
 0x97e   :  { %v2784_v36 = vrot.slane %v2774_v34, %v4482_v24  ;;  %2796 = vperm.xlu0 %3816, %v2794_v33  }
 0x97f   :  { %v2857_v37 = vld [vmem:[#allocation3] sm:$0x1] }
 0x980   :  { %3136 = vmatmul.mubr.msk.f32.vlgmr.msra.gmra.mrb[14].mxu1 %vm2462_vm0, %v2857_v37  ;;  %v2787_v40 = vmul.f32 %v2784_v36, %v2643_v27  ;;  %v2786_v38 = vmul.f32 %v2784_v36, %v2638_v4  ;;  %v2789_v39 = vmul.f32 %v2784_v36, %v2653_v1  ;;  %v2788_v35 = vmul.f32 %v2784_v36, %v2648_v10 }
 0x981   :  { %v2946_v48 = vrot.slane %v2857_v37, %v4482_v24 }
 0x9f9   :  { %v2811_v41 = vpop.permute.xlu0 %2810 }
 0x9fa   :  { %v2813_v59 = vmul.f32 %v2811_v41, %v2631_v28  ;;  %v2814_v42 = vmul.f32 %v2811_v41, %v2632_v60  ;;  %v2815_v44 = vmul.f32 %v2811_v41, %v2633_v58  ;;  %v2816_v45 = vmul.f32 %v2811_v41, %v2634_v11 }
 0x9fc   :  { %2821 = vrot.lane.b32.xlu1 %v2813_v59, %s4161_s24  ;;  %2823 = vrot.lane.b32.xlu0 %v2814_v42, %s4161_s24 }
 0x9fd   :  { %v2797_v15 = vpop.permute.xlu0 %2796 }
 0x9fe   :  { %v2800_v53 = vmul.f32 %v2797_v15, %v2787_v40  ;;  %v2799_v55 = vmul.f32 %v2797_v15, %v2786_v38  ;;  %v2802_v24 = vmul.f32 %v2797_v15, %v2789_v39  ;;  %v2801_v58 = vmul.f32 %v2797_v15, %v2788_v35 }
 0xa00   :  { %2825 = vrot.lane.b32.xlu1 %v2815_v44, %s4161_s24  ;;  %2827 = vrot.lane.b32.xlu0 %v2816_v45, %s4161_s24 }
 0xa04   :  { %2947 = vrot.lane.b32.xlu1 %v2946_v48, %s4187_s0 }
 0xa53   :  { %v2936_v6 = vpop.f32.mrb[14].mxu1 }
 0xa54   :  { %v2937_v50 = vadd.f32 %v2936_v6, %v2866_v49  ;;  %v3137_v51 = vpop.f32.mrb[15].mxu1 }
 0xa56   :  { %v2940_v52 = vmax.f32 %v2937_v50, 0.0 }
 0xa58   :  { %2942 = vst.msk [vmem:[%s4839_s15] sm:$0x1] %vm2941_vm11, %v2940_v52 }
 0xa6e   :  { %v2824_v56 = vpop.permute.xlu0 %2823  ;;  %v2822_v57 = vpop.permute.xlu1 %2821 }
 0xa6f   :  { %v2834_v28 = vadd.f32 %v2824_v56, %v2800_v53  ;;  %v2833_v4 = vadd.f32 %v2822_v57, %v2799_v55 }
 0xa71   :  { %2843 = vrot.lane.b32.xlu1 %v2834_v28, %s4161_s24  ;;  %2841 = vrot.lane.b32.xlu0 %v2833_v4, %s4161_s24 }
 0xa72   :  { %v2828_v60 = vpop.permute.xlu0 %2827  ;;  %v2826_v43 = vpop.permute.xlu1 %2825 }
 0xa73   :  { %v2836_v10 = vadd.f32 %v2828_v60, %v2802_v24  ;;  %v2835_v27 = vadd.f32 %v2826_v43, %v2801_v58 }
 0xa75   :  { %2847 = vrot.lane.b32.xlu1 %v2836_v10, %s4161_s24  ;;  %2845 = vrot.lane.b32.xlu0 %v2835_v27, %s4161_s24 }
 0xa76   :  { %v2948_v61 = vpop.permute.xlu1 %2947 }
 0xa77   :  { %2951 = vst.msk [vmem:[%s4839_s15] sm:$0x1] %vm2950_vm12, %v2948_v61 }
 0xa78   :  { %2953 = vst.msk [vmem:[%s4839_s15] sm:$0x1] %vm2952_vm13, %v4174_v0 }
 0xae3   :  { %v2842_v62 = vpop.permute.xlu0 %2841  ;;  %v2844_v11 = vpop.permute.xlu1 %2843 }
 0xae4   :  { %2853 = vst.msk [vmem:[%s4840_s16] sm:$0xff] %vm2462_vm0, %v2842_v62  ;;  %2854 = vst.msk [vmem:[%s4840_s16 + $0x8] sm:$0xff] %vm2462_vm0, %v2844_v11 }
 0xae7   :  { %v2846_v30 = vpop.permute.xlu0 %2845  ;;  %v2848_v63 = vpop.permute.xlu1 %2847 }
 0xae8   :  { %2855 = vst.msk [vmem:[%s4840_s16 + $0x10] sm:$0xff] %vm2462_vm0, %v2846_v30  ;;  %2856 = vst.msk [vmem:[%s4840_s16 + $0x18] sm:$0xff] %vm2462_vm0, %v2848_v63 }
 0xae9   :  { %2962 = vsyncpa [#allocation5], 1 }
 0xaea   :  { %2963 = vsyncpa [#allocation7], 1 }
 0xaeb   :  { %2964 = vsyncpa [#allocation10], 1 }
 0xaec   :  { %2965 = vsyncpa [#allocation13], 1 }
 0xaed   :  { %2966 = vsyncpa [#allocation16], 1 }
 0xaee   :  { %2967 = vsyncpa [#allocation19], 1 }
 0xaef   :  { %2968 = vsyncpa [#allocation22], 1 }

</bundles_post_ra>
